<compile_context>
chip_gen: v7x
topology: tpu7x:2x2x1
jax: 0.10.0
libtpu: 0.0.40
codegen_flags: <defaults>
</compile_context>

<pallas_src>
import functools

import jax
import jax.numpy as jnp
import numpy as np
from jax import lax
from jax.experimental import pallas as pl
from jax.experimental.pallas import tpu as pltpu


def _round_up(x, m):
    return (x + m - 1) // m * m


# ----------------------------------------------------------------------------
# Fused Pallas kernel: all LSTM layers + final Linear
# ----------------------------------------------------------------------------
def _fused_stock_lstm_kernel(*refs, num_layers, seq_len, HP, unroll):
    """Refs layout:
      inputs : x (T,Bp,DP),
               [w_ih_t (Din_p,4HP), w_hh_t (HP,4HP), b (1,4HP)] * num_layers,
               fc_w (HP,OP), fc_b (1,OP)
      outputs: out (Bp,OP)
      scratch: act (T,Bp,HP)  -- per-layer hidden states, reused in place
               gx  (T,Bp,4HP) -- hoisted x @ W_ih (+ bias) for the current layer
    """
    x_ref = refs[0]
    idx = 1
    layer_refs = []
    for _ in range(num_layers):
        layer_refs.append((refs[idx], refs[idx + 1], refs[idx + 2]))
        idx += 3
    fc_w_ref = refs[idx]
    fc_b_ref = refs[idx + 1]
    idx += 2
    out_ref = refs[idx]
    idx += 1
    act_ref, gx_ref = refs[idx], refs[idx + 1]

    T = seq_len
    Bp = x_ref.shape[1]

    h_last = None
    for layer in range(num_layers):
        w_ih_ref, w_hh_ref, b_ref = layer_refs[layer]
        src = x_ref if layer == 0 else act_ref
        is_last = (layer == num_layers - 1)

        # Hoisted, time-parallel input projection: one tall MXU matmul over all
        # T*Bp rows (instead of a tiny (Bp, Din) matmul per time step).
        x_all = src[...]                               # (T, Bp, Din_p)
        Tn, Bn, Din = x_all.shape
        gx = (jnp.dot(x_all.reshape(Tn * Bn, Din), w_ih_ref[...],
                      preferred_element_type=jnp.float32)
              + b_ref[...])                            # (T*Bp, 4HP)
        gx_ref[...] = gx.reshape(Tn, Bn, 4 * HP)

        # Read W_hh once per layer; the (unrolled) step closes over the value,
        # keeping the load off the per-step critical path.
        w_hh = w_hh_ref[...]

        # Zero-initialized recurrent state (matches h0/c0 = zeros in PyTorch),
        # carried in vregs across the serial loop.
        h0 = jnp.zeros((Bp, HP), jnp.float32)
        c0 = jnp.zeros((Bp, HP), jnp.float32)

        def step(t, carry, *, w_hh=w_hh, is_last=is_last):
            h, c = carry
            # Only the unavoidable recurrence stays in the serial loop.
            gates = gx_ref[t] + jnp.dot(h, w_hh,
                                        preferred_element_type=jnp.float32)
            # PyTorch gate order (i, f, g, o); each slice is a full 128-lane
            # aligned block (HP is a multiple of 128) -> free layout views.
            i_g = jax.nn.sigmoid(gates[:, 0 * HP:1 * HP])
            f_g = jax.nn.sigmoid(gates[:, 1 * HP:2 * HP])
            g_g = jnp.tanh(gates[:, 2 * HP:3 * HP])
            o_g = jax.nn.sigmoid(gates[:, 3 * HP:4 * HP])
            c_new = f_g * c + i_g * g_g
            h_new = o_g * jnp.tanh(c_new)
            if not is_last:
                # Lane-dense (Bp, HP) store, off the h/c dependency chain.
                # gx for this layer is already materialized, so writing over
                # the layer's own input buffer is safe.
                act_ref[t] = h_new
            return (h_new, c_new)

        # Static, short T -> unroll so the LLO scheduler can co-issue MXU /
        # EUP / store work across steps.
        h_last, _ = lax.fori_loop(0, T, step, (h0, c0), unroll=unroll)

    # Final Linear on the last layer's hidden state at t = T-1 (== out[:, -1, :]).
    out_ref[...] = (jnp.dot(h_last, fc_w_ref[...],
                            preferred_element_type=jnp.float32)
                    + fc_b_ref[...]).astype(out_ref.dtype)


# ----------------------------------------------------------------------------
# Wrapper
# ----------------------------------------------------------------------------
@functools.partial(jax.jit, static_argnames=("output_size",))
def stock_lstm_forward(x_btd, packed, *, output_size):
    """x_btd: (B, T, input_size) float32 -> (B, output_size) float32."""
    B, T, D = x_btd.shape
    DP = packed["lstm"][0][0].shape[0]      # padded input size (layer 0)
    HP = packed["lstm"][0][1].shape[0]      # padded hidden size
    OP = packed["fc_w"].shape[1]            # padded output size
    L = len(packed["lstm"])
    Bp = _round_up(max(B, 8), 8)            # pad batch to sublane count

    # Time-major + pad batch/feature dims with zeros.
    xt = jnp.transpose(x_btd.astype(jnp.float32), (1, 0, 2))    # (T, B, D)
    xt = jnp.pad(xt, ((0, 0), (0, Bp - B), (0, DP - D)))        # (T, Bp, DP)

    inputs = [xt]
    for (w_ih_t, w_hh_t, b) in packed["lstm"]:
        inputs.extend([w_ih_t, w_hh_t, b])
    inputs.extend([packed["fc_w"], packed["fc_b"]])

    # Advisory cost estimate for XLA scheduling around the fused kernel.
    flops = 2 * Bp * HP * OP
    for l in range(L):
        din = DP if l == 0 else HP
        flops += 2 * T * Bp * (din + HP) * 4 * HP
    transcendentals = L * T * Bp * 5 * HP
    bytes_accessed = 4 * (sum(int(np.prod(a.shape)) for a in inputs) + Bp * OP)

    # Everything lives in VMEM at once (single grid point, no double-buffering).
    scratch_bytes = 4 * (T * Bp * HP + T * Bp * 4 * HP)
    needed = bytes_accessed + scratch_bytes
    try:
        vmem_cap = int(pltpu.get_tpu_info().vmem_capacity_bytes)
    except Exception:
        vmem_cap = 64 * 1024 * 1024         # conservative (v7x per-TC)
    # Leave ~15% headroom below physical capacity; never request > capacity.
    vmem_limit = int(min(max(2 * needed, 32 * 1024 * 1024),
                         int(0.85 * vmem_cap)))

    kernel = functools.partial(
        _fused_stock_lstm_kernel,
        num_layers=L, seq_len=T, HP=HP,
        # With vreg-carried h/c, deep unroll can spill; cap at 4 for long T.
        unroll=True if T <= 16 else 4)

    out = pl.pallas_call(
        kernel,
        out_shape=jax.ShapeDtypeStruct((Bp, OP), jnp.float32),
        in_specs=[pl.BlockSpec(memory_space=pltpu.MemorySpace.VMEM)] * len(inputs),
        out_specs=pl.BlockSpec(memory_space=pltpu.MemorySpace.VMEM),
        scratch_shapes=[
            pltpu.VMEM((T, Bp, HP), jnp.float32),       # per-layer activations
            pltpu.VMEM((T, Bp, 4 * HP), jnp.float32),   # hoisted x @ W_ih gates
        ],
        compiler_params=pltpu.CompilerParams(vmem_limit_bytes=vmem_limit),
        cost_estimate=pl.CostEstimate(flops=flops,
                                      transcendentals=transcendentals,
                                      bytes_accessed=bytes_accessed),
    )(*inputs)
    return out[:B, :output_size]


# ----------------------------------------------------------------------------
# Parameter init (mirrors the PyTorch module) and padded packing
# ----------------------------------------------------------------------------
def init_params_raw(key, input_size, hidden_size, output_size, num_layers):
    """PyTorch-shaped parameters: weight_ih (4H, Din), weight_hh (4H, H), biases."""
    raw = {"lstm": []}
    for layer in range(num_layers):
        din = input_size if layer == 0 else hidden_size
        key, k1, k2, k3, k4 = jax.random.split(key, 5)
        # nn.init.uniform_(param, -0.1, 0.1) on all LSTM params
        w_ih = jax.random.uniform(k1, (4 * hidden_size, din), jnp.float32, -0.1, 0.1)
        w_hh = jax.random.uniform(k2, (4 * hidden_size, hidden_size), jnp.float32, -0.1, 0.1)
        b_ih = jax.random.uniform(k3, (4 * hidden_size,), jnp.float32, -0.1, 0.1)
        b_hh = jax.random.uniform(k4, (4 * hidden_size,), jnp.float32, -0.1, 0.1)
        raw["lstm"].append((w_ih, w_hh, b_ih, b_hh))
    key, kf = jax.random.split(key)
    # xavier_normal_ on fc.weight, constant_(bias, 0)
    std = (2.0 / (hidden_size + output_size)) ** 0.5
    raw["fc_w"] = std * jax.random.normal(kf, (output_size, hidden_size), jnp.float32)
    raw["fc_b"] = jnp.zeros((output_size,), jnp.float32)
    return raw


def pack_params(raw, input_size, hidden_size, output_size):
    """Transpose + pad to lane-aligned layouts (gate blocks padded to HP=128k)."""
    H = hidden_size
    HP = _round_up(H, 128)
    DP = _round_up(input_size, 128)
    OP = _round_up(output_size, 128)

    def pad_gate_cols(w_t):  # (rows, 4H) -> (rows, 4HP), each gate block padded
        blocks = []
        for k in range(4):
            blk = w_t[:, k * H:(k + 1) * H]
            blocks.append(jnp.pad(blk, ((0, 0), (0, HP - H))))
        return jnp.concatenate(blocks, axis=1)

    packed = {"lstm": []}
    for layer, (w_ih, w_hh, b_ih, b_hh) in enumerate(raw["lstm"]):
        din = input_size if layer == 0 else H
        din_p = DP if layer == 0 else HP
        w_ih_t = pad_gate_cols(w_ih.T)                            # (din, 4HP)
        w_ih_t = jnp.pad(w_ih_t, ((0, din_p - din), (0, 0)))      # (din_p, 4HP)
        w_hh_t = pad_gate_cols(w_hh.T)                            # (H, 4HP)
        w_hh_t = jnp.pad(w_hh_t, ((0, HP - H), (0, 0)))           # (HP, 4HP)
        b = pad_gate_cols((b_ih + b_hh)[None, :])                 # (1, 4HP)
        packed["lstm"].append((w_ih_t, w_hh_t, b))

    packed["fc_w"] = jnp.pad(raw["fc_w"].T,
                             ((0, HP - H), (0, OP - output_size)))  # (HP, OP)
    packed["fc_b"] = jnp.pad(raw["fc_b"][None, :],
                             ((0, 0), (0, OP - output_size)))       # (1, OP)
    return packed


# ----------------------------------------------------------------------------
# Pure-JAX reference (unpadded parameters) for correctness checking
# ----------------------------------------------------------------------------
def reference_forward(x_btd, raw, hidden_size):
    H = hidden_size
    xt = jnp.transpose(x_btd, (1, 0, 2)).astype(jnp.float32)      # (T, B, D)
    for (w_ih, w_hh, b_ih, b_hh) in raw["lstm"]:
        B = xt.shape[1]
        w_ih_t, w_hh_t = w_ih.T, w_hh.T
        b = (b_ih + b_hh)[None, :]
        h0 = jnp.zeros((B, H), jnp.float32)
        c0 = jnp.zeros((B, H), jnp.float32)

        def step(carry, x_t):
            h, c = carry
            gates = x_t @ w_ih_t + h @ w_hh_t + b
            i = jax.nn.sigmoid(gates[:, 0 * H:1 * H])
            f = jax.nn.sigmoid(gates[:, 1 * H:2 * H])
            g = jnp.tanh(gates[:, 2 * H:3 * H])
            o = jax.nn.sigmoid(gates[:, 3 * H:4 * H])
            c_new = f * c + i * g
            h_new = o * jnp.tanh(c_new)
            return (h_new, c_new), h_new

        _, ys = lax.scan(step, (h0, c0), xt)
        xt = ys
    return xt[-1] @ raw["fc_w"].T + raw["fc_b"][None, :]


# ----------------------------------------------------------------------------
if __name__ == "__main__":
    B, T, INPUT, HIDDEN, OUTPUT, LAYERS = 2, 8, 4, 32, 2, 2

    key = jax.random.PRNGKey(0)
    key, kx, kp = jax.random.split(key, 3)
    x = jax.random.normal(kx, (B, T, INPUT), jnp.float32)
    raw = init_params_raw(kp, INPUT, HIDDEN, OUTPUT, LAYERS)
    packed = pack_params(raw, INPUT, HIDDEN, OUTPUT)

    out = stock_lstm_forward(x, packed, output_size=OUTPUT)
    out = jax.block_until_ready(out)

    ref = jax.block_until_ready(reference_forward(x, raw, HIDDEN))
    np.testing.assert_allclose(np.asarray(out), np.asarray(ref),
                               rtol=1e-4, atol=1e-4)

    assert out.shape == (B, OUTPUT)
    print("KERNEL_OK")
</pallas_src>

<mosaic_0001>
module attributes {stable_mosaic.version = 11 : i64} {
  func.func @_fused_stock_lstm_kernel(%arg0: memref<8x8x128xf32, #tpu.memory_space<vmem>>, %arg1: memref<128x512xf32, #tpu.memory_space<vmem>>, %arg2: memref<128x512xf32, #tpu.memory_space<vmem>>, %arg3: memref<1x512xf32, #tpu.memory_space<vmem>>, %arg4: memref<128x512xf32, #tpu.memory_space<vmem>>, %arg5: memref<128x512xf32, #tpu.memory_space<vmem>>, %arg6: memref<1x512xf32, #tpu.memory_space<vmem>>, %arg7: memref<128x128xf32, #tpu.memory_space<vmem>>, %arg8: memref<1x128xf32, #tpu.memory_space<vmem>>, %arg9: memref<8x128xf32, #tpu.memory_space<vmem>>, %arg10: memref<8x8x128xf32, #tpu.memory_space<vmem>>, %arg11: memref<8x8x512xf32, #tpu.memory_space<vmem>>) attributes {dimension_semantics = [], scalar_prefetch = 0 : i64, scratch_operands = 2 : i64, tpu.core_type = #tpu.core_type<tc>} {
    %c0 = arith.constant 0 : index
    %c0_0 = arith.constant 0 : index
    %c0_1 = arith.constant 0 : index
    %0 = vector.load %arg0[%c0, %c0_0, %c0_1] : memref<8x8x128xf32, #tpu.memory_space<vmem>>, vector<8x8x128xf32>
    %1 = vector.shape_cast %0 : vector<8x8x128xf32> to vector<64x128xf32>
    %c0_2 = arith.constant 0 : index
    %c0_3 = arith.constant 0 : index
    %2 = vector.load %arg1[%c0_2, %c0_3] : memref<128x512xf32, #tpu.memory_space<vmem>>, vector<128x512xf32>
    %cst = arith.constant dense<0.000000e+00> : vector<64x512xf32>
    %3 = tpu.matmul %1, %2, %cst {dimension_numbers = #tpu.dot_dimension_numbers<[1], [0], [0], [1], [0, 0, 1, 1], [], []>} : vector<64x128xf32>, vector<128x512xf32>, vector<64x512xf32> -> vector<64x512xf32>
    %c0_4 = arith.constant 0 : index
    %c0_5 = arith.constant 0 : index
    %4 = vector.load %arg3[%c0_4, %c0_5] : memref<1x512xf32, #tpu.memory_space<vmem>>, vector<1x512xf32>
    %5 = vector.broadcast %4 : vector<1x512xf32> to vector<64x512xf32>
    %6 = arith.addf %3, %5 : vector<64x512xf32>
    %7 = vector.shape_cast %6 : vector<64x512xf32> to vector<8x8x512xf32>
    %c0_6 = arith.constant 0 : index
    %c0_7 = arith.constant 0 : index
    %c0_8 = arith.constant 0 : index
    %8 = vector.load %arg11[%c0_6, %c0_7, %c0_8] : memref<8x8x512xf32, #tpu.memory_space<vmem>>, vector<8x8x512xf32>
    tpu.vector_store %arg11[%c0_6, %c0_7, %c0_8], %7 {strides = array<i32>} : memref<8x8x512xf32, #tpu.memory_space<vmem>>, vector<8x8x512xf32>,
    %c0_9 = arith.constant 0 : index
    %c0_10 = arith.constant 0 : index
    %9 = vector.load %arg2[%c0_9, %c0_10] : memref<128x512xf32, #tpu.memory_space<vmem>>, vector<128x512xf32>
    %cst_11 = arith.constant 0.000000e+00 : f32
    %10 = vector.broadcast %cst_11 : f32 to vector<8x128xf32>
    %cst_12 = arith.constant 0.000000e+00 : f32
    %11 = vector.broadcast %cst_12 : f32 to vector<8x128xf32>
    %c0_i32 = arith.constant 0 : i32
    %12 = arith.index_cast %c0_i32 : i32 to index
    %c0_13 = arith.constant 0 : index
    %c0_14 = arith.constant 0 : index
    %13 = vector.load %arg11[%12, %c0_13, %c0_14] : memref<8x8x512xf32, #tpu.memory_space<vmem>>, vector<1x8x512xf32>
    %14 = vector.shape_cast %13 : vector<1x8x512xf32> to vector<8x512xf32>
    %cst_15 = arith.constant dense<0.000000e+00> : vector<8x512xf32>
    %15 = tpu.matmul %10, %9, %cst_15 {dimension_numbers = #tpu.dot_dimension_numbers<[1], [0], [0], [1], [0, 0, 1, 1], [], []>} : vector<8x128xf32>, vector<128x512xf32>, vector<8x512xf32> -> vector<8x512xf32>
    %16 = arith.addf %14, %15 : vector<8x512xf32>
    %17 = vector.extract_strided_slice %16 {offsets = [0, 0], sizes = [8, 128], strides = [1, 1]} : vector<8x512xf32> to vector<8x128xf32>
    %18 = arith.negf %17 : vector<8x128xf32>
    %19 = math.exp %18 : vector<8x128xf32>
    %cst_16 = arith.constant 1.000000e+00 : f32
    %20 = vector.broadcast %cst_16 : f32 to vector<8x128xf32>
    %21 = arith.addf %20, %19 : vector<8x128xf32>
    %22 = arith.divf %20, %21 : vector<8x128xf32>
    %23 = vector.extract_strided_slice %16 {offsets = [0, 128], sizes = [8, 128], strides = [1, 1]} : vector<8x512xf32> to vector<8x128xf32>
    %24 = arith.negf %23 : vector<8x128xf32>
    %25 = math.exp %24 : vector<8x128xf32>
    %cst_17 = arith.constant 1.000000e+00 : f32
    %26 = vector.broadcast %cst_17 : f32 to vector<8x128xf32>
    %27 = arith.addf %26, %25 : vector<8x128xf32>
    %28 = arith.divf %26, %27 : vector<8x128xf32>
    %29 = vector.extract_strided_slice %16 {offsets = [0, 256], sizes = [8, 128], strides = [1, 1]} : vector<8x512xf32> to vector<8x128xf32>
    %30 = math.tanh %29 : vector<8x128xf32>
    %31 = vector.extract_strided_slice %16 {offsets = [0, 384], sizes = [8, 128], strides = [1, 1]} : vector<8x512xf32> to vector<8x128xf32>
    %32 = arith.negf %31 : vector<8x128xf32>
    %33 = math.exp %32 : vector<8x128xf32>
    %cst_18 = arith.constant 1.000000e+00 : f32
    %34 = vector.broadcast %cst_18 : f32 to vector<8x128xf32>
    %35 = arith.addf %34, %33 : vector<8x128xf32>
    %36 = arith.divf %34, %35 : vector<8x128xf32>
    %37 = arith.mulf %28, %11 : vector<8x128xf32>
    %38 = arith.mulf %22, %30 : vector<8x128xf32>
    %39 = arith.addf %37, %38 : vector<8x128xf32>
    %40 = math.tanh %39 : vector<8x128xf32>
    %41 = arith.mulf %36, %40 : vector<8x128xf32>
    %42 = arith.index_cast %c0_i32 : i32 to index
    %c0_19 = arith.constant 0 : index
    %c0_20 = arith.constant 0 : index
    %43 = vector.load %arg10[%42, %c0_19, %c0_20] : memref<8x8x128xf32, #tpu.memory_space<vmem>>, vector<1x8x128xf32>
    %44 = vector.shape_cast %43 : vector<1x8x128xf32> to vector<8x128xf32>
    %45 = vector.shape_cast %41 : vector<8x128xf32> to vector<1x8x128xf32>
    tpu.vector_store %arg10[%42, %c0_19, %c0_20], %45 {strides = array<i32>} : memref<8x8x128xf32, #tpu.memory_space<vmem>>, vector<1x8x128xf32>,
    %c1_i32 = arith.constant 1 : i32
    %46 = arith.index_cast %c1_i32 : i32 to index
    %c0_21 = arith.constant 0 : index
    %c0_22 = arith.constant 0 : index
    %47 = vector.load %arg11[%46, %c0_21, %c0_22] : memref<8x8x512xf32, #tpu.memory_space<vmem>>, vector<1x8x512xf32>
    %48 = vector.shape_cast %47 : vector<1x8x512xf32> to vector<8x512xf32>
    %cst_23 = arith.constant dense<0.000000e+00> : vector<8x512xf32>
    %49 = tpu.matmul %41, %9, %cst_23 {dimension_numbers = #tpu.dot_dimension_numbers<[1], [0], [0], [1], [0, 0, 1, 1], [], []>} : vector<8x128xf32>, vector<128x512xf32>, vector<8x512xf32> -> vector<8x512xf32>
    %50 = arith.addf %48, %49 : vector<8x512xf32>
    %51 = vector.extract_strided_slice %50 {offsets = [0, 0], sizes = [8, 128], strides = [1, 1]} : vector<8x512xf32> to vector<8x128xf32>
    %52 = arith.negf %51 : vector<8x128xf32>
    %53 = math.exp %52 : vector<8x128xf32>
    %cst_24 = arith.constant 1.000000e+00 : f32
    %54 = vector.broadcast %cst_24 : f32 to vector<8x128xf32>
    %55 = arith.addf %54, %53 : vector<8x128xf32>
    %56 = arith.divf %54, %55 : vector<8x128xf32>
    %57 = vector.extract_strided_slice %50 {offsets = [0, 128], sizes = [8, 128], strides = [1, 1]} : vector<8x512xf32> to vector<8x128xf32>
    %58 = arith.negf %57 : vector<8x128xf32>
    %59 = math.exp %58 : vector<8x128xf32>
    %cst_25 = arith.constant 1.000000e+00 : f32
    %60 = vector.broadcast %cst_25 : f32 to vector<8x128xf32>
    %61 = arith.addf %60, %59 : vector<8x128xf32>
    %62 = arith.divf %60, %61 : vector<8x128xf32>
    %63 = vector.extract_strided_slice %50 {offsets = [0, 256], sizes = [8, 128], strides = [1, 1]} : vector<8x512xf32> to vector<8x128xf32>
    %64 = math.tanh %63 : vector<8x128xf32>
    %65 = vector.extract_strided_slice %50 {offsets = [0, 384], sizes = [8, 128], strides = [1, 1]} : vector<8x512xf32> to vector<8x128xf32>
    %66 = arith.negf %65 : vector<8x128xf32>
    %67 = math.exp %66 : vector<8x128xf32>
    %cst_26 = arith.constant 1.000000e+00 : f32
    %68 = vector.broadcast %cst_26 : f32 to vector<8x128xf32>
    %69 = arith.addf %68, %67 : vector<8x128xf32>
    %70 = arith.divf %68, %69 : vector<8x128xf32>
    %71 = arith.mulf %62, %39 : vector<8x128xf32>
    %72 = arith.mulf %56, %64 : vector<8x128xf32>
    %73 = arith.addf %71, %72 : vector<8x128xf32>
    %74 = math.tanh %73 : vector<8x128xf32>
    %75 = arith.mulf %70, %74 : vector<8x128xf32>
    %76 = arith.index_cast %c1_i32 : i32 to index
    %c0_27 = arith.constant 0 : index
    %c0_28 = arith.constant 0 : index
    %77 = vector.load %arg10[%76, %c0_27, %c0_28] : memref<8x8x128xf32, #tpu.memory_space<vmem>>, vector<1x8x128xf32>
    %78 = vector.shape_cast %77 : vector<1x8x128xf32> to vector<8x128xf32>
    %79 = vector.shape_cast %75 : vector<8x128xf32> to vector<1x8x128xf32>
    tpu.vector_store %arg10[%76, %c0_27, %c0_28], %79 {strides = array<i32>} : memref<8x8x128xf32, #tpu.memory_space<vmem>>, vector<1x8x128xf32>,
    %c2_i32 = arith.constant 2 : i32
    %80 = arith.index_cast %c2_i32 : i32 to index
    %c0_29 = arith.constant 0 : index
    %c0_30 = arith.constant 0 : index
    %81 = vector.load %arg11[%80, %c0_29, %c0_30] : memref<8x8x512xf32, #tpu.memory_space<vmem>>, vector<1x8x512xf32>
    %82 = vector.shape_cast %81 : vector<1x8x512xf32> to vector<8x512xf32>
    %cst_31 = arith.constant dense<0.000000e+00> : vector<8x512xf32>
    %83 = tpu.matmul %75, %9, %cst_31 {dimension_numbers = #tpu.dot_dimension_numbers<[1], [0], [0], [1], [0, 0, 1, 1], [], []>} : vector<8x128xf32>, vector<128x512xf32>, vector<8x512xf32> -> vector<8x512xf32>
    %84 = arith.addf %82, %83 : vector<8x512xf32>
    %85 = vector.extract_strided_slice %84 {offsets = [0, 0], sizes = [8, 128], strides = [1, 1]} : vector<8x512xf32> to vector<8x128xf32>
    %86 = arith.negf %85 : vector<8x128xf32>
    %87 = math.exp %86 : vector<8x128xf32>
    %cst_32 = arith.constant 1.000000e+00 : f32
    %88 = vector.broadcast %cst_32 : f32 to vector<8x128xf32>
    %89 = arith.addf %88, %87 : vector<8x128xf32>
    %90 = arith.divf %88, %89 : vector<8x128xf32>
    %91 = vector.extract_strided_slice %84 {offsets = [0, 128], sizes = [8, 128], strides = [1, 1]} : vector<8x512xf32> to vector<8x128xf32>
    %92 = arith.negf %91 : vector<8x128xf32>
    %93 = math.exp %92 : vector<8x128xf32>
    %cst_33 = arith.constant 1.000000e+00 : f32
    %94 = vector.broadcast %cst_33 : f32 to vector<8x128xf32>
    %95 = arith.addf %94, %93 : vector<8x128xf32>
    %96 = arith.divf %94, %95 : vector<8x128xf32>
    %97 = vector.extract_strided_slice %84 {offsets = [0, 256], sizes = [8, 128], strides = [1, 1]} : vector<8x512xf32> to vector<8x128xf32>
    %98 = math.tanh %97 : vector<8x128xf32>
    %99 = vector.extract_strided_slice %84 {offsets = [0, 384], sizes = [8, 128], strides = [1, 1]} : vector<8x512xf32> to vector<8x128xf32>
    %100 = arith.negf %99 : vector<8x128xf32>
    %101 = math.exp %100 : vector<8x128xf32>
    %cst_34 = arith.constant 1.000000e+00 : f32
    %102 = vector.broadcast %cst_34 : f32 to vector<8x128xf32>
    %103 = arith.addf %102, %101 : vector<8x128xf32>
    %104 = arith.divf %102, %103 : vector<8x128xf32>
    %105 = arith.mulf %96, %73 : vector<8x128xf32>
    %106 = arith.mulf %90, %98 : vector<8x128xf32>
    %107 = arith.addf %105, %106 : vector<8x128xf32>
    %108 = math.tanh %107 : vector<8x128xf32>
    %109 = arith.mulf %104, %108 : vector<8x128xf32>
    %110 = arith.index_cast %c2_i32 : i32 to index
    %c0_35 = arith.constant 0 : index
    %c0_36 = arith.constant 0 : index
    %111 = vector.load %arg10[%110, %c0_35, %c0_36] : memref<8x8x128xf32, #tpu.memory_space<vmem>>, vector<1x8x128xf32>
    %112 = vector.shape_cast %111 : vector<1x8x128xf32> to vector<8x128xf32>
    %113 = vector.shape_cast %109 : vector<8x128xf32> to vector<1x8x128xf32>
    tpu.vector_store %arg10[%110, %c0_35, %c0_36], %113 {strides = array<i32>} : memref<8x8x128xf32, #tpu.memory_space<vmem>>, vector<1x8x128xf32>,
    %c3_i32 = arith.constant 3 : i32
    %114 = arith.index_cast %c3_i32 : i32 to index
    %c0_37 = arith.constant 0 : index
    %c0_38 = arith.constant 0 : index
    %115 = vector.load %arg11[%114, %c0_37, %c0_38] : memref<8x8x512xf32, #tpu.memory_space<vmem>>, vector<1x8x512xf32>
    %116 = vector.shape_cast %115 : vector<1x8x512xf32> to vector<8x512xf32>
    %cst_39 = arith.constant dense<0.000000e+00> : vector<8x512xf32>
    %117 = tpu.matmul %109, %9, %cst_39 {dimension_numbers = #tpu.dot_dimension_numbers<[1], [0], [0], [1], [0, 0, 1, 1], [], []>} : vector<8x128xf32>, vector<128x512xf32>, vector<8x512xf32> -> vector<8x512xf32>
    %118 = arith.addf %116, %117 : vector<8x512xf32>
    %119 = vector.extract_strided_slice %118 {offsets = [0, 0], sizes = [8, 128], strides = [1, 1]} : vector<8x512xf32> to vector<8x128xf32>
    %120 = arith.negf %119 : vector<8x128xf32>
    %121 = math.exp %120 : vector<8x128xf32>
    %cst_40 = arith.constant 1.000000e+00 : f32
    %122 = vector.broadcast %cst_40 : f32 to vector<8x128xf32>
    %123 = arith.addf %122, %121 : vector<8x128xf32>
    %124 = arith.divf %122, %123 : vector<8x128xf32>
    %125 = vector.extract_strided_slice %118 {offsets = [0, 128], sizes = [8, 128], strides = [1, 1]} : vector<8x512xf32> to vector<8x128xf32>
    %126 = arith.negf %125 : vector<8x128xf32>
    %127 = math.exp %126 : vector<8x128xf32>
    %cst_41 = arith.constant 1.000000e+00 : f32
    %128 = vector.broadcast %cst_41 : f32 to vector<8x128xf32>
    %129 = arith.addf %128, %127 : vector<8x128xf32>
    %130 = arith.divf %128, %129 : vector<8x128xf32>
    %131 = vector.extract_strided_slice %118 {offsets = [0, 256], sizes = [8, 128], strides = [1, 1]} : vector<8x512xf32> to vector<8x128xf32>
    %132 = math.tanh %131 : vector<8x128xf32>
    %133 = vector.extract_strided_slice %118 {offsets = [0, 384], sizes = [8, 128], strides = [1, 1]} : vector<8x512xf32> to vector<8x128xf32>
    %134 = arith.negf %133 : vector<8x128xf32>
    %135 = math.exp %134 : vector<8x128xf32>
    %cst_42 = arith.constant 1.000000e+00 : f32
    %136 = vector.broadcast %cst_42 : f32 to vector<8x128xf32>
    %137 = arith.addf %136, %135 : vector<8x128xf32>
    %138 = arith.divf %136, %137 : vector<8x128xf32>
    %139 = arith.mulf %130, %107 : vector<8x128xf32>
    %140 = arith.mulf %124, %132 : vector<8x128xf32>
    %141 = arith.addf %139, %140 : vector<8x128xf32>
    %142 = math.tanh %141 : vector<8x128xf32>
    %143 = arith.mulf %138, %142 : vector<8x128xf32>
    %144 = arith.index_cast %c3_i32 : i32 to index
    %c0_43 = arith.constant 0 : index
    %c0_44 = arith.constant 0 : index
    %145 = vector.load %arg10[%144, %c0_43, %c0_44] : memref<8x8x128xf32, #tpu.memory_space<vmem>>, vector<1x8x128xf32>
    %146 = vector.shape_cast %145 : vector<1x8x128xf32> to vector<8x128xf32>
    %147 = vector.shape_cast %143 : vector<8x128xf32> to vector<1x8x128xf32>
    tpu.vector_store %arg10[%144, %c0_43, %c0_44], %147 {strides = array<i32>} : memref<8x8x128xf32, #tpu.memory_space<vmem>>, vector<1x8x128xf32>,
    %c4_i32 = arith.constant 4 : i32
    %148 = arith.index_cast %c4_i32 : i32 to index
    %c0_45 = arith.constant 0 : index
    %c0_46 = arith.constant 0 : index
    %149 = vector.load %arg11[%148, %c0_45, %c0_46] : memref<8x8x512xf32, #tpu.memory_space<vmem>>, vector<1x8x512xf32>
    %150 = vector.shape_cast %149 : vector<1x8x512xf32> to vector<8x512xf32>
    %cst_47 = arith.constant dense<0.000000e+00> : vector<8x512xf32>
    %151 = tpu.matmul %143, %9, %cst_47 {dimension_numbers = #tpu.dot_dimension_numbers<[1], [0], [0], [1], [0, 0, 1, 1], [], []>} : vector<8x128xf32>, vector<128x512xf32>, vector<8x512xf32> -> vector<8x512xf32>
    %152 = arith.addf %150, %151 : vector<8x512xf32>
    %153 = vector.extract_strided_slice %152 {offsets = [0, 0], sizes = [8, 128], strides = [1, 1]} : vector<8x512xf32> to vector<8x128xf32>
    %154 = arith.negf %153 : vector<8x128xf32>
    %155 = math.exp %154 : vector<8x128xf32>
    %cst_48 = arith.constant 1.000000e+00 : f32
    %156 = vector.broadcast %cst_48 : f32 to vector<8x128xf32>
    %157 = arith.addf %156, %155 : vector<8x128xf32>
    %158 = arith.divf %156, %157 : vector<8x128xf32>
    %159 = vector.extract_strided_slice %152 {offsets = [0, 128], sizes = [8, 128], strides = [1, 1]} : vector<8x512xf32> to vector<8x128xf32>
    %160 = arith.negf %159 : vector<8x128xf32>
    %161 = math.exp %160 : vector<8x128xf32>
    %cst_49 = arith.constant 1.000000e+00 : f32
    %162 = vector.broadcast %cst_49 : f32 to vector<8x128xf32>
    %163 = arith.addf %162, %161 : vector<8x128xf32>
    %164 = arith.divf %162, %163 : vector<8x128xf32>
    %165 = vector.extract_strided_slice %152 {offsets = [0, 256], sizes = [8, 128], strides = [1, 1]} : vector<8x512xf32> to vector<8x128xf32>
    %166 = math.tanh %165 : vector<8x128xf32>
    %167 = vector.extract_strided_slice %152 {offsets = [0, 384], sizes = [8, 128], strides = [1, 1]} : vector<8x512xf32> to vector<8x128xf32>
    %168 = arith.negf %167 : vector<8x128xf32>
    %169 = math.exp %168 : vector<8x128xf32>
    %cst_50 = arith.constant 1.000000e+00 : f32
    %170 = vector.broadcast %cst_50 : f32 to vector<8x128xf32>
    %171 = arith.addf %170, %169 : vector<8x128xf32>
    %172 = arith.divf %170, %171 : vector<8x128xf32>
    %173 = arith.mulf %164, %141 : vector<8x128xf32>
    %174 = arith.mulf %158, %166 : vector<8x128xf32>
    %175 = arith.addf %173, %174 : vector<8x128xf32>
    %176 = math.tanh %175 : vector<8x128xf32>
    %177 = arith.mulf %172, %176 : vector<8x128xf32>
    %178 = arith.index_cast %c4_i32 : i32 to index
    %c0_51 = arith.constant 0 : index
    %c0_52 = arith.constant 0 : index
    %179 = vector.load %arg10[%178, %c0_51, %c0_52] : memref<8x8x128xf32, #tpu.memory_space<vmem>>, vector<1x8x128xf32>
    %180 = vector.shape_cast %179 : vector<1x8x128xf32> to vector<8x128xf32>
    %181 = vector.shape_cast %177 : vector<8x128xf32> to vector<1x8x128xf32>
    tpu.vector_store %arg10[%178, %c0_51, %c0_52], %181 {strides = array<i32>} : memref<8x8x128xf32, #tpu.memory_space<vmem>>, vector<1x8x128xf32>,
    %c5_i32 = arith.constant 5 : i32
    %182 = arith.index_cast %c5_i32 : i32 to index
    %c0_53 = arith.constant 0 : index
    %c0_54 = arith.constant 0 : index
    %183 = vector.load %arg11[%182, %c0_53, %c0_54] : memref<8x8x512xf32, #tpu.memory_space<vmem>>, vector<1x8x512xf32>
    %184 = vector.shape_cast %183 : vector<1x8x512xf32> to vector<8x512xf32>
    %cst_55 = arith.constant dense<0.000000e+00> : vector<8x512xf32>
    %185 = tpu.matmul %177, %9, %cst_55 {dimension_numbers = #tpu.dot_dimension_numbers<[1], [0], [0], [1], [0, 0, 1, 1], [], []>} : vector<8x128xf32>, vector<128x512xf32>, vector<8x512xf32> -> vector<8x512xf32>
    %186 = arith.addf %184, %185 : vector<8x512xf32>
    %187 = vector.extract_strided_slice %186 {offsets = [0, 0], sizes = [8, 128], strides = [1, 1]} : vector<8x512xf32> to vector<8x128xf32>
    %188 = arith.negf %187 : vector<8x128xf32>
    %189 = math.exp %188 : vector<8x128xf32>
    %cst_56 = arith.constant 1.000000e+00 : f32
    %190 = vector.broadcast %cst_56 : f32 to vector<8x128xf32>
    %191 = arith.addf %190, %189 : vector<8x128xf32>
    %192 = arith.divf %190, %191 : vector<8x128xf32>
    %193 = vector.extract_strided_slice %186 {offsets = [0, 128], sizes = [8, 128], strides = [1, 1]} : vector<8x512xf32> to vector<8x128xf32>
    %194 = arith.negf %193 : vector<8x128xf32>
    %195 = math.exp %194 : vector<8x128xf32>
    %cst_57 = arith.constant 1.000000e+00 : f32
    %196 = vector.broadcast %cst_57 : f32 to vector<8x128xf32>
    %197 = arith.addf %196, %195 : vector<8x128xf32>
    %198 = arith.divf %196, %197 : vector<8x128xf32>
    %199 = vector.extract_strided_slice %186 {offsets = [0, 256], sizes = [8, 128], strides = [1, 1]} : vector<8x512xf32> to vector<8x128xf32>
    %200 = math.tanh %199 : vector<8x128xf32>
    %201 = vector.extract_strided_slice %186 {offsets = [0, 384], sizes = [8, 128], strides = [1, 1]} : vector<8x512xf32> to vector<8x128xf32>
    %202 = arith.negf %201 : vector<8x128xf32>
    %203 = math.exp %202 : vector<8x128xf32>
    %cst_58 = arith.constant 1.000000e+00 : f32
    %204 = vector.broadcast %cst_58 : f32 to vector<8x128xf32>
    %205 = arith.addf %204, %203 : vector<8x128xf32>
    %206 = arith.divf %204, %205 : vector<8x128xf32>
    %207 = arith.mulf %198, %175 : vector<8x128xf32>
    %208 = arith.mulf %192, %200 : vector<8x128xf32>
    %209 = arith.addf %207, %208 : vector<8x128xf32>
    %210 = math.tanh %209 : vector<8x128xf32>
    %211 = arith.mulf %206, %210 : vector<8x128xf32>
    %212 = arith.index_cast %c5_i32 : i32 to index
    %c0_59 = arith.constant 0 : index
    %c0_60 = arith.constant 0 : index
    %213 = vector.load %arg10[%212, %c0_59, %c0_60] : memref<8x8x128xf32, #tpu.memory_space<vmem>>, vector<1x8x128xf32>
    %214 = vector.shape_cast %213 : vector<1x8x128xf32> to vector<8x128xf32>
    %215 = vector.shape_cast %211 : vector<8x128xf32> to vector<1x8x128xf32>
    tpu.vector_store %arg10[%212, %c0_59, %c0_60], %215 {strides = array<i32>} : memref<8x8x128xf32, #tpu.memory_space<vmem>>, vector<1x8x128xf32>,
    %c6_i32 = arith.constant 6 : i32
    %216 = arith.index_cast %c6_i32 : i32 to index
    %c0_61 = arith.constant 0 : index
    %c0_62 = arith.constant 0 : index
    %217 = vector.load %arg11[%216, %c0_61, %c0_62] : memref<8x8x512xf32, #tpu.memory_space<vmem>>, vector<1x8x512xf32>
    %218 = vector.shape_cast %217 : vector<1x8x512xf32> to vector<8x512xf32>
    %cst_63 = arith.constant dense<0.000000e+00> : vector<8x512xf32>
    %219 = tpu.matmul %211, %9, %cst_63 {dimension_numbers = #tpu.dot_dimension_numbers<[1], [0], [0], [1], [0, 0, 1, 1], [], []>} : vector<8x128xf32>, vector<128x512xf32>, vector<8x512xf32> -> vector<8x512xf32>
    %220 = arith.addf %218, %219 : vector<8x512xf32>
    %221 = vector.extract_strided_slice %220 {offsets = [0, 0], sizes = [8, 128], strides = [1, 1]} : vector<8x512xf32> to vector<8x128xf32>
    %222 = arith.negf %221 : vector<8x128xf32>
    %223 = math.exp %222 : vector<8x128xf32>
    %cst_64 = arith.constant 1.000000e+00 : f32
    %224 = vector.broadcast %cst_64 : f32 to vector<8x128xf32>
    %225 = arith.addf %224, %223 : vector<8x128xf32>
    %226 = arith.divf %224, %225 : vector<8x128xf32>
    %227 = vector.extract_strided_slice %220 {offsets = [0, 128], sizes = [8, 128], strides = [1, 1]} : vector<8x512xf32> to vector<8x128xf32>
    %228 = arith.negf %227 : vector<8x128xf32>
    %229 = math.exp %228 : vector<8x128xf32>
    %cst_65 = arith.constant 1.000000e+00 : f32
    %230 = vector.broadcast %cst_65 : f32 to vector<8x128xf32>
    %231 = arith.addf %230, %229 : vector<8x128xf32>
    %232 = arith.divf %230, %231 : vector<8x128xf32>
    %233 = vector.extract_strided_slice %220 {offsets = [0, 256], sizes = [8, 128], strides = [1, 1]} : vector<8x512xf32> to vector<8x128xf32>
    %234 = math.tanh %233 : vector<8x128xf32>
    %235 = vector.extract_strided_slice %220 {offsets = [0, 384], sizes = [8, 128], strides = [1, 1]} : vector<8x512xf32> to vector<8x128xf32>
    %236 = arith.negf %235 : vector<8x128xf32>
    %237 = math.exp %236 : vector<8x128xf32>
    %cst_66 = arith.constant 1.000000e+00 : f32
    %238 = vector.broadcast %cst_66 : f32 to vector<8x128xf32>
    %239 = arith.addf %238, %237 : vector<8x128xf32>
    %240 = arith.divf %238, %239 : vector<8x128xf32>
    %241 = arith.mulf %232, %209 : vector<8x128xf32>
    %242 = arith.mulf %226, %234 : vector<8x128xf32>
    %243 = arith.addf %241, %242 : vector<8x128xf32>
    %244 = math.tanh %243 : vector<8x128xf32>
    %245 = arith.mulf %240, %244 : vector<8x128xf32>
    %246 = arith.index_cast %c6_i32 : i32 to index
    %c0_67 = arith.constant 0 : index
    %c0_68 = arith.constant 0 : index
    %247 = vector.load %arg10[%246, %c0_67, %c0_68] : memref<8x8x128xf32, #tpu.memory_space<vmem>>, vector<1x8x128xf32>
    %248 = vector.shape_cast %247 : vector<1x8x128xf32> to vector<8x128xf32>
    %249 = vector.shape_cast %245 : vector<8x128xf32> to vector<1x8x128xf32>
    tpu.vector_store %arg10[%246, %c0_67, %c0_68], %249 {strides = array<i32>} : memref<8x8x128xf32, #tpu.memory_space<vmem>>, vector<1x8x128xf32>,
    %c7_i32 = arith.constant 7 : i32
    %250 = arith.index_cast %c7_i32 : i32 to index
    %c0_69 = arith.constant 0 : index
    %c0_70 = arith.constant 0 : index
    %251 = vector.load %arg11[%250, %c0_69, %c0_70] : memref<8x8x512xf32, #tpu.memory_space<vmem>>, vector<1x8x512xf32>
    %252 = vector.shape_cast %251 : vector<1x8x512xf32> to vector<8x512xf32>
    %cst_71 = arith.constant dense<0.000000e+00> : vector<8x512xf32>
    %253 = tpu.matmul %245, %9, %cst_71 {dimension_numbers = #tpu.dot_dimension_numbers<[1], [0], [0], [1], [0, 0, 1, 1], [], []>} : vector<8x128xf32>, vector<128x512xf32>, vector<8x512xf32> -> vector<8x512xf32>
    %254 = arith.addf %252, %253 : vector<8x512xf32>
    %255 = vector.extract_strided_slice %254 {offsets = [0, 0], sizes = [8, 128], strides = [1, 1]} : vector<8x512xf32> to vector<8x128xf32>
    %256 = arith.negf %255 : vector<8x128xf32>
    %257 = math.exp %256 : vector<8x128xf32>
    %cst_72 = arith.constant 1.000000e+00 : f32
    %258 = vector.broadcast %cst_72 : f32 to vector<8x128xf32>
    %259 = arith.addf %258, %257 : vector<8x128xf32>
    %260 = arith.divf %258, %259 : vector<8x128xf32>
    %261 = vector.extract_strided_slice %254 {offsets = [0, 128], sizes = [8, 128], strides = [1, 1]} : vector<8x512xf32> to vector<8x128xf32>
    %262 = arith.negf %261 : vector<8x128xf32>
    %263 = math.exp %262 : vector<8x128xf32>
    %cst_73 = arith.constant 1.000000e+00 : f32
    %264 = vector.broadcast %cst_73 : f32 to vector<8x128xf32>
    %265 = arith.addf %264, %263 : vector<8x128xf32>
    %266 = arith.divf %264, %265 : vector<8x128xf32>
    %267 = vector.extract_strided_slice %254 {offsets = [0, 256], sizes = [8, 128], strides = [1, 1]} : vector<8x512xf32> to vector<8x128xf32>
    %268 = math.tanh %267 : vector<8x128xf32>
    %269 = vector.extract_strided_slice %254 {offsets = [0, 384], sizes = [8, 128], strides = [1, 1]} : vector<8x512xf32> to vector<8x128xf32>
    %270 = arith.negf %269 : vector<8x128xf32>
    %271 = math.exp %270 : vector<8x128xf32>
    %cst_74 = arith.constant 1.000000e+00 : f32
    %272 = vector.broadcast %cst_74 : f32 to vector<8x128xf32>
    %273 = arith.addf %272, %271 : vector<8x128xf32>
    %274 = arith.divf %272, %273 : vector<8x128xf32>
    %275 = arith.mulf %266, %243 : vector<8x128xf32>
    %276 = arith.mulf %260, %268 : vector<8x128xf32>
    %277 = arith.addf %275, %276 : vector<8x128xf32>
    %278 = math.tanh %277 : vector<8x128xf32>
    %279 = arith.mulf %274, %278 : vector<8x128xf32>
    %280 = arith.index_cast %c7_i32 : i32 to index
    %c0_75 = arith.constant 0 : index
    %c0_76 = arith.constant 0 : index
    %281 = vector.load %arg10[%280, %c0_75, %c0_76] : memref<8x8x128xf32, #tpu.memory_space<vmem>>, vector<1x8x128xf32>
    %282 = vector.shape_cast %281 : vector<1x8x128xf32> to vector<8x128xf32>
    %283 = vector.shape_cast %279 : vector<8x128xf32> to vector<1x8x128xf32>
    tpu.vector_store %arg10[%280, %c0_75, %c0_76], %283 {strides = array<i32>} : memref<8x8x128xf32, #tpu.memory_space<vmem>>, vector<1x8x128xf32>,
    %c8_i32 = arith.constant 8 : i32
    %c0_77 = arith.constant 0 : index
    %c0_78 = arith.constant 0 : index
    %c0_79 = arith.constant 0 : index
    %284 = vector.load %arg10[%c0_77, %c0_78, %c0_79] : memref<8x8x128xf32, #tpu.memory_space<vmem>>, vector<8x8x128xf32>
    %285 = vector.shape_cast %284 : vector<8x8x128xf32> to vector<64x128xf32>
    %c0_80 = arith.constant 0 : index
    %c0_81 = arith.constant 0 : index
    %286 = vector.load %arg4[%c0_80, %c0_81] : memref<128x512xf32, #tpu.memory_space<vmem>>, vector<128x512xf32>
    %cst_82 = arith.constant dense<0.000000e+00> : vector<64x512xf32>
    %287 = tpu.matmul %285, %286, %cst_82 {dimension_numbers = #tpu.dot_dimension_numbers<[1], [0], [0], [1], [0, 0, 1, 1], [], []>} : vector<64x128xf32>, vector<128x512xf32>, vector<64x512xf32> -> vector<64x512xf32>
    %c0_83 = arith.constant 0 : index
    %c0_84 = arith.constant 0 : index
    %288 = vector.load %arg6[%c0_83, %c0_84] : memref<1x512xf32, #tpu.memory_space<vmem>>, vector<1x512xf32>
    %289 = vector.broadcast %288 : vector<1x512xf32> to vector<64x512xf32>
    %290 = arith.addf %287, %289 : vector<64x512xf32>
    %291 = vector.shape_cast %290 : vector<64x512xf32> to vector<8x8x512xf32>
    %c0_85 = arith.constant 0 : index
    %c0_86 = arith.constant 0 : index
    %c0_87 = arith.constant 0 : index
    %292 = vector.load %arg11[%c0_85, %c0_86, %c0_87] : memref<8x8x512xf32, #tpu.memory_space<vmem>>, vector<8x8x512xf32>
    tpu.vector_store %arg11[%c0_85, %c0_86, %c0_87], %291 {strides = array<i32>} : memref<8x8x512xf32, #tpu.memory_space<vmem>>, vector<8x8x512xf32>,
    %c0_88 = arith.constant 0 : index
    %c0_89 = arith.constant 0 : index
    %293 = vector.load %arg5[%c0_88, %c0_89] : memref<128x512xf32, #tpu.memory_space<vmem>>, vector<128x512xf32>
    %cst_90 = arith.constant 0.000000e+00 : f32
    %294 = vector.broadcast %cst_90 : f32 to vector<8x128xf32>
    %cst_91 = arith.constant 0.000000e+00 : f32
    %295 = vector.broadcast %cst_91 : f32 to vector<8x128xf32>
    %c0_i32_92 = arith.constant 0 : i32
    %296 = arith.index_cast %c0_i32_92 : i32 to index
    %c0_93 = arith.constant 0 : index
    %c0_94 = arith.constant 0 : index
    %297 = vector.load %arg11[%296, %c0_93, %c0_94] : memref<8x8x512xf32, #tpu.memory_space<vmem>>, vector<1x8x512xf32>
    %298 = vector.shape_cast %297 : vector<1x8x512xf32> to vector<8x512xf32>
    %cst_95 = arith.constant dense<0.000000e+00> : vector<8x512xf32>
    %299 = tpu.matmul %294, %293, %cst_95 {dimension_numbers = #tpu.dot_dimension_numbers<[1], [0], [0], [1], [0, 0, 1, 1], [], []>} : vector<8x128xf32>, vector<128x512xf32>, vector<8x512xf32> -> vector<8x512xf32>
    %300 = arith.addf %298, %299 : vector<8x512xf32>
    %301 = vector.extract_strided_slice %300 {offsets = [0, 0], sizes = [8, 128], strides = [1, 1]} : vector<8x512xf32> to vector<8x128xf32>
    %302 = arith.negf %301 : vector<8x128xf32>
    %303 = math.exp %302 : vector<8x128xf32>
    %cst_96 = arith.constant 1.000000e+00 : f32
    %304 = vector.broadcast %cst_96 : f32 to vector<8x128xf32>
    %305 = arith.addf %304, %303 : vector<8x128xf32>
    %306 = arith.divf %304, %305 : vector<8x128xf32>
    %307 = vector.extract_strided_slice %300 {offsets = [0, 128], sizes = [8, 128], strides = [1, 1]} : vector<8x512xf32> to vector<8x128xf32>
    %308 = arith.negf %307 : vector<8x128xf32>
    %309 = math.exp %308 : vector<8x128xf32>
    %cst_97 = arith.constant 1.000000e+00 : f32
    %310 = vector.broadcast %cst_97 : f32 to vector<8x128xf32>
    %311 = arith.addf %310, %309 : vector<8x128xf32>
    %312 = arith.divf %310, %311 : vector<8x128xf32>
    %313 = vector.extract_strided_slice %300 {offsets = [0, 256], sizes = [8, 128], strides = [1, 1]} : vector<8x512xf32> to vector<8x128xf32>
    %314 = math.tanh %313 : vector<8x128xf32>
    %315 = vector.extract_strided_slice %300 {offsets = [0, 384], sizes = [8, 128], strides = [1, 1]} : vector<8x512xf32> to vector<8x128xf32>
    %316 = arith.negf %315 : vector<8x128xf32>
    %317 = math.exp %316 : vector<8x128xf32>
    %cst_98 = arith.constant 1.000000e+00 : f32
    %318 = vector.broadcast %cst_98 : f32 to vector<8x128xf32>
    %319 = arith.addf %318, %317 : vector<8x128xf32>
    %320 = arith.divf %318, %319 : vector<8x128xf32>
    %321 = arith.mulf %312, %295 : vector<8x128xf32>
    %322 = arith.mulf %306, %314 : vector<8x128xf32>
    %323 = arith.addf %321, %322 : vector<8x128xf32>
    %324 = math.tanh %323 : vector<8x128xf32>
    %325 = arith.mulf %320, %324 : vector<8x128xf32>
    %c1_i32_99 = arith.constant 1 : i32
    %326 = arith.index_cast %c1_i32_99 : i32 to index
    %c0_100 = arith.constant 0 : index
    %c0_101 = arith.constant 0 : index
    %327 = vector.load %arg11[%326, %c0_100, %c0_101] : memref<8x8x512xf32, #tpu.memory_space<vmem>>, vector<1x8x512xf32>
    %328 = vector.shape_cast %327 : vector<1x8x512xf32> to vector<8x512xf32>
    %cst_102 = arith.constant dense<0.000000e+00> : vector<8x512xf32>
    %329 = tpu.matmul %325, %293, %cst_102 {dimension_numbers = #tpu.dot_dimension_numbers<[1], [0], [0], [1], [0, 0, 1, 1], [], []>} : vector<8x128xf32>, vector<128x512xf32>, vector<8x512xf32> -> vector<8x512xf32>
    %330 = arith.addf %328, %329 : vector<8x512xf32>
    %331 = vector.extract_strided_slice %330 {offsets = [0, 0], sizes = [8, 128], strides = [1, 1]} : vector<8x512xf32> to vector<8x128xf32>
    %332 = arith.negf %331 : vector<8x128xf32>
    %333 = math.exp %332 : vector<8x128xf32>
    %cst_103 = arith.constant 1.000000e+00 : f32
    %334 = vector.broadcast %cst_103 : f32 to vector<8x128xf32>
    %335 = arith.addf %334, %333 : vector<8x128xf32>
    %336 = arith.divf %334, %335 : vector<8x128xf32>
    %337 = vector.extract_strided_slice %330 {offsets = [0, 128], sizes = [8, 128], strides = [1, 1]} : vector<8x512xf32> to vector<8x128xf32>
    %338 = arith.negf %337 : vector<8x128xf32>
    %339 = math.exp %338 : vector<8x128xf32>
    %cst_104 = arith.constant 1.000000e+00 : f32
    %340 = vector.broadcast %cst_104 : f32 to vector<8x128xf32>
    %341 = arith.addf %340, %339 : vector<8x128xf32>
    %342 = arith.divf %340, %341 : vector<8x128xf32>
    %343 = vector.extract_strided_slice %330 {offsets = [0, 256], sizes = [8, 128], strides = [1, 1]} : vector<8x512xf32> to vector<8x128xf32>
    %344 = math.tanh %343 : vector<8x128xf32>
    %345 = vector.extract_strided_slice %330 {offsets = [0, 384], sizes = [8, 128], strides = [1, 1]} : vector<8x512xf32> to vector<8x128xf32>
    %346 = arith.negf %345 : vector<8x128xf32>
    %347 = math.exp %346 : vector<8x128xf32>
    %cst_105 = arith.constant 1.000000e+00 : f32
    %348 = vector.broadcast %cst_105 : f32 to vector<8x128xf32>
    %349 = arith.addf %348, %347 : vector<8x128xf32>
    %350 = arith.divf %348, %349 : vector<8x128xf32>
    %351 = arith.mulf %342, %323 : vector<8x128xf32>
    %352 = arith.mulf %336, %344 : vector<8x128xf32>
    %353 = arith.addf %351, %352 : vector<8x128xf32>
    %354 = math.tanh %353 : vector<8x128xf32>
    %355 = arith.mulf %350, %354 : vector<8x128xf32>
    %c2_i32_106 = arith.constant 2 : i32
    %356 = arith.index_cast %c2_i32_106 : i32 to index
    %c0_107 = arith.constant 0 : index
    %c0_108 = arith.constant 0 : index
    %357 = vector.load %arg11[%356, %c0_107, %c0_108] : memref<8x8x512xf32, #tpu.memory_space<vmem>>, vector<1x8x512xf32>
    %358 = vector.shape_cast %357 : vector<1x8x512xf32> to vector<8x512xf32>
    %cst_109 = arith.constant dense<0.000000e+00> : vector<8x512xf32>
    %359 = tpu.matmul %355, %293, %cst_109 {dimension_numbers = #tpu.dot_dimension_numbers<[1], [0], [0], [1], [0, 0, 1, 1], [], []>} : vector<8x128xf32>, vector<128x512xf32>, vector<8x512xf32> -> vector<8x512xf32>
    %360 = arith.addf %358, %359 : vector<8x512xf32>
    %361 = vector.extract_strided_slice %360 {offsets = [0, 0], sizes = [8, 128], strides = [1, 1]} : vector<8x512xf32> to vector<8x128xf32>
    %362 = arith.negf %361 : vector<8x128xf32>
    %363 = math.exp %362 : vector<8x128xf32>
    %cst_110 = arith.constant 1.000000e+00 : f32
    %364 = vector.broadcast %cst_110 : f32 to vector<8x128xf32>
    %365 = arith.addf %364, %363 : vector<8x128xf32>
    %366 = arith.divf %364, %365 : vector<8x128xf32>
    %367 = vector.extract_strided_slice %360 {offsets = [0, 128], sizes = [8, 128], strides = [1, 1]} : vector<8x512xf32> to vector<8x128xf32>
    %368 = arith.negf %367 : vector<8x128xf32>
    %369 = math.exp %368 : vector<8x128xf32>
    %cst_111 = arith.constant 1.000000e+00 : f32
    %370 = vector.broadcast %cst_111 : f32 to vector<8x128xf32>
    %371 = arith.addf %370, %369 : vector<8x128xf32>
    %372 = arith.divf %370, %371 : vector<8x128xf32>
    %373 = vector.extract_strided_slice %360 {offsets = [0, 256], sizes = [8, 128], strides = [1, 1]} : vector<8x512xf32> to vector<8x128xf32>
    %374 = math.tanh %373 : vector<8x128xf32>
    %375 = vector.extract_strided_slice %360 {offsets = [0, 384], sizes = [8, 128], strides = [1, 1]} : vector<8x512xf32> to vector<8x128xf32>
    %376 = arith.negf %375 : vector<8x128xf32>
    %377 = math.exp %376 : vector<8x128xf32>
    %cst_112 = arith.constant 1.000000e+00 : f32
    %378 = vector.broadcast %cst_112 : f32 to vector<8x128xf32>
    %379 = arith.addf %378, %377 : vector<8x128xf32>
    %380 = arith.divf %378, %379 : vector<8x128xf32>
    %381 = arith.mulf %372, %353 : vector<8x128xf32>
    %382 = arith.mulf %366, %374 : vector<8x128xf32>
    %383 = arith.addf %381, %382 : vector<8x128xf32>
    %384 = math.tanh %383 : vector<8x128xf32>
    %385 = arith.mulf %380, %384 : vector<8x128xf32>
    %c3_i32_113 = arith.constant 3 : i32
    %386 = arith.index_cast %c3_i32_113 : i32 to index
    %c0_114 = arith.constant 0 : index
    %c0_115 = arith.constant 0 : index
    %387 = vector.load %arg11[%386, %c0_114, %c0_115] : memref<8x8x512xf32, #tpu.memory_space<vmem>>, vector<1x8x512xf32>
    %388 = vector.shape_cast %387 : vector<1x8x512xf32> to vector<8x512xf32>
    %cst_116 = arith.constant dense<0.000000e+00> : vector<8x512xf32>
    %389 = tpu.matmul %385, %293, %cst_116 {dimension_numbers = #tpu.dot_dimension_numbers<[1], [0], [0], [1], [0, 0, 1, 1], [], []>} : vector<8x128xf32>, vector<128x512xf32>, vector<8x512xf32> -> vector<8x512xf32>
    %390 = arith.addf %388, %389 : vector<8x512xf32>
    %391 = vector.extract_strided_slice %390 {offsets = [0, 0], sizes = [8, 128], strides = [1, 1]} : vector<8x512xf32> to vector<8x128xf32>
    %392 = arith.negf %391 : vector<8x128xf32>
    %393 = math.exp %392 : vector<8x128xf32>
    %cst_117 = arith.constant 1.000000e+00 : f32
    %394 = vector.broadcast %cst_117 : f32 to vector<8x128xf32>
    %395 = arith.addf %394, %393 : vector<8x128xf32>
    %396 = arith.divf %394, %395 : vector<8x128xf32>
    %397 = vector.extract_strided_slice %390 {offsets = [0, 128], sizes = [8, 128], strides = [1, 1]} : vector<8x512xf32> to vector<8x128xf32>
    %398 = arith.negf %397 : vector<8x128xf32>
    %399 = math.exp %398 : vector<8x128xf32>
    %cst_118 = arith.constant 1.000000e+00 : f32
    %400 = vector.broadcast %cst_118 : f32 to vector<8x128xf32>
    %401 = arith.addf %400, %399 : vector<8x128xf32>
    %402 = arith.divf %400, %401 : vector<8x128xf32>
    %403 = vector.extract_strided_slice %390 {offsets = [0, 256], sizes = [8, 128], strides = [1, 1]} : vector<8x512xf32> to vector<8x128xf32>
    %404 = math.tanh %403 : vector<8x128xf32>
    %405 = vector.extract_strided_slice %390 {offsets = [0, 384], sizes = [8, 128], strides = [1, 1]} : vector<8x512xf32> to vector<8x128xf32>
    %406 = arith.negf %405 : vector<8x128xf32>
    %407 = math.exp %406 : vector<8x128xf32>
    %cst_119 = arith.constant 1.000000e+00 : f32
    %408 = vector.broadcast %cst_119 : f32 to vector<8x128xf32>
    %409 = arith.addf %408, %407 : vector<8x128xf32>
    %410 = arith.divf %408, %409 : vector<8x128xf32>
    %411 = arith.mulf %402, %383 : vector<8x128xf32>
    %412 = arith.mulf %396, %404 : vector<8x128xf32>
    %413 = arith.addf %411, %412 : vector<8x128xf32>
    %414 = math.tanh %413 : vector<8x128xf32>
    %415 = arith.mulf %410, %414 : vector<8x128xf32>
    %c4_i32_120 = arith.constant 4 : i32
    %416 = arith.index_cast %c4_i32_120 : i32 to index
    %c0_121 = arith.constant 0 : index
    %c0_122 = arith.constant 0 : index
    %417 = vector.load %arg11[%416, %c0_121, %c0_122] : memref<8x8x512xf32, #tpu.memory_space<vmem>>, vector<1x8x512xf32>
    %418 = vector.shape_cast %417 : vector<1x8x512xf32> to vector<8x512xf32>
    %cst_123 = arith.constant dense<0.000000e+00> : vector<8x512xf32>
    %419 = tpu.matmul %415, %293, %cst_123 {dimension_numbers = #tpu.dot_dimension_numbers<[1], [0], [0], [1], [0, 0, 1, 1], [], []>} : vector<8x128xf32>, vector<128x512xf32>, vector<8x512xf32> -> vector<8x512xf32>
    %420 = arith.addf %418, %419 : vector<8x512xf32>
    %421 = vector.extract_strided_slice %420 {offsets = [0, 0], sizes = [8, 128], strides = [1, 1]} : vector<8x512xf32> to vector<8x128xf32>
    %422 = arith.negf %421 : vector<8x128xf32>
    %423 = math.exp %422 : vector<8x128xf32>
    %cst_124 = arith.constant 1.000000e+00 : f32
    %424 = vector.broadcast %cst_124 : f32 to vector<8x128xf32>
    %425 = arith.addf %424, %423 : vector<8x128xf32>
    %426 = arith.divf %424, %425 : vector<8x128xf32>
    %427 = vector.extract_strided_slice %420 {offsets = [0, 128], sizes = [8, 128], strides = [1, 1]} : vector<8x512xf32> to vector<8x128xf32>
    %428 = arith.negf %427 : vector<8x128xf32>
    %429 = math.exp %428 : vector<8x128xf32>
    %cst_125 = arith.constant 1.000000e+00 : f32
    %430 = vector.broadcast %cst_125 : f32 to vector<8x128xf32>
    %431 = arith.addf %430, %429 : vector<8x128xf32>
    %432 = arith.divf %430, %431 : vector<8x128xf32>
    %433 = vector.extract_strided_slice %420 {offsets = [0, 256], sizes = [8, 128], strides = [1, 1]} : vector<8x512xf32> to vector<8x128xf32>
    %434 = math.tanh %433 : vector<8x128xf32>
    %435 = vector.extract_strided_slice %420 {offsets = [0, 384], sizes = [8, 128], strides = [1, 1]} : vector<8x512xf32> to vector<8x128xf32>
    %436 = arith.negf %435 : vector<8x128xf32>
    %437 = math.exp %436 : vector<8x128xf32>
    %cst_126 = arith.constant 1.000000e+00 : f32
    %438 = vector.broadcast %cst_126 : f32 to vector<8x128xf32>
    %439 = arith.addf %438, %437 : vector<8x128xf32>
    %440 = arith.divf %438, %439 : vector<8x128xf32>
    %441 = arith.mulf %432, %413 : vector<8x128xf32>
    %442 = arith.mulf %426, %434 : vector<8x128xf32>
    %443 = arith.addf %441, %442 : vector<8x128xf32>
    %444 = math.tanh %443 : vector<8x128xf32>
    %445 = arith.mulf %440, %444 : vector<8x128xf32>
    %c5_i32_127 = arith.constant 5 : i32
    %446 = arith.index_cast %c5_i32_127 : i32 to index
    %c0_128 = arith.constant 0 : index
    %c0_129 = arith.constant 0 : index
    %447 = vector.load %arg11[%446, %c0_128, %c0_129] : memref<8x8x512xf32, #tpu.memory_space<vmem>>, vector<1x8x512xf32>
    %448 = vector.shape_cast %447 : vector<1x8x512xf32> to vector<8x512xf32>
    %cst_130 = arith.constant dense<0.000000e+00> : vector<8x512xf32>
    %449 = tpu.matmul %445, %293, %cst_130 {dimension_numbers = #tpu.dot_dimension_numbers<[1], [0], [0], [1], [0, 0, 1, 1], [], []>} : vector<8x128xf32>, vector<128x512xf32>, vector<8x512xf32> -> vector<8x512xf32>
    %450 = arith.addf %448, %449 : vector<8x512xf32>
    %451 = vector.extract_strided_slice %450 {offsets = [0, 0], sizes = [8, 128], strides = [1, 1]} : vector<8x512xf32> to vector<8x128xf32>
    %452 = arith.negf %451 : vector<8x128xf32>
    %453 = math.exp %452 : vector<8x128xf32>
    %cst_131 = arith.constant 1.000000e+00 : f32
    %454 = vector.broadcast %cst_131 : f32 to vector<8x128xf32>
    %455 = arith.addf %454, %453 : vector<8x128xf32>
    %456 = arith.divf %454, %455 : vector<8x128xf32>
    %457 = vector.extract_strided_slice %450 {offsets = [0, 128], sizes = [8, 128], strides = [1, 1]} : vector<8x512xf32> to vector<8x128xf32>
    %458 = arith.negf %457 : vector<8x128xf32>
    %459 = math.exp %458 : vector<8x128xf32>
    %cst_132 = arith.constant 1.000000e+00 : f32
    %460 = vector.broadcast %cst_132 : f32 to vector<8x128xf32>
    %461 = arith.addf %460, %459 : vector<8x128xf32>
    %462 = arith.divf %460, %461 : vector<8x128xf32>
    %463 = vector.extract_strided_slice %450 {offsets = [0, 256], sizes = [8, 128], strides = [1, 1]} : vector<8x512xf32> to vector<8x128xf32>
    %464 = math.tanh %463 : vector<8x128xf32>
    %465 = vector.extract_strided_slice %450 {offsets = [0, 384], sizes = [8, 128], strides = [1, 1]} : vector<8x512xf32> to vector<8x128xf32>
    %466 = arith.negf %465 : vector<8x128xf32>
    %467 = math.exp %466 : vector<8x128xf32>
    %cst_133 = arith.constant 1.000000e+00 : f32
    %468 = vector.broadcast %cst_133 : f32 to vector<8x128xf32>
    %469 = arith.addf %468, %467 : vector<8x128xf32>
    %470 = arith.divf %468, %469 : vector<8x128xf32>
    %471 = arith.mulf %462, %443 : vector<8x128xf32>
    %472 = arith.mulf %456, %464 : vector<8x128xf32>
    %473 = arith.addf %471, %472 : vector<8x128xf32>
    %474 = math.tanh %473 : vector<8x128xf32>
    %475 = arith.mulf %470, %474 : vector<8x128xf32>
    %c6_i32_134 = arith.constant 6 : i32
    %476 = arith.index_cast %c6_i32_134 : i32 to index
    %c0_135 = arith.constant 0 : index
    %c0_136 = arith.constant 0 : index
    %477 = vector.load %arg11[%476, %c0_135, %c0_136] : memref<8x8x512xf32, #tpu.memory_space<vmem>>, vector<1x8x512xf32>
    %478 = vector.shape_cast %477 : vector<1x8x512xf32> to vector<8x512xf32>
    %cst_137 = arith.constant dense<0.000000e+00> : vector<8x512xf32>
    %479 = tpu.matmul %475, %293, %cst_137 {dimension_numbers = #tpu.dot_dimension_numbers<[1], [0], [0], [1], [0, 0, 1, 1], [], []>} : vector<8x128xf32>, vector<128x512xf32>, vector<8x512xf32> -> vector<8x512xf32>
    %480 = arith.addf %478, %479 : vector<8x512xf32>
    %481 = vector.extract_strided_slice %480 {offsets = [0, 0], sizes = [8, 128], strides = [1, 1]} : vector<8x512xf32> to vector<8x128xf32>
    %482 = arith.negf %481 : vector<8x128xf32>
    %483 = math.exp %482 : vector<8x128xf32>
    %cst_138 = arith.constant 1.000000e+00 : f32
    %484 = vector.broadcast %cst_138 : f32 to vector<8x128xf32>
    %485 = arith.addf %484, %483 : vector<8x128xf32>
    %486 = arith.divf %484, %485 : vector<8x128xf32>
    %487 = vector.extract_strided_slice %480 {offsets = [0, 128], sizes = [8, 128], strides = [1, 1]} : vector<8x512xf32> to vector<8x128xf32>
    %488 = arith.negf %487 : vector<8x128xf32>
    %489 = math.exp %488 : vector<8x128xf32>
    %cst_139 = arith.constant 1.000000e+00 : f32
    %490 = vector.broadcast %cst_139 : f32 to vector<8x128xf32>
    %491 = arith.addf %490, %489 : vector<8x128xf32>
    %492 = arith.divf %490, %491 : vector<8x128xf32>
    %493 = vector.extract_strided_slice %480 {offsets = [0, 256], sizes = [8, 128], strides = [1, 1]} : vector<8x512xf32> to vector<8x128xf32>
    %494 = math.tanh %493 : vector<8x128xf32>
    %495 = vector.extract_strided_slice %480 {offsets = [0, 384], sizes = [8, 128], strides = [1, 1]} : vector<8x512xf32> to vector<8x128xf32>
    %496 = arith.negf %495 : vector<8x128xf32>
    %497 = math.exp %496 : vector<8x128xf32>
    %cst_140 = arith.constant 1.000000e+00 : f32
    %498 = vector.broadcast %cst_140 : f32 to vector<8x128xf32>
    %499 = arith.addf %498, %497 : vector<8x128xf32>
    %500 = arith.divf %498, %499 : vector<8x128xf32>
    %501 = arith.mulf %492, %473 : vector<8x128xf32>
    %502 = arith.mulf %486, %494 : vector<8x128xf32>
    %503 = arith.addf %501, %502 : vector<8x128xf32>
    %504 = math.tanh %503 : vector<8x128xf32>
    %505 = arith.mulf %500, %504 : vector<8x128xf32>
    %c7_i32_141 = arith.constant 7 : i32
    %506 = arith.index_cast %c7_i32_141 : i32 to index
    %c0_142 = arith.constant 0 : index
    %c0_143 = arith.constant 0 : index
    %507 = vector.load %arg11[%506, %c0_142, %c0_143] : memref<8x8x512xf32, #tpu.memory_space<vmem>>, vector<1x8x512xf32>
    %508 = vector.shape_cast %507 : vector<1x8x512xf32> to vector<8x512xf32>
    %cst_144 = arith.constant dense<0.000000e+00> : vector<8x512xf32>
    %509 = tpu.matmul %505, %293, %cst_144 {dimension_numbers = #tpu.dot_dimension_numbers<[1], [0], [0], [1], [0, 0, 1, 1], [], []>} : vector<8x128xf32>, vector<128x512xf32>, vector<8x512xf32> -> vector<8x512xf32>
    %510 = arith.addf %508, %509 : vector<8x512xf32>
    %511 = vector.extract_strided_slice %510 {offsets = [0, 0], sizes = [8, 128], strides = [1, 1]} : vector<8x512xf32> to vector<8x128xf32>
    %512 = arith.negf %511 : vector<8x128xf32>
    %513 = math.exp %512 : vector<8x128xf32>
    %cst_145 = arith.constant 1.000000e+00 : f32
    %514 = vector.broadcast %cst_145 : f32 to vector<8x128xf32>
    %515 = arith.addf %514, %513 : vector<8x128xf32>
    %516 = arith.divf %514, %515 : vector<8x128xf32>
    %517 = vector.extract_strided_slice %510 {offsets = [0, 128], sizes = [8, 128], strides = [1, 1]} : vector<8x512xf32> to vector<8x128xf32>
    %518 = arith.negf %517 : vector<8x128xf32>
    %519 = math.exp %518 : vector<8x128xf32>
    %cst_146 = arith.constant 1.000000e+00 : f32
    %520 = vector.broadcast %cst_146 : f32 to vector<8x128xf32>
    %521 = arith.addf %520, %519 : vector<8x128xf32>
    %522 = arith.divf %520, %521 : vector<8x128xf32>
    %523 = vector.extract_strided_slice %510 {offsets = [0, 256], sizes = [8, 128], strides = [1, 1]} : vector<8x512xf32> to vector<8x128xf32>
    %524 = math.tanh %523 : vector<8x128xf32>
    %525 = vector.extract_strided_slice %510 {offsets = [0, 384], sizes = [8, 128], strides = [1, 1]} : vector<8x512xf32> to vector<8x128xf32>
    %526 = arith.negf %525 : vector<8x128xf32>
    %527 = math.exp %526 : vector<8x128xf32>
    %cst_147 = arith.constant 1.000000e+00 : f32
    %528 = vector.broadcast %cst_147 : f32 to vector<8x128xf32>
    %529 = arith.addf %528, %527 : vector<8x128xf32>
    %530 = arith.divf %528, %529 : vector<8x128xf32>
    %531 = arith.mulf %522, %503 : vector<8x128xf32>
    %532 = arith.mulf %516, %524 : vector<8x128xf32>
    %533 = arith.addf %531, %532 : vector<8x128xf32>
    %534 = math.tanh %533 : vector<8x128xf32>
    %535 = arith.mulf %530, %534 : vector<8x128xf32>
    %c8_i32_148 = arith.constant 8 : i32
    %c0_149 = arith.constant 0 : index
    %c0_150 = arith.constant 0 : index
    %536 = vector.load %arg7[%c0_149, %c0_150] : memref<128x128xf32, #tpu.memory_space<vmem>>, vector<128x128xf32>
    %cst_151 = arith.constant dense<0.000000e+00> : vector<8x128xf32>
    %537 = tpu.matmul %535, %536, %cst_151 {dimension_numbers = #tpu.dot_dimension_numbers<[1], [0], [0], [1], [0, 0, 1, 1], [], []>} : vector<8x128xf32>, vector<128x128xf32>, vector<8x128xf32> -> vector<8x128xf32>
    %c0_152 = arith.constant 0 : index
    %c0_153 = arith.constant 0 : index
    %538 = vector.load %arg8[%c0_152, %c0_153] : memref<1x128xf32, #tpu.memory_space<vmem>>, vector<1x128xf32>
    %539 = vector.broadcast %538 : vector<1x128xf32> to vector<8x128xf32>
    %540 = arith.addf %537, %539 : vector<8x128xf32>
    %c0_154 = arith.constant 0 : index
    %c0_155 = arith.constant 0 : index
    %541 = vector.load %arg9[%c0_154, %c0_155] : memref<8x128xf32, #tpu.memory_space<vmem>>, vector<8x128xf32>
    tpu.vector_store %arg9[%c0_154, %c0_155], %540 {strides = array<i32>} : memref<8x128xf32, #tpu.memory_space<vmem>>, vector<8x128xf32>,
    return
  }
}

</mosaic_0001>

<bundles_post_ra>
// kernel: stock_lstm_forward.1
= control target key start
LH: loop header
LB: loop body
LE: loop exit
PB: predicated region body
PF: predicated region fallthrough
CT: control target
= control target key end

     0   :  { %14 = vsyncpa [#allocation5], 0  ;;  %s6721_s0 = inlined_call_operand.vmem [shape: f32[8,8,128], index: 0, kind: input, shape index: {}]   ;;  %s6722_s1 = inlined_call_operand.hbm [shape: f32[128,512], index: 1, kind: input, shape index: {}]   ;;  %s6723_s2 = inlined_call_operand.hbm [shape: f32[128,512], index: 2, kind: input, shape index: {}]   ;;  %s6724_s3 = inlined_call_operand.vmem [shape: f32[1,512], index: 3, kind: input, shape index: {}]   ;;  %s6725_s4 = inlined_call_operand.hbm [shape: f32[128,512], index: 4, kind: input, shape index: {}]   ;;  %s6726_s5 = inlined_call_operand.hbm [shape: f32[128,512], index: 5, kind: input, shape index: {}]   ;;  %s6727_s6 = inlined_call_operand.vmem [shape: f32[1,512], index: 6, kind: input, shape index: {}]   ;;  %s6728_s7 = inlined_call_operand.hbm [shape: f32[128,128], index: 7, kind: input, shape index: {}]   ;;  %s6729_s8 = inlined_call_operand.vmem [shape: f32[1,128], index: 8, kind: input, shape index: {}]   ;;  %s6730_s9 = inlined_call_operand.vmem [shape: f32[8,128], index: 9, kind: output, shape index: {}]  }
   0x1   :  { %15 = vsyncpa [#allocation7], 0 }
   0x2   :  { %16 = vsyncpa [#allocation10], 0  ;;  %s5628_s30 = smov [#allocation6]   ;;  %s5629_s11 = smov [#allocation9]  }
   0x3   :  { %s36_s10 = sshll.u32 %s5628_s30, 4  ;;  %s62_s12 = sshll.u32 %s5629_s11, 4  ;;  %s37_s10 = int_to_ptr.vmem [resolvable:$true] %s36_s10  ;;  %s5690_s12 = int_to_ptr.vmem [resolvable:$true] %s62_s12 }
   0x4   :  { %s5512_s15 = scalar_lea.hbm %s6723_s2, 8192 }
   0x5   :  { %p5513_p0 = scmp.ne.s32.totalorder %s6723_s2, %s5512_s15  ;;  %p5516_p1 = scmp.lt.u32.totalorder %s5512_s15, %s6723_s2 }
   0x7   :  { %p5518_p2 = pnand %p5516_p1, %p5513_p0 }
   0x9   :  { %5521 = shalt.err (!%p5518_p2)
}
   0xa   :  { %s5522_s20 = scalar_lea.vmem %s37_s10, 8192  ;;  %p5527_p4 = scmp.lt.s32.totalorder %s37_s10, %s37_s10 }
   0xb   :  { %p5523_p3 = scmp.ne.s32.totalorder %s37_s10, %s5522_s20  ;;  %p5528_p5 = scmp.lt.s32.totalorder %s5522_s20, %s5522_s20 }
   0xd   :  { %p5529_p6 = por %p5528_p5, %p5527_p4 }
   0xf   :  { %p5530_p7 = pnand %p5529_p6, %p5523_p3 }
  0x11   :  { %5533 = shalt.err (!%p5530_p7)
}
  0x12   :  { %s5630_s21 = smov 512   ;;  %s5631_s22 = smov 32  }
  0x13   :  { %42 = dma.hbm_to_vmem [thread:$0]  %s6723_s2, 8192, %s37_s10, [#allocation7], %s5630_s21, %s5630_s21, %s5631_s22  }
  0x14   :  { %s5534_s27 = scalar_lea.hbm %s6726_s5, 8192 }
  0x15   :  { %p5535_p8 = scmp.ne.s32.totalorder %s6726_s5, %s5534_s27  ;;  %p5538_p9 = scmp.lt.u32.totalorder %s5534_s27, %s6726_s5 }
  0x17   :  { %p5540_p10 = pnand %p5538_p9, %p5535_p8 }
  0x19   :  { %5543 = shalt.err (!%p5540_p10)
}
  0x1a   :  { %s5544_s13 = scalar_lea.vmem %s5690_s12, 8192  ;;  %p5549_p12 = scmp.lt.s32.totalorder %s5690_s12, %s5690_s12 }
  0x1b   :  { %p5545_p11 = scmp.ne.s32.totalorder %s5690_s12, %s5544_s13  ;;  %p5550_p13 = scmp.lt.s32.totalorder %s5544_s13, %s5544_s13 }
  0x1d   :  { %p5551_p0 = por %p5550_p13, %p5549_p12 }
  0x1f   :  { %p5552_p1 = pnand %p5551_p0, %p5545_p11 }
  0x21   :  { %5555 = shalt.err (!%p5552_p1)
}
  0x22   :  { %68 = dma.hbm_to_vmem [thread:$0]  %s6726_s5, 8192, %s5690_s12, [#allocation10], %s5630_s21, %s5630_s21, %s5631_s22  }
  0x23   :  { %s5632_s14 = smov [#allocation4]   ;;  %s5633_s16 = smov [#allocation8]  }
  0x24   :  { %s24_s15 = sshll.u32 %s5632_s14, 4  ;;  %s50_s17 = sshll.u32 %s5633_s16, 4  ;;  %s25_s15 = int_to_ptr.vmem [resolvable:$true] %s24_s15  ;;  %s5727_s17 = int_to_ptr.vmem [resolvable:$true] %s50_s17 }
  0x25   :  { %s5556_s20 = scalar_lea.hbm %s6722_s1, 8192 }
  0x26   :  { %p5557_p2 = scmp.ne.s32.totalorder %s6722_s1, %s5556_s20  ;;  %p5560_p3 = scmp.lt.u32.totalorder %s5556_s20, %s6722_s1 }
  0x28   :  { %p5562_p4 = pnand %p5560_p3, %p5557_p2 }
  0x2a   :  { %5565 = shalt.err (!%p5562_p4)
}
  0x2b   :  { %s5566_s5 = scalar_lea.vmem %s25_s15, 8192  ;;  %p5571_p6 = scmp.lt.s32.totalorder %s25_s15, %s25_s15 }
  0x2c   :  { %p5567_p5 = scmp.ne.s32.totalorder %s25_s15, %s5566_s5  ;;  %p5572_p7 = scmp.lt.s32.totalorder %s5566_s5, %s5566_s5 }
  0x2e   :  { %p5573_p8 = por %p5572_p7, %p5571_p6 }
  0x30   :  { %p5574_p9 = pnand %p5573_p8, %p5567_p5 }
  0x32   :  { %5577 = shalt.err (!%p5574_p9)
}
  0x33   :  { %30 = dma.hbm_to_vmem [thread:$0]  %s6722_s1, 8192, %s25_s15, [#allocation5], %s5630_s21, %s5630_s21, %s5631_s22  }
  0x34   :  { %s5578_s30 = scalar_lea.hbm %s6725_s4, 8192 }
  0x35   :  { %p5579_p10 = scmp.ne.s32.totalorder %s6725_s4, %s5578_s30  ;;  %p5582_p11 = scmp.lt.u32.totalorder %s5578_s30, %s6725_s4 }
  0x37   :  { %p5584_p12 = pnand %p5582_p11, %p5579_p10 }
  0x39   :  { %5587 = shalt.err (!%p5584_p12)
}
  0x3a   :  { %s5588_s14 = scalar_lea.vmem %s5727_s17, 8192  ;;  %p5593_p0 = scmp.lt.s32.totalorder %s5727_s17, %s5727_s17 }
  0x3b   :  { %p5589_p13 = scmp.ne.s32.totalorder %s5727_s17, %s5588_s14  ;;  %p5594_p1 = scmp.lt.s32.totalorder %s5588_s14, %s5588_s14 }
  0x3d   :  { %p5595_p2 = por %p5594_p1, %p5593_p0 }
  0x3f   :  { %p5596_p3 = pnand %p5595_p2, %p5589_p13 }
  0x41   :  { %5599 = shalt.err (!%p5596_p3)
}
  0x42   :  { %56 = dma.hbm_to_vmem [thread:$0]  %s6725_s4, 8192, %s5727_s17, [#allocation7], %s5630_s21, %s5630_s21, %s5631_s22  }
  0x43   :  { %s5634_s16 = smov [#allocation11]   ;;  %s5600_s23 = scalar_lea.hbm %s6728_s7, 2048 }
  0x44   :  { %s76_s18 = sshll.u32 %s5634_s16, 4  ;;  %p5601_p4 = scmp.ne.s32.totalorder %s6728_s7, %s5600_s23  ;;  %s77_s18 = int_to_ptr.vmem [resolvable:$true] %s76_s18 }
  0x45   :  { %p5604_p5 = scmp.lt.u32.totalorder %s5600_s23, %s6728_s7 }
  0x47   :  { %p5606_p6 = pnand %p5604_p5, %p5601_p4 }
  0x49   :  { %5609 = shalt.err (!%p5606_p6)
}
  0x4a   :  { %s5610_s12 = scalar_lea.vmem %s77_s18, 2048  ;;  %p5615_p8 = scmp.lt.s32.totalorder %s77_s18, %s77_s18 }
  0x4b   :  { %p5611_p7 = scmp.ne.s32.totalorder %s77_s18, %s5610_s12  ;;  %p5616_p9 = scmp.lt.s32.totalorder %s5610_s12, %s5610_s12 }
  0x4d   :  { %p5617_p10 = por %p5616_p9, %p5615_p8 }
  0x4f   :  { %p5618_p11 = pnand %p5617_p10, %p5611_p7 }
  0x51   :  { %5621 = shalt.err (!%p5618_p11)
}
  0x52   :  { %s5635_s4 = smov 128   ;;  %s5636_s21 = smov 8  }
  0x53   :  { %82 = dma.hbm_to_vmem [thread:$0]  %s6728_s7, 2048, %s77_s18, [#allocation10], %s5635_s4, %s5635_s4, %s5636_s21  }
  0x54   :  { %5622 = dma.done.wait [#allocation5], 8192  }
  0x55   :  { %5623 = vsyncadd [#allocation5], 4294959104 }
  0x56   :  { %5624 = dma.done.wait [#allocation7], 16384  }
  0x57   :  { %5625 = vsyncadd [#allocation7], 4294950912 }
  0x58   :  { %5626 = dma.done.wait [#allocation10], 10240  }
  0x59   :  { %5627 = vsyncadd [#allocation10], 4294957056  ;;  %v5637_v0 = vmov 0.0   ;;  %v109_v1 = vld [vmem:[#allocation4 + $0x8] sm:$0xff]  ;;  %v111_v3 = vld [vmem:[#allocation4 + $0x18] sm:$0xff]  ;;  %vm5639_vm0 = vmmov 0  }
  0x5a   :  { %258 = vmatprep.mubr.f32.mxu0 %v5637_v0  ;;  %371 = vmatprep.mubr.f32.mxu1 %v5637_v0  ;;  %v113_v2 = vld [vmem:[#allocation4 + $0x28] sm:$0xff]  ;;  %v115_v5 = vld [vmem:[#allocation4 + $0x38] sm:$0xff]  ;;  %v108_v6 = vld [vmem:[#allocation4] sm:$0xff] }
  0x5b   :  { %v3940_v4 = vpack.c.bf16 %v113_v2, %v109_v1  ;;  %v112_v7 = vld [vmem:[#allocation4 + $0x20] sm:$0xff]  ;;  %v3972_v8 = vpack.c.bf16 %v115_v5, %v111_v3  ;;  %v110_v10 = vld [vmem:[#allocation4 + $0x10] sm:$0xff]  ;;  %v117_v12 = vld [vmem:[#allocation4 + $0x48] sm:$0xff] }
  0x5c   :  { %v3942_v9 = vpack.c.bf16 %v112_v7, %v108_v6  ;;  %v114_v11 = vld [vmem:[#allocation4 + $0x30] sm:$0xff]  ;;  %v121_v14 = vld [vmem:[#allocation4 + $0x68] sm:$0xff]  ;;  %v119_v15 = vld [vmem:[#allocation4 + $0x58] sm:$0xff] }
  0x5d   :  { %3941 = vmatprep.subr.bf16.mxu0 %v3940_v4  ;;  %v3974_v13 = vpack.c.bf16 %v114_v11, %v110_v10  ;;  %v123_v16 = vld [vmem:[#allocation4 + $0x78] sm:$0xff]  ;;  %3973 = vmatprep.subr.bf16.mxu1 %v3972_v8  ;;  %v3944_v17 = vpack.c.bf16 %v121_v14, %v117_v12  ;;  %v116_v19 = vld [vmem:[#allocation4 + $0x40] sm:$0xff]  ;;  %v118_v21 = vld [vmem:[#allocation4 + $0x50] sm:$0xff] }
  0x5e   :  { %3943 = vmatpush1.bf16.msra.mxu0 %v3942_v9  ;;  %v3976_v18 = vpack.c.bf16 %v123_v16, %v119_v15  ;;  %v120_v20 = vld [vmem:[#allocation4 + $0x60] sm:$0xff]  ;;  %v122_v23 = vld [vmem:[#allocation4 + $0x70] sm:$0xff]  ;;  %v125_v24 = vld [vmem:[#allocation4 + $0x88] sm:$0xff] }
  0x5f   :  { %3975 = vmatpush1.bf16.msra.mxu1 %v3974_v13  ;;  %v3946_v22 = vpack.c.bf16 %v120_v20, %v116_v19  ;;  %v129_v25 = vld [vmem:[#allocation4 + $0xa8] sm:$0xff]  ;;  %3945 = vmatprep.subr.bf16.mxu0 %v3944_v17  ;;  %v3978_v26 = vpack.c.bf16 %v122_v23, %v118_v21  ;;  %v127_v28 = vld [vmem:[#allocation4 + $0x98] sm:$0xff]  ;;  %v124_v30 = vld [vmem:[#allocation4 + $0x80] sm:$0xff] }
  0x60   :  { %3977 = vmatprep.subr.bf16.mxu1 %v3976_v18  ;;  %v3948_v27 = vpack.c.bf16 %v129_v25, %v125_v24  ;;  %v131_v29 = vld [vmem:[#allocation4 + $0xb8] sm:$0xff]  ;;  %v128_v32 = vld [vmem:[#allocation4 + $0xa0] sm:$0xff]  ;;  %v126_v33 = vld [vmem:[#allocation4 + $0x90] sm:$0xff] }
  0x61   :  { %v3980_v31 = vpack.c.bf16 %v131_v29, %v127_v28  ;;  %v130_v34 = vld [vmem:[#allocation4 + $0xb0] sm:$0xff]  ;;  %v3950_v35 = vpack.c.bf16 %v128_v32, %v124_v30  ;;  %v133_v36 = vld [vmem:[#allocation4 + $0xc8] sm:$0xff]  ;;  %v135_v38 = vld [vmem:[#allocation4 + $0xd8] sm:$0xff] }
  0x62   :  { %3947 = vmatpush1.bf16.msra.mxu0 %v3946_v22  ;;  %v137_v37 = vld [vmem:[#allocation4 + $0xe8] sm:$0xff]  ;;  %v3982_v39 = vpack.c.bf16 %v130_v34, %v126_v33  ;;  %v139_v41 = vld [vmem:[#allocation4 + $0xf8] sm:$0xff]  ;;  %v132_v42 = vld [vmem:[#allocation4 + $0xc0] sm:$0xff] }
  0x63   :  { %3979 = vmatpush1.bf16.msra.mxu1 %v3978_v26  ;;  %3949 = vmatprep.subr.bf16.mxu0 %v3948_v27  ;;  %v3952_v40 = vpack.c.bf16 %v137_v37, %v133_v36  ;;  %v136_v43 = vld [vmem:[#allocation4 + $0xe0] sm:$0xff]  ;;  %v3984_v44 = vpack.c.bf16 %v139_v41, %v135_v38  ;;  %v134_v45 = vld [vmem:[#allocation4 + $0xd0] sm:$0xff]  ;;  %v141_v47 = vld [vmem:[#allocation4 + $0x108] sm:$0xff] }
  0x64   :  { %3981 = vmatprep.subr.bf16.mxu1 %v3980_v31  ;;  %v138_v46 = vld [vmem:[#allocation4 + $0xf0] sm:$0xff]  ;;  %v145_v48 = vld [vmem:[#allocation4 + $0x128] sm:$0xff]  ;;  %v143_v49 = vld [vmem:[#allocation4 + $0x118] sm:$0xff]  ;;  %v3954_v51 = vpack.c.bf16 %v136_v43, %v132_v42 }
  0x65   :  { %v147_v50 = vld [vmem:[#allocation4 + $0x138] sm:$0xff]  ;;  %v3986_v52 = vpack.c.bf16 %v138_v46, %v134_v45  ;;  %v3956_v53 = vpack.c.bf16 %v145_v48, %v141_v47  ;;  %v140_v54 = vld [vmem:[#allocation4 + $0x100] sm:$0xff]  ;;  %v142_v56 = vld [vmem:[#allocation4 + $0x110] sm:$0xff] }
  0x66   :  { %3951 = vmatpush1.bf16.msra.mxu0 %v3950_v35  ;;  %v144_v55 = vld [vmem:[#allocation4 + $0x120] sm:$0xff]  ;;  %v3988_v57 = vpack.c.bf16 %v147_v50, %v143_v49  ;;  %v146_v58 = vld [vmem:[#allocation4 + $0x130] sm:$0xff]  ;;  %v149_v59 = vld [vmem:[#allocation4 + $0x148] sm:$0xff] }
  0x67   :  { %3983 = vmatpush1.bf16.msra.mxu1 %v3982_v39  ;;  %3953 = vmatprep.subr.bf16.mxu0 %v3952_v40  ;;  %v153_v60 = vld [vmem:[#allocation4 + $0x168] sm:$0xff]  ;;  %v151_v61 = vld [vmem:[#allocation4 + $0x158] sm:$0xff]  ;;  %v3958_v63 = vpack.c.bf16 %v144_v55, %v140_v54  ;;  %v3990_v1 = vpack.c.bf16 %v146_v58, %v142_v56  ;;  %v148_v3 = vld [vmem:[#allocation4 + $0x140] sm:$0xff] }
  0x68   :  { %3985 = vmatprep.subr.bf16.mxu1 %v3984_v44  ;;  %v155_v62 = vld [vmem:[#allocation4 + $0x178] sm:$0xff]  ;;  %v3960_v2 = vpack.c.bf16 %v153_v60, %v149_v59  ;;  %v152_v4 = vld [vmem:[#allocation4 + $0x160] sm:$0xff]  ;;  %v150_v5 = vld [vmem:[#allocation4 + $0x150] sm:$0xff] }
  0x69   :  { %v3992_v6 = vpack.c.bf16 %v155_v62, %v151_v61  ;;  %v154_v7 = vld [vmem:[#allocation4 + $0x170] sm:$0xff]  ;;  %v157_v8 = vld [vmem:[#allocation4 + $0x188] sm:$0xff]  ;;  %v159_v10 = vld [vmem:[#allocation4 + $0x198] sm:$0xff]  ;;  %v3962_v12 = vpack.c.bf16 %v152_v4, %v148_v3 }
  0x6a   :  { %3955 = vmatpush1.bf16.msra.mxu0 %v3954_v51  ;;  %v161_v9 = vld [vmem:[#allocation4 + $0x1a8] sm:$0xff]  ;;  %v163_v11 = vld [vmem:[#allocation4 + $0x1b8] sm:$0xff]  ;;  %v3994_v13 = vpack.c.bf16 %v154_v7, %v150_v5  ;;  %v156_v15 = vld [vmem:[#allocation4 + $0x180] sm:$0xff] }
  0x6b   :  { %3987 = vmatpush1.bf16.msra.mxu1 %v3986_v52  ;;  %3957 = vmatprep.subr.bf16.mxu0 %v3956_v53  ;;  %v3964_v14 = vpack.c.bf16 %v161_v9, %v157_v8  ;;  %v160_v16 = vld [vmem:[#allocation4 + $0x1a0] sm:$0xff]  ;;  %v158_v17 = vld [vmem:[#allocation4 + $0x190] sm:$0xff]  ;;  %v3996_v18 = vpack.c.bf16 %v163_v11, %v159_v10  ;;  %v165_v20 = vld [vmem:[#allocation4 + $0x1c8] sm:$0xff] }
  0x6c   :  { %3989 = vmatprep.subr.bf16.mxu1 %v3988_v57  ;;  %v162_v19 = vld [vmem:[#allocation4 + $0x1b0] sm:$0xff]  ;;  %v169_v21 = vld [vmem:[#allocation4 + $0x1e8] sm:$0xff]  ;;  %v167_v22 = vld [vmem:[#allocation4 + $0x1d8] sm:$0xff]  ;;  %v3966_v24 = vpack.c.bf16 %v160_v16, %v156_v15 }
  0x6d   :  { %v171_v23 = vld [vmem:[#allocation4 + $0x1f8] sm:$0xff]  ;;  %v3998_v25 = vpack.c.bf16 %v162_v19, %v158_v17  ;;  %v3968_v26 = vpack.c.bf16 %v169_v21, %v165_v20  ;;  %v164_v27 = vld [vmem:[#allocation4 + $0x1c0] sm:$0xff]  ;;  %v166_v29 = vld [vmem:[#allocation4 + $0x1d0] sm:$0xff] }
  0x6e   :  { %3959 = vmatpush1.bf16.msra.mxu0 %v3958_v63  ;;  %v168_v28 = vld [vmem:[#allocation4 + $0x1e0] sm:$0xff]  ;;  %v4000_v30 = vpack.c.bf16 %v171_v23, %v167_v22  ;;  %v170_v31 = vld [vmem:[#allocation4 + $0x1f0] sm:$0xff]  ;;  %v453_v32 = vld [vmem:[#allocation6 + $0x8] sm:$0xff] }
  0x6f   :  { %3991 = vmatpush1.bf16.msra.mxu1 %v3990_v1  ;;  %3961 = vmatprep.subr.bf16.mxu0 %v3960_v2  ;;  %v457_v33 = vld [vmem:[#allocation6 + $0x28] sm:$0xff]  ;;  %v455_v34 = vld [vmem:[#allocation6 + $0x18] sm:$0xff]  ;;  %v3970_v36 = vpack.c.bf16 %v168_v28, %v164_v27  ;;  %v4002_v37 = vpack.c.bf16 %v170_v31, %v166_v29  ;;  %v452_v39 = vld [vmem:[#allocation6] sm:$0xff] }
  0x70   :  { %3993 = vmatprep.subr.bf16.mxu1 %v3992_v6  ;;  %v459_v35 = vld [vmem:[#allocation6 + $0x38] sm:$0xff]  ;;  %v5778_v38 = vpack.c.bf16 %v457_v33, %v453_v32  ;;  %v456_v40 = vld [vmem:[#allocation6 + $0x20] sm:$0xff]  ;;  %v454_v42 = vld [vmem:[#allocation6 + $0x10] sm:$0xff] }
  0x71   :  { %v5780_v41 = vpack.c.bf16 %v459_v35, %v455_v34  ;;  %v458_v43 = vld [vmem:[#allocation6 + $0x30] sm:$0xff]  ;;  %v461_v44 = vld [vmem:[#allocation6 + $0x48] sm:$0xff]  ;;  %v5785_v47 = vpack.c.bf16 %v456_v40, %v452_v39  ;;  %v463_v48 = vld [vmem:[#allocation6 + $0x58] sm:$0xff] }
  0x72   :  { %3963 = vmatpush1.bf16.msra.mxu0 %v3962_v12  ;;  %v465_v45 = vld [vmem:[#allocation6 + $0x68] sm:$0xff]  ;;  %v100_v46 = vld [vmem:[%s6721_s0] sm:$0xff]  ;;  %v467_v49 = vld [vmem:[#allocation6 + $0x78] sm:$0xff]  ;;  %v5788_v50 = vpack.c.bf16 %v458_v43, %v454_v42 }
  0x73   :  { %3995 = vmatpush1.bf16.msra.mxu1 %v3994_v13  ;;  %3965 = vmatprep.subr.bf16.mxu0 %v3964_v14  ;;  %v460_v51 = vld [vmem:[#allocation6 + $0x40] sm:$0xff]  ;;  %v5791_v53 = vpack.c.bf16 %v465_v45, %v461_v44  ;;  %v462_v54 = vld [vmem:[#allocation6 + $0x50] sm:$0xff]  ;;  %v5793_v56 = vpack.c.bf16 %v467_v49, %v463_v48  ;;  %v469_v57 = vld [vmem:[#allocation6 + $0x88] sm:$0xff] }
  0x74   :  { %3997 = vmatprep.subr.bf16.mxu1 %v3996_v18  ;;  %v464_v52 = vld [vmem:[#allocation6 + $0x60] sm:$0xff]  ;;  %v466_v55 = vld [vmem:[#allocation6 + $0x70] sm:$0xff]  ;;  %v473_v58 = vld [vmem:[#allocation6 + $0xa8] sm:$0xff] }
  0x75   :  { %v101_v59 = vld [vmem:[%s6721_s0 + $0x8] sm:$0xff]  ;;  %v5799_v60 = vpack.c.bf16 %v464_v52, %v460_v51  ;;  %v5803_v63 = vpack.c.bf16 %v466_v55, %v462_v54  ;;  %v468_v1 = vld [vmem:[#allocation6 + $0x80] sm:$0xff]  ;;  %v5807_v3 = vpack.c.bf16 %v473_v58, %v469_v57  ;;  %v470_v4 = vld [vmem:[#allocation6 + $0x90] sm:$0xff] }
  0x76   :  { %3967 = vmatpush1.bf16.msra.mxu0 %v3966_v24  ;;  %v471_v61 = vld [vmem:[#allocation6 + $0x98] sm:$0xff]  ;;  %v472_v2 = vld [vmem:[#allocation6 + $0xa0] sm:$0xff]  ;;  %v474_v5 = vld [vmem:[#allocation6 + $0xb0] sm:$0xff] }
  0x77   :  { %3999 = vmatpush1.bf16.msra.mxu1 %v3998_v25  ;;  %3969 = vmatprep.subr.bf16.mxu0 %v3968_v26  ;;  %v475_v62 = vld [vmem:[#allocation6 + $0xb8] sm:$0xff]  ;;  %v477_v7 = vld [vmem:[#allocation6 + $0xc8] sm:$0xff]  ;;  %v102_v9 = vld [vmem:[%s6721_s0 + $0x10] sm:$0xff]  ;;  %v5816_v10 = vpack.c.bf16 %v472_v2, %v468_v1  ;;  %v5820_v13 = vpack.c.bf16 %v474_v5, %v470_v4 }
  0x78   :  { %4001 = vmatprep.subr.bf16.mxu1 %v4000_v30  ;;  %v5810_v6 = vpack.c.bf16 %v475_v62, %v471_v61  ;;  %v481_v8 = vld [vmem:[#allocation6 + $0xe8] sm:$0xff]  ;;  %v479_v11 = vld [vmem:[#allocation6 + $0xd8] sm:$0xff]  ;;  %v476_v14 = vld [vmem:[#allocation6 + $0xc0] sm:$0xff] }
  0x79   :  { %v483_v12 = vld [vmem:[#allocation6 + $0xf8] sm:$0xff]  ;;  %v480_v15 = vld [vmem:[#allocation6 + $0xe0] sm:$0xff]  ;;  %v5824_v16 = vpack.c.bf16 %v481_v8, %v477_v7  ;;  %v478_v17 = vld [vmem:[#allocation6 + $0xd0] sm:$0xff] }
  0x7a   :  { %3971 = vmatpush1.bf16.msra.mxu0 %v3970_v36  ;;  %v482_v18 = vld [vmem:[#allocation6 + $0xf0] sm:$0xff]  ;;  %v5827_v19 = vpack.c.bf16 %v483_v12, %v479_v11  ;;  %v485_v20 = vld [vmem:[#allocation6 + $0x108] sm:$0xff]  ;;  %v5833_v23 = vpack.c.bf16 %v480_v15, %v476_v14  ;;  %v487_v24 = vld [vmem:[#allocation6 + $0x118] sm:$0xff] }
  0x7b   :  { %4003 = vmatpush1.bf16.msra.mxu1 %v4002_v37  ;;  %4005 = vmatprep.subr.bf16.mxu0 %v5778_v38  ;;  %v489_v21 = vld [vmem:[#allocation6 + $0x128] sm:$0xff]  ;;  %v491_v25 = vld [vmem:[#allocation6 + $0x138] sm:$0xff]  ;;  %v5837_v26 = vpack.c.bf16 %v482_v18, %v478_v17  ;;  %v484_v27 = vld [vmem:[#allocation6 + $0x100] sm:$0xff] }
  0x7c   :  { %4037 = vmatprep.subr.bf16.mxu1 %v5780_v41  ;;  %v103_v22 = vld [vmem:[%s6721_s0 + $0x18] sm:$0xff]  ;;  %v488_v28 = vld [vmem:[#allocation6 + $0x120] sm:$0xff]  ;;  %v5841_v29 = vpack.c.bf16 %v489_v21, %v485_v20  ;;  %v486_v30 = vld [vmem:[#allocation6 + $0x110] sm:$0xff]  ;;  %v5844_v32 = vpack.c.bf16 %v491_v25, %v487_v24 }
  0x7d   :  { %259 = vmatmul.mubr.f32.vlgmr.msra.gmra.mrb[0].mxu0 %v100_v46  ;;  %v490_v31 = vld [vmem:[#allocation6 + $0x130] sm:$0xff]  ;;  %v493_v33 = vld [vmem:[#allocation6 + $0x148] sm:$0xff]  ;;  %v5850_v36 = vpack.c.bf16 %v488_v28, %v484_v27  ;;  %v495_v37 = vld [vmem:[#allocation6 + $0x158] sm:$0xff]  ;;  %v174_v28 = vlaneseq }
  0x7e   :  { %372 = vmatmul.mubr.f32.vlgmr.msra.gmra.mrb[0].mxu1 %v100_v46  ;;  %4007 = vmatpush1.bf16.msra.mxu0 %v5785_v47  ;;  %v497_v34 = vld [vmem:[#allocation6 + $0x168] sm:$0xff]  ;;  %v104_v35 = vld [vmem:[%s6721_s0 + $0x20] sm:$0xff]  ;;  %v499_v39 = vld [vmem:[#allocation6 + $0x178] sm:$0xff]  ;;  %v5854_v40 = vpack.c.bf16 %v490_v31, %v486_v30 }
  0x7f   :  { %4039 = vmatpush1.bf16.msra.mxu1 %v5788_v50  ;;  %264 = vmatprep.mubr.f32.mxu0 %v5637_v0  ;;  %v492_v42 = vld [vmem:[#allocation6 + $0x140] sm:$0xff]  ;;  %v5858_v44 = vpack.c.bf16 %v497_v34, %v493_v33  ;;  %v494_v45 = vld [vmem:[#allocation6 + $0x150] sm:$0xff]  ;;  %v5861_v48 = vpack.c.bf16 %v499_v39, %v495_v37  ;;  %v501_v49 = vld [vmem:[#allocation6 + $0x188] sm:$0xff]  ;;  %v5952_v30 = vshrl.u32 %v174_v28, 7 }
  0x80   :  { %377 = vmatprep.mubr.f32.mxu1 %v5637_v0  ;;  %4009 = vmatprep.subr.bf16.mxu0 %v5791_v53  ;;  %v496_v43 = vld [vmem:[#allocation6 + $0x160] sm:$0xff]  ;;  %v498_v46 = vld [vmem:[#allocation6 + $0x170] sm:$0xff]  ;;  %v505_v51 = vld [vmem:[#allocation6 + $0x1a8] sm:$0xff] }
  0x81   :  { %265 = vmatmul.mubr.f32.gmra.mrb[2].mxu0 %v101_v59  ;;  %4041 = vmatprep.subr.bf16.mxu1 %v5793_v56  ;;  %v105_v52 = vld [vmem:[%s6721_s0 + $0x28] sm:$0xff]  ;;  %v5867_v54 = vpack.c.bf16 %v496_v43, %v492_v42  ;;  %v5871_v58 = vpack.c.bf16 %v498_v46, %v494_v45  ;;  %v504_v61 = vld [vmem:[#allocation6 + $0x1a0] sm:$0xff]  ;;  %v5875_v62 = vpack.c.bf16 %v505_v51, %v501_v49  ;;  %v502_v1 = vld [vmem:[#allocation6 + $0x190] sm:$0xff]  ;;  %v176_v31 = vsub.s32 0, %v5952_v30 }
  0x82   :  { %378 = vmatmul.mubr.f32.gmra.mrb[2].mxu1 %v101_v59  ;;  %4011 = vmatpush1.bf16.msra.mxu0 %v5799_v60  ;;  %v503_v55 = vld [vmem:[#allocation6 + $0x198] sm:$0xff]  ;;  %v500_v59 = vld [vmem:[#allocation6 + $0x180] sm:$0xff]  ;;  %v506_v2 = vld [vmem:[#allocation6 + $0x1b0] sm:$0xff]  ;;  %v180_v34 = vsub.s32 1, %v5952_v30  ;;  %v188_v42 = vsub.s32 3, %v5952_v30 }
  0x83   :  { %4043 = vmatpush1.bf16.msra.mxu1 %v5803_v63  ;;  %270 = vmatprep.mubr.f32.mxu0 %v5637_v0  ;;  %v507_v57 = vld [vmem:[#allocation6 + $0x1b8] sm:$0xff]  ;;  %v509_v5 = vld [vmem:[#allocation6 + $0x1c8] sm:$0xff]  ;;  %v106_v8 = vld [vmem:[%s6721_s0 + $0x30] sm:$0xff]  ;;  %v5888_v14 = vpack.c.bf16 %v506_v2, %v502_v1 }
  0x84   :  { %383 = vmatprep.mubr.f32.mxu1 %v5637_v0  ;;  %4013 = vmatprep.subr.bf16.mxu0 %v5807_v3  ;;  %v5878_v4 = vpack.c.bf16 %v507_v57, %v503_v55  ;;  %v513_v7 = vld [vmem:[#allocation6 + $0x1e8] sm:$0xff]  ;;  %v511_v11 = vld [vmem:[#allocation6 + $0x1d8] sm:$0xff]  ;;  %v508_v15 = vld [vmem:[#allocation6 + $0x1c0] sm:$0xff] }
  0x85   :  { %271 = vmatmul.mubr.f32.gmra.mrb[4].mxu0 %v102_v9  ;;  %4045 = vmatprep.subr.bf16.mxu1 %v5810_v6  ;;  %v515_v12 = vld [vmem:[#allocation6 + $0x1f8] sm:$0xff]  ;;  %v512_v17 = vld [vmem:[#allocation6 + $0x1e0] sm:$0xff]  ;;  %v5892_v18 = vpack.c.bf16 %v513_v7, %v509_v5  ;;  %v510_v20 = vld [vmem:[#allocation6 + $0x1d0] sm:$0xff] }
  0x86   :  { %384 = vmatmul.mubr.f32.gmra.mrb[4].mxu1 %v102_v9  ;;  %4015 = vmatpush1.bf16.msra.mxu0 %v5816_v10  ;;  %v5884_v9 = vpack.c.bf16 %v504_v61, %v500_v59  ;;  %v514_v21 = vld [vmem:[#allocation6 + $0x1f0] sm:$0xff]  ;;  %v107_v24 = vld [vmem:[%s6721_s0 + $0x38] sm:$0xff]  ;;  %v5901_v25 = vpack.c.bf16 %v512_v17, %v508_v15  ;;  %v184_v59 = vsub.s32 2, %v5952_v30 }
  0x87   :  { %4047 = vmatpush1.bf16.msra.mxu1 %v5820_v13  ;;  %276 = vmatprep.mubr.f32.mxu0 %v5637_v0  ;;  %v5905_v27 = vpack.c.bf16 %v514_v21, %v510_v20  ;;  %v172_v33 = vld [vmem:[%s6724_s3] sm:$0xf] }
  0x88   :  { %389 = vmatprep.mubr.f32.mxu1 %v5637_v0  ;;  %4017 = vmatprep.subr.bf16.mxu0 %v5824_v16  ;;  %v5965_v37 = vrot.slane %v172_v33, %v180_v34  ;;  %v5972_v57 = vrot.slane %v172_v33, %v188_v42  ;;  %v5978_v1 = vrot.slane %v172_v33, %v184_v59 }
  0x89   :  { %277 = vmatmul.mubr.f32.gmra.mrb[6].mxu0 %v103_v22  ;;  %4049 = vmatprep.subr.bf16.mxu1 %v5827_v19 }
  0x8a   :  { %390 = vmatmul.mubr.f32.gmra.mrb[6].mxu1 %v103_v22  ;;  %4019 = vmatpush1.bf16.msra.mxu0 %v5833_v23  ;;  %v5895_v22 = vpack.c.bf16 %v515_v12, %v511_v11 }
  0x8b   :  { %4051 = vmatpush1.bf16.msra.mxu1 %v5837_v26  ;;  %282 = vmatprep.mubr.f32.mxu0 %v5637_v0 }
  0x8c   :  { %395 = vmatprep.mubr.f32.mxu1 %v5637_v0  ;;  %4021 = vmatprep.subr.bf16.mxu0 %v5841_v29 }
  0x8d   :  { %283 = vmatmul.mubr.f32.gmra.mrb[8].mxu0 %v104_v35  ;;  %4053 = vmatprep.subr.bf16.mxu1 %v5844_v32 }
  0x8e   :  { %396 = vmatmul.mubr.f32.gmra.mrb[8].mxu1 %v104_v35  ;;  %4023 = vmatpush1.bf16.msra.mxu0 %v5850_v36  ;;  %v5961_v35 = vrot.slane %v172_v33, %v176_v31 }
  0x8f   :  { %4055 = vmatpush1.bf16.msra.mxu1 %v5854_v40  ;;  %288 = vmatprep.mubr.f32.mxu0 %v5637_v0 }
  0x90   :  { %401 = vmatprep.mubr.f32.mxu1 %v5637_v0  ;;  %4025 = vmatprep.subr.bf16.mxu0 %v5858_v44 }
  0x91   :  { %289 = vmatmul.mubr.f32.gmra.mrb[10].mxu0 %v105_v52  ;;  %4057 = vmatprep.subr.bf16.mxu1 %v5861_v48 }
  0x92   :  { %402 = vmatmul.mubr.f32.gmra.mrb[10].mxu1 %v105_v52  ;;  %4027 = vmatpush1.bf16.msra.mxu0 %v5867_v54 }
  0x93   :  { %4059 = vmatpush1.bf16.msra.mxu1 %v5871_v58  ;;  %294 = vmatprep.mubr.f32.mxu0 %v5637_v0 }
  0x94   :  { %407 = vmatprep.mubr.f32.mxu1 %v5637_v0  ;;  %4029 = vmatprep.subr.bf16.mxu0 %v5875_v62 }
  0x95   :  { %295 = vmatmul.mubr.f32.gmra.mrb[12].mxu0 %v106_v8  ;;  %4061 = vmatprep.subr.bf16.mxu1 %v5878_v4 }
  0x96   :  { %408 = vmatmul.mubr.f32.gmra.mrb[12].mxu1 %v106_v8  ;;  %4031 = vmatpush1.bf16.msra.mxu0 %v5884_v9 }
  0x97   :  { %4063 = vmatpush1.bf16.msra.mxu1 %v5888_v14  ;;  %300 = vmatprep.mubr.f32.mxu0 %v5637_v0 }
  0x98   :  { %413 = vmatprep.mubr.f32.mxu1 %v5637_v0  ;;  %4033 = vmatprep.subr.bf16.mxu0 %v5892_v18 }
  0x99   :  { %301 = vmatmul.mubr.f32.gmra.mrb[14].mxu0 %v107_v24  ;;  %4065 = vmatprep.subr.bf16.mxu1 %v5895_v22 }
  0x9a   :  { %414 = vmatmul.mubr.f32.gmra.mrb[14].mxu1 %v107_v24  ;;  %4035 = vmatpush1.bf16.msra.mxu0 %v5901_v25 }
  0x9b   :  { %4067 = vmatpush1.bf16.msra.mxu1 %v5905_v27  ;;  %584 = vmatprep.mubr.f32.mxu0 %v5637_v0 }
  0x9c   :  { %655 = vmatprep.mubr.f32.mxu1 %v5637_v0  ;;  %4069 = vmatprep.subr.bf16.mxu0 %v5778_v38 }
  0x9d   :  { %585 = vmatmul.mubr.f32.vlgmr.msra.gmra.mrb[0].mxu0 %v5637_v0  ;;  %4101 = vmatprep.subr.bf16.mxu1 %v5780_v41 }
  0x9e   :  { %656 = vmatmul.mubr.f32.vlgmr.msra.gmra.mrb[0].mxu1 %v5637_v0  ;;  %4071 = vmatpush1.bf16.msra.mxu0 %v5785_v47 }
  0x9f   :  { %4103 = vmatpush1.bf16.msra.mxu1 %v5788_v50  ;;  %4073 = vmatprep.subr.bf16.mxu0 %v5791_v53 }
  0xa0   :  { %4105 = vmatprep.subr.bf16.mxu1 %v5793_v56  ;;  %760 = vmatprep.mubr.f32.mxu0 %v5637_v0 }
  0xa1   :  { %831 = vmatprep.mubr.f32.mxu1 %v5637_v0 }
  0xa2   :  { %4075 = vmatpush1.bf16.msra.mxu0 %v5799_v60 }
  0xa3   :  { %4107 = vmatpush1.bf16.msra.mxu1 %v5803_v63  ;;  %4077 = vmatprep.subr.bf16.mxu0 %v5807_v3 }
  0xa4   :  { %4109 = vmatprep.subr.bf16.mxu1 %v5810_v6 }
  0xa6   :  { %4079 = vmatpush1.bf16.msra.mxu0 %v5816_v10 }
  0xa7   :  { %4111 = vmatpush1.bf16.msra.mxu1 %v5820_v13  ;;  %4081 = vmatprep.subr.bf16.mxu0 %v5824_v16 }
  0xa8   :  { %4113 = vmatprep.subr.bf16.mxu1 %v5827_v19 }
  0xaa   :  { %4083 = vmatpush1.bf16.msra.mxu0 %v5833_v23 }
  0xab   :  { %4115 = vmatpush1.bf16.msra.mxu1 %v5837_v26  ;;  %4085 = vmatprep.subr.bf16.mxu0 %v5841_v29 }
  0xac   :  { %4117 = vmatprep.subr.bf16.mxu1 %v5844_v32 }
  0xae   :  { %4087 = vmatpush1.bf16.msra.mxu0 %v5850_v36 }
  0xaf   :  { %4119 = vmatpush1.bf16.msra.mxu1 %v5854_v40  ;;  %4089 = vmatprep.subr.bf16.mxu0 %v5858_v44 }
  0xb0   :  { %4121 = vmatprep.subr.bf16.mxu1 %v5861_v48 }
  0xb2   :  { %4091 = vmatpush1.bf16.msra.mxu0 %v5867_v54 }
  0xb3   :  { %4123 = vmatpush1.bf16.msra.mxu1 %v5871_v58  ;;  %4093 = vmatprep.subr.bf16.mxu0 %v5875_v62 }
  0xb4   :  { %4125 = vmatprep.subr.bf16.mxu1 %v5878_v4 }
  0xb6   :  { %4095 = vmatpush1.bf16.msra.mxu0 %v5884_v9 }
  0xb7   :  { %4127 = vmatpush1.bf16.msra.mxu1 %v5888_v14  ;;  %4097 = vmatprep.subr.bf16.mxu0 %v5892_v18 }
  0xb8   :  { %4129 = vmatprep.subr.bf16.mxu1 %v5895_v22 }
  0xba   :  { %4099 = vmatpush1.bf16.msra.mxu0 %v5901_v25 }
  0xbb   :  { %4131 = vmatpush1.bf16.msra.mxu1 %v5905_v27  ;;  %4133 = vmatprep.subr.bf16.mxu0 %v5778_v38 }
  0xbc   :  { %4165 = vmatprep.subr.bf16.mxu1 %v5780_v41 }
 0x170   :  { %v586_v39 = vpop.f32.mrb[0].mxu0 }
 0x171   :  { %v5116_v43 = vadd.f32 %v586_v39, %v5961_v35  ;;  %v657_v45 = vpop.f32.mrb[0].mxu1  ;;  %v588_v46 = vpop.f32.mrb[1].mxu0 }
 0x172   :  { %v5117_v49 = vadd.f32 %v588_v46, %v5965_v37  ;;  %v659_v51 = vpop.f32.mrb[1].mxu1  ;;  %v5132_v5 = vadd.f32 %v657_v45, %v5978_v1 }
 0x173   :  { %v3839_v52 = vmul.f32 -1.442695, %v5116_v43  ;;  %v5133_v61 = vadd.f32 %v659_v51, %v5972_v57 }
 0x174   :  { %v3840_v55 = vmul.f32 -1.442695, %v5117_v49 }
 0x175   :  { %5256 = vpow2.f32 %v3839_v52  ;;  %v3841_v2 = vmul.f32 -1.442695, %v5133_v61 }
 0x176   :  { %5258 = vpow2.f32 %v3840_v55 }
 0x177   :  { %5260 = vpow2.f32 %v3841_v2 }
 0x178   :  { %5262 = vtanh.f32 %v5132_v5 }
 0x17f   :  { %v5257_v7 = vpop.eup %5256 }
 0x180   :  { %v5259_v8 = vpop.eup %5258  ;;  %v669_v11 = vadd.f32 1.0, %v5257_v7 }
 0x181   :  { %v675_v12 = vadd.f32 1.0, %v5259_v8  ;;  %v5261_v15 = vpop.eup %5260 }
 0x182   :  { %5264 = vrcp.f32 %v669_v11  ;;  %v5263_v17 = vpop.eup %5262  ;;  %v682_v28 = vadd.f32 1.0, %v5261_v15 }
 0x183   :  { %5266 = vrcp.f32 %v675_v12 }
 0x184   :  { %5268 = vrcp.f32 %v682_v28 }
 0x18c   :  { %v5265_v20 = vpop.eup %5264 }
 0x18d   :  { %v5267_v21 = vpop.eup %5266  ;;  %v686_v24 = vmul.f32 %v5265_v20, %v5263_v17 }
 0x18e   :  { %v685_v39 = vmul.f32 0.0, %v5267_v21  ;;  %v5269_v43 = vpop.eup %5268 }
 0x190   :  { %v5981_v33 = vadd.f32 %v686_v24, %v685_v39 }
 0x192   :  { %5270 = vtanh.f32 %v5981_v33 }
 0x19c   :  { %v5271_v45 = vpop.eup %5270 }
 0x19d   :  { %v5984_v46 = vmul.f32 %v5271_v45, %v5269_v43 }
 0x19f   :  { %761 = vmatmul.mubr.f32.vlgmr.msra.gmra.mrb[2].mxu0 %v5984_v46  ;;  %832 = vmatmul.mubr.f32.vlgmr.msra.gmra.mrb[2].mxu1 %v5984_v46 }
 0x1a0   :  { %4135 = vmatpush1.bf16.msra.mxu0 %v5785_v47  ;;  %4167 = vmatpush1.bf16.msra.mxu1 %v5788_v50 }
 0x1a1   :  { %4137 = vmatprep.subr.bf16.mxu0 %v5791_v53  ;;  %4169 = vmatprep.subr.bf16.mxu1 %v5793_v56 }
 0x1a2   :  { %937 = vmatprep.mubr.f32.mxu0 %v5637_v0  ;;  %1008 = vmatprep.mubr.f32.mxu1 %v5637_v0 }
 0x1a4   :  { %4139 = vmatpush1.bf16.msra.mxu0 %v5799_v60  ;;  %4171 = vmatpush1.bf16.msra.mxu1 %v5803_v63 }
 0x1a5   :  { %4141 = vmatprep.subr.bf16.mxu0 %v5807_v3  ;;  %4173 = vmatprep.subr.bf16.mxu1 %v5810_v6 }
 0x1a8   :  { %4143 = vmatpush1.bf16.msra.mxu0 %v5816_v10  ;;  %4175 = vmatpush1.bf16.msra.mxu1 %v5820_v13 }
 0x1a9   :  { %4145 = vmatprep.subr.bf16.mxu0 %v5824_v16  ;;  %4177 = vmatprep.subr.bf16.mxu1 %v5827_v19 }
 0x1ac   :  { %4147 = vmatpush1.bf16.msra.mxu0 %v5833_v23  ;;  %4179 = vmatpush1.bf16.msra.mxu1 %v5837_v26 }
 0x1ad   :  { %4149 = vmatprep.subr.bf16.mxu0 %v5841_v29  ;;  %4181 = vmatprep.subr.bf16.mxu1 %v5844_v32 }
 0x1b0   :  { %4151 = vmatpush1.bf16.msra.mxu0 %v5850_v36  ;;  %4183 = vmatpush1.bf16.msra.mxu1 %v5854_v40 }
 0x1b1   :  { %4153 = vmatprep.subr.bf16.mxu0 %v5858_v44  ;;  %4185 = vmatprep.subr.bf16.mxu1 %v5861_v48 }
 0x1b4   :  { %4155 = vmatpush1.bf16.msra.mxu0 %v5867_v54  ;;  %4187 = vmatpush1.bf16.msra.mxu1 %v5871_v58 }
 0x1b5   :  { %4157 = vmatprep.subr.bf16.mxu0 %v5875_v62  ;;  %4189 = vmatprep.subr.bf16.mxu1 %v5878_v4 }
 0x1b8   :  { %4159 = vmatpush1.bf16.msra.mxu0 %v5884_v9  ;;  %4191 = vmatpush1.bf16.msra.mxu1 %v5888_v14 }
 0x1b9   :  { %4161 = vmatprep.subr.bf16.mxu0 %v5892_v18  ;;  %4193 = vmatprep.subr.bf16.mxu1 %v5895_v22 }
 0x1bc   :  { %4163 = vmatpush1.bf16.msra.mxu0 %v5901_v25  ;;  %4195 = vmatpush1.bf16.msra.mxu1 %v5905_v27 }
 0x1bd   :  { %4197 = vmatprep.subr.bf16.mxu0 %v5778_v38  ;;  %4229 = vmatprep.subr.bf16.mxu1 %v5780_v41 }
 0x272   :  { %v762_v49 = vpop.f32.mrb[2].mxu0  ;;  %v833_v51 = vpop.f32.mrb[2].mxu1 }
 0x273   :  { %v5118_v52 = vadd.f32 %v762_v49, %v5961_v35  ;;  %v764_v55 = vpop.f32.mrb[3].mxu0  ;;  %v835_v61 = vpop.f32.mrb[3].mxu1  ;;  %v5134_v12 = vadd.f32 %v833_v51, %v5978_v1 }
 0x274   :  { %v5119_v2 = vadd.f32 %v764_v55, %v5965_v37  ;;  %v5135_v8 = vadd.f32 %v835_v61, %v5972_v57 }
 0x275   :  { %v3842_v5 = vmul.f32 -1.442695, %v5118_v52 }
 0x276   :  { %v3843_v7 = vmul.f32 -1.442695, %v5119_v2  ;;  %v3844_v11 = vmul.f32 -1.442695, %v5135_v8 }
 0x277   :  { %5272 = vpow2.f32 %v3842_v5 }
 0x278   :  { %5274 = vpow2.f32 %v3843_v7 }
 0x279   :  { %5276 = vpow2.f32 %v3844_v11 }
 0x27a   :  { %5278 = vtanh.f32 %v5134_v12 }
 0x281   :  { %v5273_v15 = vpop.eup %5272 }
 0x282   :  { %v5275_v17 = vpop.eup %5274  ;;  %v845_v20 = vadd.f32 1.0, %v5273_v15 }
 0x283   :  { %v851_v21 = vadd.f32 1.0, %v5275_v17  ;;  %v5277_v24 = vpop.eup %5276 }
 0x284   :  { %5280 = vrcp.f32 %v845_v20  ;;  %v5279_v28 = vpop.eup %5278  ;;  %v858_v49 = vadd.f32 1.0, %v5277_v24 }
 0x285   :  { %5282 = vrcp.f32 %v851_v21 }
 0x286   :  { %5284 = vrcp.f32 %v858_v49 }
 0x28e   :  { %v5281_v39 = vpop.eup %5280 }
 0x28f   :  { %v5283_v43 = vpop.eup %5282  ;;  %v862_v45 = vmul.f32 %v5281_v39, %v5279_v28 }
 0x290   :  { %v861_v52 = vmul.f32 %v5283_v43, %v5981_v33  ;;  %v5285_v51 = vpop.eup %5284 }
 0x292   :  { %v6027_v55 = vadd.f32 %v862_v45, %v861_v52 }
 0x294   :  { %5286 = vtanh.f32 %v6027_v55 }
 0x29e   :  { %v5287_v61 = vpop.eup %5286 }
 0x29f   :  { %v6030_v2 = vmul.f32 %v5287_v61, %v5285_v51 }
 0x2a1   :  { %938 = vmatmul.mubr.f32.vlgmr.msra.gmra.mrb[4].mxu0 %v6030_v2  ;;  %1009 = vmatmul.mubr.f32.vlgmr.msra.gmra.mrb[4].mxu1 %v6030_v2 }
 0x2a2   :  { %4199 = vmatpush1.bf16.msra.mxu0 %v5785_v47  ;;  %4231 = vmatpush1.bf16.msra.mxu1 %v5788_v50 }
 0x2a3   :  { %4201 = vmatprep.subr.bf16.mxu0 %v5791_v53  ;;  %4233 = vmatprep.subr.bf16.mxu1 %v5793_v56 }
 0x2a4   :  { %1114 = vmatprep.mubr.f32.mxu0 %v5637_v0  ;;  %1185 = vmatprep.mubr.f32.mxu1 %v5637_v0 }
 0x2a6   :  { %4203 = vmatpush1.bf16.msra.mxu0 %v5799_v60  ;;  %4235 = vmatpush1.bf16.msra.mxu1 %v5803_v63 }
 0x2a7   :  { %4205 = vmatprep.subr.bf16.mxu0 %v5807_v3  ;;  %4237 = vmatprep.subr.bf16.mxu1 %v5810_v6 }
 0x2aa   :  { %4207 = vmatpush1.bf16.msra.mxu0 %v5816_v10  ;;  %4239 = vmatpush1.bf16.msra.mxu1 %v5820_v13 }
 0x2ab   :  { %4209 = vmatprep.subr.bf16.mxu0 %v5824_v16  ;;  %4241 = vmatprep.subr.bf16.mxu1 %v5827_v19 }
 0x2ae   :  { %4211 = vmatpush1.bf16.msra.mxu0 %v5833_v23  ;;  %4243 = vmatpush1.bf16.msra.mxu1 %v5837_v26 }
 0x2af   :  { %4213 = vmatprep.subr.bf16.mxu0 %v5841_v29  ;;  %4245 = vmatprep.subr.bf16.mxu1 %v5844_v32 }
 0x2b2   :  { %4215 = vmatpush1.bf16.msra.mxu0 %v5850_v36  ;;  %4247 = vmatpush1.bf16.msra.mxu1 %v5854_v40 }
 0x2b3   :  { %4217 = vmatprep.subr.bf16.mxu0 %v5858_v44  ;;  %4249 = vmatprep.subr.bf16.mxu1 %v5861_v48 }
 0x2b6   :  { %4219 = vmatpush1.bf16.msra.mxu0 %v5867_v54  ;;  %4251 = vmatpush1.bf16.msra.mxu1 %v5871_v58 }
 0x2b7   :  { %4221 = vmatprep.subr.bf16.mxu0 %v5875_v62  ;;  %4253 = vmatprep.subr.bf16.mxu1 %v5878_v4 }
 0x2ba   :  { %4223 = vmatpush1.bf16.msra.mxu0 %v5884_v9  ;;  %4255 = vmatpush1.bf16.msra.mxu1 %v5888_v14 }
 0x2bb   :  { %4225 = vmatprep.subr.bf16.mxu0 %v5892_v18  ;;  %4257 = vmatprep.subr.bf16.mxu1 %v5895_v22 }
 0x2be   :  { %4227 = vmatpush1.bf16.msra.mxu0 %v5901_v25  ;;  %4259 = vmatpush1.bf16.msra.mxu1 %v5905_v27 }
 0x2bf   :  { %4261 = vmatprep.subr.bf16.mxu0 %v5778_v38  ;;  %4293 = vmatprep.subr.bf16.mxu1 %v5780_v41 }
 0x374   :  { %v939_v33 = vpop.f32.mrb[4].mxu0  ;;  %v1010_v5 = vpop.f32.mrb[4].mxu1 }
 0x375   :  { %v5120_v7 = vadd.f32 %v939_v33, %v5961_v35  ;;  %v941_v8 = vpop.f32.mrb[5].mxu0  ;;  %v1012_v11 = vpop.f32.mrb[5].mxu1  ;;  %v5136_v24 = vadd.f32 %v1010_v5, %v5978_v1 }
 0x376   :  { %v5121_v12 = vadd.f32 %v941_v8, %v5965_v37  ;;  %v5137_v20 = vadd.f32 %v1012_v11, %v5972_v57 }
 0x377   :  { %v3845_v15 = vmul.f32 -1.442695, %v5120_v7 }
 0x378   :  { %v3846_v17 = vmul.f32 -1.442695, %v5121_v12  ;;  %v3847_v21 = vmul.f32 -1.442695, %v5137_v20 }
 0x379   :  { %5288 = vpow2.f32 %v3845_v15 }
 0x37a   :  { %5290 = vpow2.f32 %v3846_v17 }
 0x37b   :  { %5292 = vpow2.f32 %v3847_v21 }
 0x37c   :  { %5294 = vtanh.f32 %v5136_v24 }
 0x383   :  { %v5289_v28 = vpop.eup %5288 }
 0x384   :  { %v5291_v39 = vpop.eup %5290  ;;  %v1022_v43 = vadd.f32 1.0, %v5289_v28 }
 0x385   :  { %v1028_v45 = vadd.f32 1.0, %v5291_v39  ;;  %v5293_v49 = vpop.eup %5292 }
 0x386   :  { %5296 = vrcp.f32 %v1022_v43  ;;  %v5295_v52 = vpop.eup %5294  ;;  %v1035_v7 = vadd.f32 1.0, %v5293_v49 }
 0x387   :  { %5298 = vrcp.f32 %v1028_v45 }
 0x388   :  { %5300 = vrcp.f32 %v1035_v7 }
 0x390   :  { %v5297_v51 = vpop.eup %5296 }
 0x391   :  { %v5299_v61 = vpop.eup %5298  ;;  %v1039_v33 = vmul.f32 %v5297_v51, %v5295_v52 }
 0x392   :  { %v1038_v8 = vmul.f32 %v5299_v61, %v6027_v55  ;;  %v5301_v5 = vpop.eup %5300 }
 0x394   :  { %v6073_v11 = vadd.f32 %v1039_v33, %v1038_v8 }
 0x396   :  { %5302 = vtanh.f32 %v6073_v11 }
 0x3a0   :  { %v5303_v12 = vpop.eup %5302 }
 0x3a1   :  { %v6076_v15 = vmul.f32 %v5303_v12, %v5301_v5 }
 0x3a3   :  { %1115 = vmatmul.mubr.f32.vlgmr.msra.gmra.mrb[6].mxu0 %v6076_v15  ;;  %1186 = vmatmul.mubr.f32.vlgmr.msra.gmra.mrb[6].mxu1 %v6076_v15 }
 0x3a4   :  { %4263 = vmatpush1.bf16.msra.mxu0 %v5785_v47  ;;  %4295 = vmatpush1.bf16.msra.mxu1 %v5788_v50 }
 0x3a5   :  { %4265 = vmatprep.subr.bf16.mxu0 %v5791_v53  ;;  %4297 = vmatprep.subr.bf16.mxu1 %v5793_v56 }
 0x3a6   :  { %1291 = vmatprep.mubr.f32.mxu0 %v5637_v0  ;;  %1362 = vmatprep.mubr.f32.mxu1 %v5637_v0 }
 0x3a8   :  { %4267 = vmatpush1.bf16.msra.mxu0 %v5799_v60  ;;  %4299 = vmatpush1.bf16.msra.mxu1 %v5803_v63 }
 0x3a9   :  { %4269 = vmatprep.subr.bf16.mxu0 %v5807_v3  ;;  %4301 = vmatprep.subr.bf16.mxu1 %v5810_v6 }
 0x3ac   :  { %4271 = vmatpush1.bf16.msra.mxu0 %v5816_v10  ;;  %4303 = vmatpush1.bf16.msra.mxu1 %v5820_v13 }
 0x3ad   :  { %4273 = vmatprep.subr.bf16.mxu0 %v5824_v16  ;;  %4305 = vmatprep.subr.bf16.mxu1 %v5827_v19 }
 0x3b0   :  { %4275 = vmatpush1.bf16.msra.mxu0 %v5833_v23  ;;  %4307 = vmatpush1.bf16.msra.mxu1 %v5837_v26 }
 0x3b1   :  { %4277 = vmatprep.subr.bf16.mxu0 %v5841_v29  ;;  %4309 = vmatprep.subr.bf16.mxu1 %v5844_v32 }
 0x3b4   :  { %4279 = vmatpush1.bf16.msra.mxu0 %v5850_v36  ;;  %4311 = vmatpush1.bf16.msra.mxu1 %v5854_v40 }
 0x3b5   :  { %4281 = vmatprep.subr.bf16.mxu0 %v5858_v44  ;;  %4313 = vmatprep.subr.bf16.mxu1 %v5861_v48 }
 0x3b8   :  { %4283 = vmatpush1.bf16.msra.mxu0 %v5867_v54  ;;  %4315 = vmatpush1.bf16.msra.mxu1 %v5871_v58 }
 0x3b9   :  { %4285 = vmatprep.subr.bf16.mxu0 %v5875_v62  ;;  %4317 = vmatprep.subr.bf16.mxu1 %v5878_v4 }
 0x3bc   :  { %4287 = vmatpush1.bf16.msra.mxu0 %v5884_v9  ;;  %4319 = vmatpush1.bf16.msra.mxu1 %v5888_v14 }
 0x3bd   :  { %4289 = vmatprep.subr.bf16.mxu0 %v5892_v18  ;;  %4321 = vmatprep.subr.bf16.mxu1 %v5895_v22 }
 0x3c0   :  { %4291 = vmatpush1.bf16.msra.mxu0 %v5901_v25  ;;  %4323 = vmatpush1.bf16.msra.mxu1 %v5905_v27 }
 0x3c1   :  { %4325 = vmatprep.subr.bf16.mxu0 %v5778_v38  ;;  %4357 = vmatprep.subr.bf16.mxu1 %v5780_v41 }
 0x476   :  { %v1116_v55 = vpop.f32.mrb[6].mxu0  ;;  %v1187_v17 = vpop.f32.mrb[6].mxu1 }
 0x477   :  { %v5122_v20 = vadd.f32 %v1116_v55, %v5961_v35  ;;  %v1118_v21 = vpop.f32.mrb[7].mxu0  ;;  %v1189_v24 = vpop.f32.mrb[7].mxu1  ;;  %v5138_v52 = vadd.f32 %v1187_v17, %v5978_v1 }
 0x478   :  { %v5123_v28 = vadd.f32 %v1118_v21, %v5965_v37  ;;  %v5139_v45 = vadd.f32 %v1189_v24, %v5972_v57 }
 0x479   :  { %v3848_v39 = vmul.f32 -1.442695, %v5122_v20 }
 0x47a   :  { %v3849_v43 = vmul.f32 -1.442695, %v5123_v28  ;;  %v3850_v49 = vmul.f32 -1.442695, %v5139_v45 }
 0x47b   :  { %5304 = vpow2.f32 %v3848_v39 }
 0x47c   :  { %5306 = vpow2.f32 %v3849_v43 }
 0x47d   :  { %5308 = vpow2.f32 %v3850_v49 }
 0x47e   :  { %5310 = vtanh.f32 %v5138_v52 }
 0x485   :  { %v5305_v51 = vpop.eup %5304 }
 0x486   :  { %v5307_v61 = vpop.eup %5306  ;;  %v1199_v33 = vadd.f32 1.0, %v5305_v51 }
 0x487   :  { %v1205_v7 = vadd.f32 1.0, %v5307_v61  ;;  %v5309_v8 = vpop.eup %5308 }
 0x488   :  { %5312 = vrcp.f32 %v1199_v33  ;;  %v5311_v5 = vpop.eup %5310  ;;  %v1212_v21 = vadd.f32 1.0, %v5309_v8 }
 0x489   :  { %5314 = vrcp.f32 %v1205_v7 }
 0x48a   :  { %5316 = vrcp.f32 %v1212_v21 }
 0x492   :  { %v5313_v12 = vpop.eup %5312 }
 0x493   :  { %v5315_v55 = vpop.eup %5314  ;;  %v1216_v20 = vmul.f32 %v5313_v12, %v5311_v5 }
 0x494   :  { %v1215_v28 = vmul.f32 %v5315_v55, %v6073_v11  ;;  %v5317_v17 = vpop.eup %5316 }
 0x496   :  { %v6119_v24 = vadd.f32 %v1216_v20, %v1215_v28 }
 0x498   :  { %5318 = vtanh.f32 %v6119_v24 }
 0x4a2   :  { %v5319_v39 = vpop.eup %5318 }
 0x4a3   :  { %v6122_v43 = vmul.f32 %v5319_v39, %v5317_v17 }
 0x4a5   :  { %1292 = vmatmul.mubr.f32.vlgmr.msra.gmra.mrb[8].mxu0 %v6122_v43  ;;  %1363 = vmatmul.mubr.f32.vlgmr.msra.gmra.mrb[8].mxu1 %v6122_v43 }
 0x4a6   :  { %4327 = vmatpush1.bf16.msra.mxu0 %v5785_v47  ;;  %4359 = vmatpush1.bf16.msra.mxu1 %v5788_v50 }
 0x4a7   :  { %4329 = vmatprep.subr.bf16.mxu0 %v5791_v53  ;;  %4361 = vmatprep.subr.bf16.mxu1 %v5793_v56 }
 0x4a8   :  { %1468 = vmatprep.mubr.f32.mxu0 %v5637_v0  ;;  %1539 = vmatprep.mubr.f32.mxu1 %v5637_v0 }
 0x4aa   :  { %4331 = vmatpush1.bf16.msra.mxu0 %v5799_v60  ;;  %4363 = vmatpush1.bf16.msra.mxu1 %v5803_v63 }
 0x4ab   :  { %4333 = vmatprep.subr.bf16.mxu0 %v5807_v3  ;;  %4365 = vmatprep.subr.bf16.mxu1 %v5810_v6 }
 0x4ae   :  { %4335 = vmatpush1.bf16.msra.mxu0 %v5816_v10  ;;  %4367 = vmatpush1.bf16.msra.mxu1 %v5820_v13 }
 0x4af   :  { %4337 = vmatprep.subr.bf16.mxu0 %v5824_v16  ;;  %4369 = vmatprep.subr.bf16.mxu1 %v5827_v19 }
 0x4b2   :  { %4339 = vmatpush1.bf16.msra.mxu0 %v5833_v23  ;;  %4371 = vmatpush1.bf16.msra.mxu1 %v5837_v26 }
 0x4b3   :  { %4341 = vmatprep.subr.bf16.mxu0 %v5841_v29  ;;  %4373 = vmatprep.subr.bf16.mxu1 %v5844_v32 }
 0x4b6   :  { %4343 = vmatpush1.bf16.msra.mxu0 %v5850_v36  ;;  %4375 = vmatpush1.bf16.msra.mxu1 %v5854_v40 }
 0x4b7   :  { %4345 = vmatprep.subr.bf16.mxu0 %v5858_v44  ;;  %4377 = vmatprep.subr.bf16.mxu1 %v5861_v48 }
 0x4ba   :  { %4347 = vmatpush1.bf16.msra.mxu0 %v5867_v54  ;;  %4379 = vmatpush1.bf16.msra.mxu1 %v5871_v58 }
 0x4bb   :  { %4349 = vmatprep.subr.bf16.mxu0 %v5875_v62  ;;  %4381 = vmatprep.subr.bf16.mxu1 %v5878_v4 }
 0x4be   :  { %4351 = vmatpush1.bf16.msra.mxu0 %v5884_v9  ;;  %4383 = vmatpush1.bf16.msra.mxu1 %v5888_v14 }
 0x4bf   :  { %4353 = vmatprep.subr.bf16.mxu0 %v5892_v18  ;;  %4385 = vmatprep.subr.bf16.mxu1 %v5895_v22 }
 0x4c2   :  { %4355 = vmatpush1.bf16.msra.mxu0 %v5901_v25  ;;  %4387 = vmatpush1.bf16.msra.mxu1 %v5905_v27 }
 0x4c3   :  { %4389 = vmatprep.subr.bf16.mxu0 %v5778_v38  ;;  %4421 = vmatprep.subr.bf16.mxu1 %v5780_v41 }
 0x578   :  { %v1293_v11 = vpop.f32.mrb[8].mxu0  ;;  %v1364_v45 = vpop.f32.mrb[8].mxu1 }
 0x579   :  { %v5124_v49 = vadd.f32 %v1293_v11, %v5961_v35  ;;  %v1295_v52 = vpop.f32.mrb[9].mxu0  ;;  %v1366_v51 = vpop.f32.mrb[9].mxu1  ;;  %v5140_v12 = vadd.f32 %v1364_v45, %v5978_v1 }
 0x57a   :  { %v5125_v61 = vadd.f32 %v1295_v52, %v5965_v37  ;;  %v5141_v8 = vadd.f32 %v1366_v51, %v5972_v57 }
 0x57b   :  { %v3851_v33 = vmul.f32 -1.442695, %v5124_v49 }
 0x57c   :  { %v3852_v7 = vmul.f32 -1.442695, %v5125_v61  ;;  %v3853_v5 = vmul.f32 -1.442695, %v5141_v8 }
 0x57d   :  { %5320 = vpow2.f32 %v3851_v33 }
 0x57e   :  { %5322 = vpow2.f32 %v3852_v7 }
 0x57f   :  { %5324 = vpow2.f32 %v3853_v5 }
 0x580   :  { %5326 = vtanh.f32 %v5140_v12 }
 0x587   :  { %v5321_v55 = vpop.eup %5320 }
 0x588   :  { %v5323_v20 = vpop.eup %5322  ;;  %v1376_v21 = vadd.f32 1.0, %v5321_v55 }
 0x589   :  { %v1382_v28 = vadd.f32 1.0, %v5323_v20  ;;  %v5325_v17 = vpop.eup %5324 }
 0x58a   :  { %5328 = vrcp.f32 %v1376_v21  ;;  %v5327_v39 = vpop.eup %5326  ;;  %v1389_v61 = vadd.f32 1.0, %v5325_v17 }
 0x58b   :  { %5330 = vrcp.f32 %v1382_v28 }
 0x58c   :  { %5332 = vrcp.f32 %v1389_v61 }
 0x594   :  { %v5329_v11 = vpop.eup %5328 }
 0x595   :  { %v5331_v49 = vpop.eup %5330  ;;  %v1393_v52 = vmul.f32 %v5329_v11, %v5327_v39 }
 0x596   :  { %v1392_v33 = vmul.f32 %v5331_v49, %v6119_v24  ;;  %v5333_v45 = vpop.eup %5332 }
 0x598   :  { %v6165_v51 = vadd.f32 %v1393_v52, %v1392_v33 }
 0x59a   :  { %5334 = vtanh.f32 %v6165_v51 }
 0x5a4   :  { %v5335_v7 = vpop.eup %5334 }
 0x5a5   :  { %v6168_v8 = vmul.f32 %v5335_v7, %v5333_v45 }
 0x5a7   :  { %1469 = vmatmul.mubr.f32.vlgmr.msra.gmra.mrb[10].mxu0 %v6168_v8  ;;  %1540 = vmatmul.mubr.f32.vlgmr.msra.gmra.mrb[10].mxu1 %v6168_v8 }
 0x5a8   :  { %4391 = vmatpush1.bf16.msra.mxu0 %v5785_v47  ;;  %4423 = vmatpush1.bf16.msra.mxu1 %v5788_v50 }
 0x5a9   :  { %4393 = vmatprep.subr.bf16.mxu0 %v5791_v53  ;;  %4425 = vmatprep.subr.bf16.mxu1 %v5793_v56 }
 0x5aa   :  { %1645 = vmatprep.mubr.f32.mxu0 %v5637_v0  ;;  %1716 = vmatprep.mubr.f32.mxu1 %v5637_v0 }
 0x5ac   :  { %4395 = vmatpush1.bf16.msra.mxu0 %v5799_v60  ;;  %4427 = vmatpush1.bf16.msra.mxu1 %v5803_v63 }
 0x5ad   :  { %4397 = vmatprep.subr.bf16.mxu0 %v5807_v3  ;;  %4429 = vmatprep.subr.bf16.mxu1 %v5810_v6 }
 0x5b0   :  { %4399 = vmatpush1.bf16.msra.mxu0 %v5816_v10  ;;  %4431 = vmatpush1.bf16.msra.mxu1 %v5820_v13 }
 0x5b1   :  { %4401 = vmatprep.subr.bf16.mxu0 %v5824_v16  ;;  %4433 = vmatprep.subr.bf16.mxu1 %v5827_v19 }
 0x5b4   :  { %4403 = vmatpush1.bf16.msra.mxu0 %v5833_v23  ;;  %4435 = vmatpush1.bf16.msra.mxu1 %v5837_v26 }
 0x5b5   :  { %4405 = vmatprep.subr.bf16.mxu0 %v5841_v29  ;;  %4437 = vmatprep.subr.bf16.mxu1 %v5844_v32 }
 0x5b8   :  { %4407 = vmatpush1.bf16.msra.mxu0 %v5850_v36  ;;  %4439 = vmatpush1.bf16.msra.mxu1 %v5854_v40 }
 0x5b9   :  { %4409 = vmatprep.subr.bf16.mxu0 %v5858_v44  ;;  %4441 = vmatprep.subr.bf16.mxu1 %v5861_v48 }
 0x5bc   :  { %4411 = vmatpush1.bf16.msra.mxu0 %v5867_v54  ;;  %4443 = vmatpush1.bf16.msra.mxu1 %v5871_v58 }
 0x5bd   :  { %4413 = vmatprep.subr.bf16.mxu0 %v5875_v62  ;;  %4445 = vmatprep.subr.bf16.mxu1 %v5878_v4 }
 0x5c0   :  { %4415 = vmatpush1.bf16.msra.mxu0 %v5884_v9  ;;  %4447 = vmatpush1.bf16.msra.mxu1 %v5888_v14 }
 0x5c1   :  { %4417 = vmatprep.subr.bf16.mxu0 %v5892_v18  ;;  %4449 = vmatprep.subr.bf16.mxu1 %v5895_v22 }
 0x5c4   :  { %4419 = vmatpush1.bf16.msra.mxu0 %v5901_v25  ;;  %4451 = vmatpush1.bf16.msra.mxu1 %v5905_v27 }
 0x5c5   :  { %4453 = vmatprep.subr.bf16.mxu0 %v5778_v38  ;;  %4485 = vmatprep.subr.bf16.mxu1 %v5780_v41 }
 0x67a   :  { %v1470_v24 = vpop.f32.mrb[10].mxu0  ;;  %v1541_v5 = vpop.f32.mrb[10].mxu1 }
 0x67b   :  { %v5126_v12 = vadd.f32 %v1470_v24, %v5961_v35  ;;  %v1472_v55 = vpop.f32.mrb[11].mxu0  ;;  %v1543_v20 = vpop.f32.mrb[11].mxu1  ;;  %v5142_v49 = vadd.f32 %v1541_v5, %v5978_v1 }
 0x67c   :  { %v5127_v21 = vadd.f32 %v1472_v55, %v5965_v37  ;;  %v5143_v39 = vadd.f32 %v1543_v20, %v5972_v57 }
 0x67d   :  { %v3854_v28 = vmul.f32 -1.442695, %v5126_v12 }
 0x67e   :  { %v3855_v17 = vmul.f32 -1.442695, %v5127_v21  ;;  %v3856_v11 = vmul.f32 -1.442695, %v5143_v39  ;;  %v1940_v39 = vld [vmem:[#allocation8 + $0x10] sm:$0xff] }
 0x67f   :  { %5336 = vpow2.f32 %v3854_v28 }
 0x680   :  { %5338 = vpow2.f32 %v3855_v17 }
 0x681   :  { %5340 = vpow2.f32 %v3856_v11  ;;  %v1944_v11 = vld [vmem:[#allocation8 + $0x30] sm:$0xff] }
 0x682   :  { %5342 = vtanh.f32 %v5142_v49  ;;  %v1947_v49 = vld [vmem:[#allocation8 + $0x48] sm:$0xff] }
 0x689   :  { %v5337_v38 = vpop.eup %5336 }
 0x68a   :  { %v5339_v52 = vpop.eup %5338  ;;  %v1553_v41 = vadd.f32 1.0, %v5337_v38  ;;  %v1951_v38 = vld [vmem:[#allocation8 + $0x68] sm:$0xff] }
 0x68b   :  { %v1559_v61 = vadd.f32 1.0, %v5339_v52  ;;  %v5341_v33 = vpop.eup %5340  ;;  %v1949_v52 = vld [vmem:[#allocation8 + $0x58] sm:$0xff] }
 0x68c   :  { %5344 = vrcp.f32 %v1553_v41  ;;  %v5343_v45 = vpop.eup %5342  ;;  %v1566_v55 = vadd.f32 1.0, %v5341_v33  ;;  %v1953_v41 = vld [vmem:[#allocation8 + $0x78] sm:$0xff] }
 0x68d   :  { %5346 = vrcp.f32 %v1559_v61 }
 0x68e   :  { %5348 = vrcp.f32 %v1566_v55 }
 0x696   :  { %v5345_v7 = vpop.eup %5344 }
 0x697   :  { %v5347_v24 = vpop.eup %5346  ;;  %v1570_v12 = vmul.f32 %v5345_v7, %v5343_v45  ;;  %v4550_v7 = vpack.c.bf16 %v1944_v11, %v1940_v39  ;;  %v1970_v39 = vld [vmem:[#allocation8 + $0x100] sm:$0xff] }
 0x698   :  { %v1569_v21 = vmul.f32 %v5347_v24, %v6165_v51  ;;  %v5349_v5 = vpop.eup %5348  ;;  %v1942_v51 = vld [vmem:[#allocation8 + $0x20] sm:$0xff] }
 0x699   :  { %v1946_v24 = vld [vmem:[#allocation8 + $0x40] sm:$0xff] }
 0x69a   :  { %v6211_v20 = vadd.f32 %v1570_v12, %v1569_v21  ;;  %v1950_v12 = vld [vmem:[#allocation8 + $0x60] sm:$0xff]  ;;  %v4520_v21 = vpack.c.bf16 %v1951_v38, %v1947_v49 }
 0x69b   :  { %v1974_v11 = vld [vmem:[#allocation8 + $0x120] sm:$0xff] }
 0x69c   :  { %5350 = vtanh.f32 %v6211_v20 }
 0x6a6   :  { %v5351_v28 = vpop.eup %5350 }
 0x6a7   :  { %v6214_v17 = vmul.f32 %v5351_v28, %v5349_v5  ;;  %v1948_v5 = vld [vmem:[#allocation8 + $0x50] sm:$0xff] }
 0x6a8   :  { %v1952_v28 = vld [vmem:[#allocation8 + $0x70] sm:$0xff] }
 0x6a9   :  { %1646 = vmatmul.mubr.f32.vlgmr.msra.gmra.mrb[12].mxu0 %v6214_v17  ;;  %1717 = vmatmul.mubr.f32.vlgmr.msra.gmra.mrb[12].mxu1 %v6214_v17 }
 0x6aa   :  { %4455 = vmatpush1.bf16.msra.mxu0 %v5785_v47  ;;  %4487 = vmatpush1.bf16.msra.mxu1 %v5788_v50  ;;  %v1939_v47 = vld [vmem:[#allocation8 + $0x8] sm:$0xff] }
 0x6ab   :  { %4457 = vmatprep.subr.bf16.mxu0 %v5791_v53  ;;  %4489 = vmatprep.subr.bf16.mxu1 %v5793_v56  ;;  %v1943_v50 = vld [vmem:[#allocation8 + $0x28] sm:$0xff]  ;;  %v1941_v53 = vld [vmem:[#allocation8 + $0x18] sm:$0xff] }
 0x6ac   :  { %1822 = vmatprep.mubr.f32.mxu0 %v5637_v0  ;;  %1893 = vmatprep.mubr.f32.mxu1 %v5637_v0  ;;  %v4516_v56 = vpack.c.bf16 %v1943_v50, %v1939_v47  ;;  %v1955_v47 = vld [vmem:[#allocation8 + $0x88] sm:$0xff] }
 0x6ad   :  { %v1959_v50 = vld [vmem:[#allocation8 + $0xa8] sm:$0xff] }
 0x6ae   :  { %4459 = vmatpush1.bf16.msra.mxu0 %v5799_v60  ;;  %4491 = vmatpush1.bf16.msra.mxu1 %v5803_v63  ;;  %v1945_v60 = vld [vmem:[#allocation8 + $0x38] sm:$0xff] }
 0x6af   :  { %4461 = vmatprep.subr.bf16.mxu0 %v5807_v3  ;;  %4493 = vmatprep.subr.bf16.mxu1 %v5810_v6  ;;  %v4548_v63 = vpack.c.bf16 %v1945_v60, %v1941_v53  ;;  %v1957_v53 = vld [vmem:[#allocation8 + $0x98] sm:$0xff]  ;;  %v4522_v60 = vpack.c.bf16 %v1950_v12, %v1946_v24  ;;  %v4534_v24 = vpack.c.bf16 %v1974_v11, %v1970_v39  ;;  %v2284_v11 = vld [vmem:[#allocation9 + $0x10] sm:$0xff] }
 0x6b2   :  { %4463 = vmatpush1.bf16.msra.mxu0 %v5816_v10  ;;  %4495 = vmatpush1.bf16.msra.mxu1 %v5820_v13 }
 0x6b3   :  { %4465 = vmatprep.subr.bf16.mxu0 %v5824_v16  ;;  %4497 = vmatprep.subr.bf16.mxu1 %v5827_v19 }
 0x6b6   :  { %4467 = vmatpush1.bf16.msra.mxu0 %v5833_v23  ;;  %4499 = vmatpush1.bf16.msra.mxu1 %v5837_v26 }
 0x6b7   :  { %4469 = vmatprep.subr.bf16.mxu0 %v5841_v29  ;;  %4501 = vmatprep.subr.bf16.mxu1 %v5844_v32 }
 0x6ba   :  { %4471 = vmatpush1.bf16.msra.mxu0 %v5850_v36  ;;  %4503 = vmatpush1.bf16.msra.mxu1 %v5854_v40 }
 0x6bb   :  { %4473 = vmatprep.subr.bf16.mxu0 %v5858_v44  ;;  %4505 = vmatprep.subr.bf16.mxu1 %v5861_v48 }
 0x6be   :  { %4475 = vmatpush1.bf16.msra.mxu0 %v5867_v54  ;;  %4507 = vmatpush1.bf16.msra.mxu1 %v5871_v58 }
 0x6bf   :  { %4477 = vmatprep.subr.bf16.mxu0 %v5875_v62  ;;  %4509 = vmatprep.subr.bf16.mxu1 %v5878_v4 }
 0x6c2   :  { %4479 = vmatpush1.bf16.msra.mxu0 %v5884_v9  ;;  %4511 = vmatpush1.bf16.msra.mxu1 %v5888_v14 }
 0x6c3   :  { %4481 = vmatprep.subr.bf16.mxu0 %v5892_v18  ;;  %4513 = vmatprep.subr.bf16.mxu1 %v5895_v22 }
 0x6c6   :  { %4483 = vmatpush1.bf16.msra.mxu0 %v5901_v25  ;;  %4515 = vmatpush1.bf16.msra.mxu1 %v5905_v27  ;;  %v1938_v27 = vld [vmem:[#allocation8] sm:$0xff] }
 0x6c7   :  { %4517 = vmatprep.subr.bf16.mxu0 %v4516_v56  ;;  %4549 = vmatprep.subr.bf16.mxu1 %v4548_v63  ;;  %v4518_v45 = vpack.c.bf16 %v1942_v51, %v1938_v27  ;;  %v1961_v56 = vld [vmem:[#allocation8 + $0xb8] sm:$0xff]  ;;  %v4554_v63 = vpack.c.bf16 %v1952_v28, %v1948_v5 }
 0x77c   :  { %v1647_v3 = vpop.f32.mrb[12].mxu0  ;;  %v1718_v6 = vpop.f32.mrb[12].mxu1 }
 0x77d   :  { %v5128_v10 = vadd.f32 %v1647_v3, %v5961_v35  ;;  %v1649_v13 = vpop.f32.mrb[13].mxu0  ;;  %v1720_v16 = vpop.f32.mrb[13].mxu1  ;;  %v5144_v36 = vadd.f32 %v1718_v6, %v5978_v1  ;;  %v1954_v3 = vld [vmem:[#allocation8 + $0x80] sm:$0xff] }
 0x77e   :  { %v5129_v19 = vadd.f32 %v1649_v13, %v5965_v37  ;;  %v5145_v29 = vadd.f32 %v1720_v16, %v5972_v57  ;;  %v1958_v6 = vld [vmem:[#allocation8 + $0xa0] sm:$0xff]  ;;  %v4556_v13 = vpack.c.bf16 %v1961_v56, %v1957_v53  ;;  %v1956_v16 = vld [vmem:[#allocation8 + $0x90] sm:$0xff]  ;;  %v1987_v53 = vld [vmem:[#allocation8 + $0x188] sm:$0xff] }
 0x77f   :  { %v3857_v23 = vmul.f32 -1.442695, %v5128_v10  ;;  %v4524_v10 = vpack.c.bf16 %v1959_v50, %v1955_v47  ;;  %v1980_v47 = vld [vmem:[#allocation8 + $0x150] sm:$0xff]  ;;  %v1991_v56 = vld [vmem:[#allocation8 + $0x1a8] sm:$0xff] }
 0x780   :  { %v3858_v26 = vmul.f32 -1.442695, %v5129_v19  ;;  %v3859_v32 = vmul.f32 -1.442695, %v5145_v29  ;;  %v1960_v19 = vld [vmem:[#allocation8 + $0xb0] sm:$0xff]  ;;  %v1965_v29 = vld [vmem:[#allocation8 + $0xd8] sm:$0xff] }
 0x781   :  { %5352 = vpow2.f32 %v3857_v23  ;;  %v1963_v23 = vld [vmem:[#allocation8 + $0xc8] sm:$0xff]  ;;  %v1984_v50 = vld [vmem:[#allocation8 + $0x170] sm:$0xff] }
 0x782   :  { %5354 = vpow2.f32 %v3858_v26  ;;  %v1967_v26 = vld [vmem:[#allocation8 + $0xe8] sm:$0xff] }
 0x783   :  { %5356 = vpow2.f32 %v3859_v32  ;;  %v1969_v32 = vld [vmem:[#allocation8 + $0xf8] sm:$0xff] }
 0x784   :  { %5358 = vtanh.f32 %v5144_v36  ;;  %v4526_v36 = vpack.c.bf16 %v1958_v6, %v1954_v3  ;;  %v4570_v6 = vpack.c.bf16 %v1984_v50, %v1980_v47  ;;  %v2303_v47 = vld [vmem:[#allocation9 + $0xa8] sm:$0xff]  ;;  %v2301_v50 = vld [vmem:[#allocation9 + $0x98] sm:$0xff] }
 0x78b   :  { %v5353_v40 = vpop.eup %5352 }
 0x78c   :  { %v5355_v44 = vpop.eup %5354  ;;  %v1730_v48 = vadd.f32 1.0, %v5353_v40  ;;  %v4558_v40 = vpack.c.bf16 %v1960_v19, %v1956_v16  ;;  %v4540_v16 = vpack.c.bf16 %v1991_v56, %v1987_v53  ;;  %v2305_v56 = vld [vmem:[#allocation9 + $0xb8] sm:$0xff] }
 0x78d   :  { %v1736_v54 = vadd.f32 1.0, %v5355_v44  ;;  %v5357_v58 = vpop.eup %5356  ;;  %v1962_v44 = vld [vmem:[#allocation8 + $0xc0] sm:$0xff] }
 0x78e   :  { %5360 = vrcp.f32 %v1730_v48  ;;  %v5359_v62 = vpop.eup %5358  ;;  %v1743_v18 = vadd.f32 1.0, %v5357_v58  ;;  %v1966_v48 = vld [vmem:[#allocation8 + $0xe0] sm:$0xff]  ;;  %v4560_v58 = vpack.c.bf16 %v1969_v32, %v1965_v29  ;;  %v1995_v29 = vld [vmem:[#allocation8 + $0x1c8] sm:$0xff] }
 0x78f   :  { %5362 = vrcp.f32 %v1736_v54  ;;  %v4528_v54 = vpack.c.bf16 %v1967_v26, %v1963_v23  ;;  %v4530_v27 = vpack.c.bf16 %v1966_v48, %v1962_v44  ;;  %v1988_v23 = vld [vmem:[#allocation8 + $0x190] sm:$0xff]  ;;  %v1999_v32 = vld [vmem:[#allocation8 + $0x1e8] sm:$0xff] }
 0x790   :  { %5364 = vrcp.f32 %v1743_v18  ;;  %v1973_v18 = vld [vmem:[#allocation8 + $0x118] sm:$0xff]  ;;  %v1992_v26 = vld [vmem:[#allocation8 + $0x1b0] sm:$0xff] }
 0x791   :  { %v4574_v48 = vpack.c.bf16 %v1992_v26, %v1988_v23  ;;  %v2311_v23 = vld [vmem:[#allocation9 + $0xe8] sm:$0xff]  ;;  %v2309_v26 = vld [vmem:[#allocation9 + $0xd8] sm:$0xff] }
 0x798   :  { %v5361_v4 = vpop.eup %5360 }
 0x799   :  { %v5363_v9 = vpop.eup %5362  ;;  %v1747_v14 = vmul.f32 %v5361_v4, %v5359_v62  ;;  %v1964_v62 = vld [vmem:[#allocation8 + $0xd0] sm:$0xff] }
 0x79a   :  { %v1746_v22 = vmul.f32 %v5363_v9, %v6211_v20  ;;  %v5365_v61 = vpop.eup %5364  ;;  %v4552_v20 = vpack.c.bf16 %v1953_v41, %v1949_v52  ;;  %v1968_v4 = vld [vmem:[#allocation8 + $0xf0] sm:$0xff]  ;;  %v1971_v9 = vld [vmem:[#allocation8 + $0x108] sm:$0xff] }
 0x79b   :  { %v4562_v51 = vpack.c.bf16 %v1968_v4, %v1964_v62  ;;  %v1972_v52 = vld [vmem:[#allocation8 + $0x110] sm:$0xff]  ;;  %v1998_v4 = vld [vmem:[#allocation8 + $0x1e0] sm:$0xff] }
 0x79c   :  { %v6255_v25 = vadd.f32 %v1747_v14, %v1746_v22  ;;  %v1975_v14 = vld [vmem:[#allocation8 + $0x128] sm:$0xff]  ;;  %v1977_v22 = vld [vmem:[#allocation8 + $0x138] sm:$0xff]  ;;  %v1976_v41 = vld [vmem:[#allocation8 + $0x130] sm:$0xff] }
 0x79d   :  { %v4532_v49 = vpack.c.bf16 %v1975_v14, %v1971_v9  ;;  %v4564_v38 = vpack.c.bf16 %v1977_v22, %v1973_v18  ;;  %v4566_v12 = vpack.c.bf16 %v1976_v41, %v1972_v52  ;;  %v1996_v9 = vld [vmem:[#allocation8 + $0x1d0] sm:$0xff]  ;;  %v2295_v52 = vld [vmem:[#allocation9 + $0x68] sm:$0xff]  ;;  %v2293_v41 = vld [vmem:[#allocation9 + $0x58] sm:$0xff] }
 0x79e   :  { %5366 = vtanh.f32 %v6255_v25  ;;  %v2000_v14 = vld [vmem:[#allocation8 + $0x1f0] sm:$0xff] }
 0x79f   :  { %v4578_v22 = vpack.c.bf16 %v2000_v14, %v1996_v9  ;;  %v2319_v9 = vld [vmem:[#allocation9 + $0x128] sm:$0xff]  ;;  %v2317_v14 = vld [vmem:[#allocation9 + $0x118] sm:$0xff] }
 0x7a8   :  { %v5367_v33 = vpop.eup %5366 }
 0x7a9   :  { %v6258_v55 = vmul.f32 %v5367_v33, %v5365_v61  ;;  %v1979_v61 = vld [vmem:[#allocation8 + $0x148] sm:$0xff] }
 0x7aa   :  { %v1983_v33 = vld [vmem:[#allocation8 + $0x168] sm:$0xff] }
 0x7ab   :  { %1823 = vmatmul.mubr.f32.vlgmr.msra.gmra.mrb[14].mxu0 %v6258_v55  ;;  %1894 = vmatmul.mubr.f32.vlgmr.msra.gmra.mrb[14].mxu1 %v6258_v55  ;;  %v4536_v5 = vpack.c.bf16 %v1983_v33, %v1979_v61  ;;  %v2297_v33 = vld [vmem:[#allocation9 + $0x78] sm:$0xff] }
 0x7ac   :  { %4519 = vmatpush1.bf16.msra.mxu0 %v4518_v45  ;;  %4551 = vmatpush1.bf16.msra.mxu1 %v4550_v7  ;;  %v1981_v45 = vld [vmem:[#allocation8 + $0x158] sm:$0xff] }
 0x7ad   :  { %4521 = vmatprep.subr.bf16.mxu0 %v4520_v21  ;;  %4553 = vmatprep.subr.bf16.mxu1 %v4552_v20  ;;  %v1985_v7 = vld [vmem:[#allocation8 + $0x178] sm:$0xff]  ;;  %v1978_v21 = vld [vmem:[#allocation8 + $0x140] sm:$0xff] }
 0x7ae   :  { %2088 = vmatprep.mubr.f32.mxu0 %v5637_v0  ;;  %2201 = vmatprep.mubr.f32.mxu1 %v5637_v0  ;;  %v1982_v20 = vld [vmem:[#allocation8 + $0x160] sm:$0xff]  ;;  %v4568_v28 = vpack.c.bf16 %v1985_v7, %v1981_v45 }
 0x7af   :  { %v4538_v3 = vpack.c.bf16 %v1982_v20, %v1978_v21  ;;  %v2290_v45 = vld [vmem:[#allocation9 + $0x40] sm:$0xff]  ;;  %v2292_v21 = vld [vmem:[#allocation9 + $0x50] sm:$0xff] }
 0x7b0   :  { %4523 = vmatpush1.bf16.msra.mxu0 %v4522_v60  ;;  %4555 = vmatpush1.bf16.msra.mxu1 %v4554_v63  ;;  %v1989_v60 = vld [vmem:[#allocation8 + $0x198] sm:$0xff]  ;;  %v2294_v7 = vld [vmem:[#allocation9 + $0x60] sm:$0xff]  ;;  %v2296_v20 = vld [vmem:[#allocation9 + $0x70] sm:$0xff] }
 0x7b1   :  { %4525 = vmatprep.subr.bf16.mxu0 %v4524_v10  ;;  %4557 = vmatprep.subr.bf16.mxu1 %v4556_v13  ;;  %v1993_v63 = vld [vmem:[#allocation8 + $0x1b8] sm:$0xff]  ;;  %v1986_v10 = vld [vmem:[#allocation8 + $0x180] sm:$0xff] }
 0x7b2   :  { %v1990_v13 = vld [vmem:[#allocation8 + $0x1a0] sm:$0xff]  ;;  %v4572_v19 = vpack.c.bf16 %v1993_v63, %v1989_v60 }
 0x7b3   :  { %v4542_v44 = vpack.c.bf16 %v1990_v13, %v1986_v10  ;;  %v2298_v60 = vld [vmem:[#allocation9 + $0x80] sm:$0xff]  ;;  %v2300_v10 = vld [vmem:[#allocation9 + $0x90] sm:$0xff] }
 0x7b4   :  { %4527 = vmatpush1.bf16.msra.mxu0 %v4526_v36  ;;  %4559 = vmatpush1.bf16.msra.mxu1 %v4558_v40  ;;  %v1997_v36 = vld [vmem:[#allocation8 + $0x1d8] sm:$0xff]  ;;  %v2302_v63 = vld [vmem:[#allocation9 + $0xa0] sm:$0xff]  ;;  %v2304_v13 = vld [vmem:[#allocation9 + $0xb0] sm:$0xff] }
 0x7b5   :  { %4529 = vmatprep.subr.bf16.mxu0 %v4528_v54  ;;  %4561 = vmatprep.subr.bf16.mxu1 %v4560_v58  ;;  %v2001_v40 = vld [vmem:[#allocation8 + $0x1f8] sm:$0xff]  ;;  %v1994_v54 = vld [vmem:[#allocation8 + $0x1c0] sm:$0xff]  ;;  %v4544_v58 = vpack.c.bf16 %v1999_v32, %v1995_v29 }
 0x7b6   :  { %v4576_v62 = vpack.c.bf16 %v2001_v40, %v1997_v36  ;;  %v4546_v18 = vpack.c.bf16 %v1998_v4, %v1994_v54  ;;  %v2313_v32 = vld [vmem:[#allocation9 + $0xf8] sm:$0xff]  ;;  %v2306_v36 = vld [vmem:[#allocation9 + $0xc0] sm:$0xff]  ;;  %v2308_v54 = vld [vmem:[#allocation9 + $0xd0] sm:$0xff] }
 0x7b7   :  { %v2310_v40 = vld [vmem:[#allocation9 + $0xe0] sm:$0xff] }
 0x7b8   :  { %4531 = vmatpush1.bf16.msra.mxu0 %v4530_v27  ;;  %4563 = vmatpush1.bf16.msra.mxu1 %v4562_v51  ;;  %v2282_v27 = vld [vmem:[#allocation9] sm:$0xff] }
 0x7b9   :  { %4533 = vmatprep.subr.bf16.mxu0 %v4532_v49  ;;  %4565 = vmatprep.subr.bf16.mxu1 %v4564_v38  ;;  %v2288_v49 = vld [vmem:[#allocation9 + $0x30] sm:$0xff]  ;;  %v2291_v38 = vld [vmem:[#allocation9 + $0x48] sm:$0xff] }
 0x7ba   :  { %v6304_v61 = vpack.c.bf16 %v2295_v52, %v2291_v38 }
 0x7bc   :  { %4535 = vmatpush1.bf16.msra.mxu0 %v4534_v24  ;;  %4567 = vmatpush1.bf16.msra.mxu1 %v4566_v12  ;;  %v6306_v24 = vpack.c.bf16 %v2297_v33, %v2293_v41  ;;  %v6308_v12 = vpack.c.bf16 %v2294_v7, %v2290_v45  ;;  %v2325_v41 = vld [vmem:[#allocation9 + $0x158] sm:$0xff]  ;;  %v2322_v45 = vld [vmem:[#allocation9 + $0x140] sm:$0xff] }
 0x7bd   :  { %4537 = vmatprep.subr.bf16.mxu0 %v4536_v5  ;;  %4569 = vmatprep.subr.bf16.mxu1 %v4568_v28  ;;  %v6311_v5 = vpack.c.bf16 %v2296_v20, %v2292_v21  ;;  %v2299_v28 = vld [vmem:[#allocation9 + $0x88] sm:$0xff]  ;;  %v2329_v33 = vld [vmem:[#allocation9 + $0x178] sm:$0xff]  ;;  %v2326_v21 = vld [vmem:[#allocation9 + $0x160] sm:$0xff] }
 0x7be   :  { %v6316_v53 = vpack.c.bf16 %v2303_v47, %v2299_v28  ;;  %v6352_v7 = vpack.c.bf16 %v2329_v33, %v2325_v41  ;;  %v2324_v20 = vld [vmem:[#allocation9 + $0x150] sm:$0xff]  ;;  %v6355_v47 = vpack.c.bf16 %v2326_v21, %v2322_v45 }
 0x7bf   :  { %v2328_v28 = vld [vmem:[#allocation9 + $0x170] sm:$0xff] }
 0x7c0   :  { %4539 = vmatpush1.bf16.msra.mxu0 %v4538_v3  ;;  %4571 = vmatpush1.bf16.msra.mxu1 %v4570_v6  ;;  %v6318_v3 = vpack.c.bf16 %v2305_v56, %v2301_v50  ;;  %v6320_v6 = vpack.c.bf16 %v2302_v63, %v2298_v60  ;;  %v2331_v50 = vld [vmem:[#allocation9 + $0x188] sm:$0xff]  ;;  %v2333_v60 = vld [vmem:[#allocation9 + $0x198] sm:$0xff]  ;;  %v6359_v63 = vpack.c.bf16 %v2328_v28, %v2324_v20 }
 0x7c1   :  { %4541 = vmatprep.subr.bf16.mxu0 %v4540_v16  ;;  %4573 = vmatprep.subr.bf16.mxu1 %v4572_v19  ;;  %v6323_v16 = vpack.c.bf16 %v2304_v13, %v2300_v10  ;;  %v2307_v19 = vld [vmem:[#allocation9 + $0xc8] sm:$0xff]  ;;  %v2337_v13 = vld [vmem:[#allocation9 + $0x1b8] sm:$0xff] }
 0x7c2   :  { %v6328_v29 = vpack.c.bf16 %v2311_v23, %v2307_v19  ;;  %v2335_v56 = vld [vmem:[#allocation9 + $0x1a8] sm:$0xff]  ;;  %v2330_v19 = vld [vmem:[#allocation9 + $0x180] sm:$0xff] }
 0x7c3   :  { %v6361_v10 = vpack.c.bf16 %v2335_v56, %v2331_v50  ;;  %v2334_v23 = vld [vmem:[#allocation9 + $0x1a0] sm:$0xff] }
 0x7c4   :  { %4543 = vmatpush1.bf16.msra.mxu0 %v4542_v44  ;;  %4575 = vmatpush1.bf16.msra.mxu1 %v4574_v48  ;;  %v6330_v44 = vpack.c.bf16 %v2313_v32, %v2309_v26  ;;  %v6332_v48 = vpack.c.bf16 %v2310_v40, %v2306_v36  ;;  %v6364_v26 = vpack.c.bf16 %v2337_v13, %v2333_v60  ;;  %v2332_v32 = vld [vmem:[#allocation9 + $0x190] sm:$0xff] }
 0x7c5   :  { %4545 = vmatprep.subr.bf16.mxu0 %v4544_v58  ;;  %4577 = vmatprep.subr.bf16.mxu1 %v4576_v62  ;;  %v2312_v58 = vld [vmem:[#allocation9 + $0xf0] sm:$0xff]  ;;  %v2315_v62 = vld [vmem:[#allocation9 + $0x108] sm:$0xff]  ;;  %v6367_v40 = vpack.c.bf16 %v2334_v23, %v2330_v19 }
 0x7c6   :  { %v6335_v4 = vpack.c.bf16 %v2312_v58, %v2308_v54  ;;  %v2336_v36 = vld [vmem:[#allocation9 + $0x1b0] sm:$0xff]  ;;  %v2339_v58 = vld [vmem:[#allocation9 + $0x1c8] sm:$0xff] }
 0x7c7   :  { %v6371_v54 = vpack.c.bf16 %v2336_v36, %v2332_v32 }
 0x7c8   :  { %4547 = vmatpush1.bf16.msra.mxu0 %v4546_v18  ;;  %4579 = vmatpush1.bf16.msra.mxu1 %v4578_v22  ;;  %v2321_v18 = vld [vmem:[#allocation9 + $0x138] sm:$0xff]  ;;  %v6339_v22 = vpack.c.bf16 %v2319_v9, %v2315_v62  ;;  %v2343_v62 = vld [vmem:[#allocation9 + $0x1e8] sm:$0xff] }
 0x7c9   :  { %v2341_v9 = vld [vmem:[#allocation9 + $0x1d8] sm:$0xff] }
 0x7cb   :  { %2089 = vmatmul.mubr.f32.vlgmr.msra.gmra.mrb[16].mxu0 %v5984_v46  ;;  %2202 = vmatmul.mubr.f32.vlgmr.msra.gmra.mrb[16].mxu1 %v5984_v46  ;;  %v2283_v46 = vld [vmem:[#allocation9 + $0x8] sm:$0xff] }
 0x7cc   :  { %2094 = vmatprep.mubr.f32.mxu0 %v5637_v0  ;;  %2207 = vmatprep.mubr.f32.mxu1 %v5637_v0 }
 0x7cf   :  { %2095 = vmatmul.mubr.f32.gmra.mrb[18].mxu0 %v6030_v2  ;;  %2208 = vmatmul.mubr.f32.gmra.mrb[18].mxu1 %v6030_v2  ;;  %v2287_v2 = vld [vmem:[#allocation9 + $0x28] sm:$0xff] }
 0x7d0   :  { %2100 = vmatprep.mubr.f32.mxu0 %v5637_v0  ;;  %2213 = vmatprep.mubr.f32.mxu1 %v5637_v0 }
 0x7d3   :  { %2101 = vmatmul.mubr.f32.gmra.mrb[20].mxu0 %v6076_v15  ;;  %2214 = vmatmul.mubr.f32.gmra.mrb[20].mxu1 %v6076_v15  ;;  %v2285_v15 = vld [vmem:[#allocation9 + $0x18] sm:$0xff] }
 0x7d4   :  { %2106 = vmatprep.mubr.f32.mxu0 %v5637_v0  ;;  %2219 = vmatprep.mubr.f32.mxu1 %v5637_v0 }
 0x7d7   :  { %2107 = vmatmul.mubr.f32.gmra.mrb[22].mxu0 %v6122_v43  ;;  %2220 = vmatmul.mubr.f32.gmra.mrb[22].mxu1 %v6122_v43  ;;  %v6292_v43 = vpack.c.bf16 %v2287_v2, %v2283_v46  ;;  %v6341_v46 = vpack.c.bf16 %v2321_v18, %v2317_v14  ;;  %v2314_v2 = vld [vmem:[#allocation9 + $0x100] sm:$0xff]  ;;  %v6376_v14 = vpack.c.bf16 %v2343_v62, %v2339_v58  ;;  %v2345_v18 = vld [vmem:[#allocation9 + $0x1f8] sm:$0xff] }
 0x7d8   :  { %2112 = vmatprep.mubr.f32.mxu0 %v5637_v0  ;;  %2225 = vmatprep.mubr.f32.mxu1 %v5637_v0 }
 0x7d9   :  { %4581 = vmatprep.subr.bf16.mxu0 %v6292_v43 }
 0x7db   :  { %2113 = vmatmul.mubr.f32.gmra.mrb[24].mxu0 %v6168_v8  ;;  %2226 = vmatmul.mubr.f32.gmra.mrb[24].mxu1 %v6168_v8  ;;  %v2289_v8 = vld [vmem:[#allocation9 + $0x38] sm:$0xff] }
 0x7dc   :  { %2118 = vmatprep.mubr.f32.mxu0 %v5637_v0  ;;  %2231 = vmatprep.mubr.f32.mxu1 %v5637_v0  ;;  %v6294_v51 = vpack.c.bf16 %v2289_v8, %v2285_v15  ;;  %v2318_v15 = vld [vmem:[#allocation9 + $0x120] sm:$0xff]  ;;  %v2316_v8 = vld [vmem:[#allocation9 + $0x110] sm:$0xff] }
 0x7de   :  { %4613 = vmatprep.subr.bf16.mxu1 %v6294_v51 }
 0x7df   :  { %2119 = vmatmul.mubr.f32.gmra.mrb[26].mxu0 %v6214_v17  ;;  %2232 = vmatmul.mubr.f32.gmra.mrb[26].mxu1 %v6214_v17  ;;  %v2286_v17 = vld [vmem:[#allocation9 + $0x20] sm:$0xff] }
 0x7e0   :  { %2124 = vmatprep.mubr.f32.mxu0 %v5637_v0  ;;  %2237 = vmatprep.mubr.f32.mxu1 %v5637_v0  ;;  %v6296_v39 = vpack.c.bf16 %v2286_v17, %v2282_v27  ;;  %v6344_v27 = vpack.c.bf16 %v2318_v15, %v2314_v2  ;;  %v2320_v17 = vld [vmem:[#allocation9 + $0x130] sm:$0xff]  ;;  %v2338_v2 = vld [vmem:[#allocation9 + $0x1c0] sm:$0xff] }
 0x7e1   :  { %v6348_v38 = vpack.c.bf16 %v2320_v17, %v2316_v8  ;;  %v2342_v15 = vld [vmem:[#allocation9 + $0x1e0] sm:$0xff]  ;;  %v6378_v8 = vpack.c.bf16 %v2345_v18, %v2341_v9 }
 0x7e2   :  { %4583 = vmatpush1.bf16.msra.mxu0 %v6296_v39  ;;  %v6380_v17 = vpack.c.bf16 %v2342_v15, %v2338_v2 }
 0x7e3   :  { %2125 = vmatmul.mubr.f32.gmra.mrb[28].mxu0 %v6258_v55  ;;  %2238 = vmatmul.mubr.f32.gmra.mrb[28].mxu1 %v6258_v55  ;;  %v6299_v55 = vpack.c.bf16 %v2288_v49, %v2284_v11  ;;  %v2323_v11 = vld [vmem:[#allocation9 + $0x148] sm:$0xff] }
 0x7e4   :  { %2130 = vmatprep.mubr.f32.mxu0 %v5637_v0  ;;  %2243 = vmatprep.mubr.f32.mxu1 %v5637_v0  ;;  %v2327_v49 = vld [vmem:[#allocation9 + $0x168] sm:$0xff] }
 0x7e5   :  { %4615 = vmatpush1.bf16.msra.mxu1 %v6299_v55  ;;  %4585 = vmatprep.subr.bf16.mxu0 %v6304_v61  ;;  %v6350_v52 = vpack.c.bf16 %v2327_v49, %v2323_v11  ;;  %v2340_v11 = vld [vmem:[#allocation9 + $0x1d0] sm:$0xff] }
 0x7e6   :  { %4617 = vmatprep.subr.bf16.mxu1 %v6306_v24  ;;  %4587 = vmatpush1.bf16.msra.mxu0 %v6308_v12  ;;  %v2344_v49 = vld [vmem:[#allocation9 + $0x1f0] sm:$0xff] }
 0x7e7   :  { %4589 = vmatprep.subr.bf16.mxu0 %v6316_v53  ;;  %v6383_v41 = vpack.c.bf16 %v2344_v49, %v2340_v11 }
 0x7e9   :  { %4619 = vmatpush1.bf16.msra.mxu1 %v6311_v5 }
 0x7ea   :  { %4621 = vmatprep.subr.bf16.mxu1 %v6318_v3  ;;  %4591 = vmatpush1.bf16.msra.mxu0 %v6320_v6 }
 0x7eb   :  { %4593 = vmatprep.subr.bf16.mxu0 %v6328_v29 }
 0x7ed   :  { %4623 = vmatpush1.bf16.msra.mxu1 %v6323_v16 }
 0x7ee   :  { %4625 = vmatprep.subr.bf16.mxu1 %v6330_v44  ;;  %4595 = vmatpush1.bf16.msra.mxu0 %v6332_v48 }
 0x7ef   :  { %4597 = vmatprep.subr.bf16.mxu0 %v6339_v22 }
 0x7f1   :  { %4627 = vmatpush1.bf16.msra.mxu1 %v6335_v4 }
 0x7f2   :  { %4629 = vmatprep.subr.bf16.mxu1 %v6341_v46  ;;  %4599 = vmatpush1.bf16.msra.mxu0 %v6344_v27 }
 0x7f3   :  { %4601 = vmatprep.subr.bf16.mxu0 %v6350_v52 }
 0x7f5   :  { %4631 = vmatpush1.bf16.msra.mxu1 %v6348_v38 }
 0x7f6   :  { %4633 = vmatprep.subr.bf16.mxu1 %v6352_v7  ;;  %4603 = vmatpush1.bf16.msra.mxu0 %v6355_v47 }
 0x7f7   :  { %4605 = vmatprep.subr.bf16.mxu0 %v6361_v10 }
 0x7f9   :  { %4635 = vmatpush1.bf16.msra.mxu1 %v6359_v63 }
 0x7fa   :  { %4637 = vmatprep.subr.bf16.mxu1 %v6364_v26  ;;  %4607 = vmatpush1.bf16.msra.mxu0 %v6367_v40 }
 0x7fb   :  { %4609 = vmatprep.subr.bf16.mxu0 %v6376_v14 }
 0x7fd   :  { %4639 = vmatpush1.bf16.msra.mxu1 %v6371_v54 }
 0x7fe   :  { %4641 = vmatprep.subr.bf16.mxu1 %v6378_v8  ;;  %4611 = vmatpush1.bf16.msra.mxu0 %v6380_v17 }
 0x7ff   :  { %4645 = vmatprep.subr.bf16.mxu0 %v6292_v43 }
 0x801   :  { %4643 = vmatpush1.bf16.msra.mxu1 %v6383_v41 }
 0x802   :  { %4677 = vmatprep.subr.bf16.mxu1 %v6294_v51 }
 0x87e   :  { %v1824_v33 = vpop.f32.mrb[14].mxu0  ;;  %v1895_v45 = vpop.f32.mrb[14].mxu1 }
 0x87f   :  { %v5130_v21 = vadd.f32 %v1824_v33, %v5961_v35  ;;  %v1826_v20 = vpop.f32.mrb[15].mxu0  ;;  %v1897_v28 = vpop.f32.mrb[15].mxu1  ;;  %v5146_v23 = vadd.f32 %v1895_v45, %v5978_v1 }
 0x880   :  { %v5131_v50 = vadd.f32 %v1826_v20, %v5965_v37  ;;  %v5147_v13 = vadd.f32 %v1897_v28, %v5972_v57 }
 0x881   :  { %v3860_v56 = vmul.f32 -1.442695, %v5130_v21 }
 0x882   :  { %v3861_v60 = vmul.f32 -1.442695, %v5131_v50  ;;  %v3862_v19 = vmul.f32 -1.442695, %v5147_v13 }
 0x883   :  { %5368 = vpow2.f32 %v3860_v56 }
 0x884   :  { %5370 = vpow2.f32 %v3861_v60 }
 0x885   :  { %5372 = vpow2.f32 %v3862_v19 }
 0x886   :  { %5374 = vtanh.f32 %v5146_v23 }
 0x88d   :  { %v5369_v32 = vpop.eup %5368 }
 0x88e   :  { %v5371_v36 = vpop.eup %5370  ;;  %v1907_v58 = vadd.f32 1.0, %v5369_v32 }
 0x88f   :  { %v1913_v62 = vadd.f32 1.0, %v5371_v36  ;;  %v5373_v35 = vpop.eup %5372 }
 0x890   :  { %5376 = vrcp.f32 %v1907_v58  ;;  %v5375_v9 = vpop.eup %5374  ;;  %v1920_v15 = vadd.f32 1.0, %v5373_v35 }
 0x891   :  { %5378 = vrcp.f32 %v1913_v62 }
 0x892   :  { %5380 = vrcp.f32 %v1920_v15 }
 0x89a   :  { %v5377_v37 = vpop.eup %5376 }
 0x89b   :  { %v5379_v18 = vpop.eup %5378  ;;  %v1924_v2 = vmul.f32 %v5377_v37, %v5375_v9 }
 0x89c   :  { %v1923_v11 = vmul.f32 %v5379_v18, %v6255_v25  ;;  %v5381_v1 = vpop.eup %5380  ;;  %v2002_v25 = vld [vmem:[%s6727_s6] sm:$0xf] }
 0x89d   :  { %v6438_v45 = vrot.slane %v2002_v25, %v176_v31  ;;  %v6442_v21 = vrot.slane %v2002_v25, %v180_v34  ;;  %v6448_v32 = vrot.slane %v2002_v25, %v188_v42  ;;  %v6453_v34 = vrot.slane %v2002_v25, %v184_v59 }
 0x89e   :  { %v1925_v57 = vadd.f32 %v1924_v2, %v1923_v11 }
 0x8a0   :  { %5382 = vtanh.f32 %v1925_v57 }
 0x8aa   :  { %v5383_v49 = vpop.eup %5382 }
 0x8ab   :  { %v1927_v33 = vmul.f32 %v5383_v49, %v5381_v1 }
 0x8ad   :  { %2131 = vmatmul.mubr.f32.gmra.mrb[30].mxu0 %v1927_v33  ;;  %2244 = vmatmul.mubr.f32.gmra.mrb[30].mxu1 %v1927_v33 }
 0x8ae   :  { %2414 = vmatprep.mubr.f32.mxu0 %v5637_v0  ;;  %2485 = vmatprep.mubr.f32.mxu1 %v5637_v0 }
 0x8b1   :  { %2415 = vmatmul.mubr.f32.vlgmr.msra.gmra.mrb[16].mxu0 %v5637_v0  ;;  %2486 = vmatmul.mubr.f32.vlgmr.msra.gmra.mrb[16].mxu1 %v5637_v0 }
 0x8b2   :  { %4647 = vmatpush1.bf16.msra.mxu0 %v6296_v39  ;;  %4679 = vmatpush1.bf16.msra.mxu1 %v6299_v55 }
 0x8b3   :  { %4649 = vmatprep.subr.bf16.mxu0 %v6304_v61  ;;  %4681 = vmatprep.subr.bf16.mxu1 %v6306_v24 }
 0x8b4   :  { %2588 = vmatprep.mubr.f32.mxu0 %v5637_v0  ;;  %2659 = vmatprep.mubr.f32.mxu1 %v5637_v0 }
 0x8b6   :  { %4651 = vmatpush1.bf16.msra.mxu0 %v6308_v12  ;;  %4683 = vmatpush1.bf16.msra.mxu1 %v6311_v5 }
 0x8b7   :  { %4653 = vmatprep.subr.bf16.mxu0 %v6316_v53  ;;  %4685 = vmatprep.subr.bf16.mxu1 %v6318_v3 }
 0x8ba   :  { %4655 = vmatpush1.bf16.msra.mxu0 %v6320_v6  ;;  %4687 = vmatpush1.bf16.msra.mxu1 %v6323_v16 }
 0x8bb   :  { %4657 = vmatprep.subr.bf16.mxu0 %v6328_v29  ;;  %4689 = vmatprep.subr.bf16.mxu1 %v6330_v44 }
 0x8be   :  { %4659 = vmatpush1.bf16.msra.mxu0 %v6332_v48  ;;  %4691 = vmatpush1.bf16.msra.mxu1 %v6335_v4 }
 0x8bf   :  { %4661 = vmatprep.subr.bf16.mxu0 %v6339_v22  ;;  %4693 = vmatprep.subr.bf16.mxu1 %v6341_v46 }
 0x8c2   :  { %4663 = vmatpush1.bf16.msra.mxu0 %v6344_v27  ;;  %4695 = vmatpush1.bf16.msra.mxu1 %v6348_v38 }
 0x8c3   :  { %4665 = vmatprep.subr.bf16.mxu0 %v6350_v52  ;;  %4697 = vmatprep.subr.bf16.mxu1 %v6352_v7 }
 0x8c6   :  { %4667 = vmatpush1.bf16.msra.mxu0 %v6355_v47  ;;  %4699 = vmatpush1.bf16.msra.mxu1 %v6359_v63 }
 0x8c7   :  { %4669 = vmatprep.subr.bf16.mxu0 %v6361_v10  ;;  %4701 = vmatprep.subr.bf16.mxu1 %v6364_v26 }
 0x8ca   :  { %4671 = vmatpush1.bf16.msra.mxu0 %v6367_v40  ;;  %4703 = vmatpush1.bf16.msra.mxu1 %v6371_v54 }
 0x8cb   :  { %4673 = vmatprep.subr.bf16.mxu0 %v6376_v14  ;;  %4705 = vmatprep.subr.bf16.mxu1 %v6378_v8 }
 0x8ce   :  { %4675 = vmatpush1.bf16.msra.mxu0 %v6380_v17  ;;  %4707 = vmatpush1.bf16.msra.mxu1 %v6383_v41 }
 0x8cf   :  { %4709 = vmatprep.subr.bf16.mxu0 %v6292_v43  ;;  %4741 = vmatprep.subr.bf16.mxu1 %v6294_v51 }
 0x984   :  { %v2416_v20 = vpop.f32.mrb[16].mxu0  ;;  %v2487_v28 = vpop.f32.mrb[16].mxu1 }
 0x985   :  { %v5148_v50 = vadd.f32 %v2416_v20, %v6438_v45  ;;  %v2418_v56 = vpop.f32.mrb[17].mxu0  ;;  %v2489_v60 = vpop.f32.mrb[17].mxu1  ;;  %v5164_v58 = vadd.f32 %v2487_v28, %v6453_v34 }
 0x986   :  { %v5149_v13 = vadd.f32 %v2418_v56, %v6442_v21  ;;  %v5165_v31 = vadd.f32 %v2489_v60, %v6448_v32 }
 0x987   :  { %v3863_v19 = vmul.f32 -1.442695, %v5148_v50 }
 0x988   :  { %v3864_v23 = vmul.f32 -1.442695, %v5149_v13  ;;  %v3865_v36 = vmul.f32 -1.442695, %v5165_v31 }
 0x989   :  { %5384 = vpow2.f32 %v3863_v19 }
 0x98a   :  { %5386 = vpow2.f32 %v3864_v23 }
 0x98b   :  { %5388 = vpow2.f32 %v3865_v36 }
 0x98c   :  { %5390 = vtanh.f32 %v5164_v58 }
 0x993   :  { %v5385_v62 = vpop.eup %5384 }
 0x994   :  { %v5387_v35 = vpop.eup %5386  ;;  %v2499_v9 = vadd.f32 1.0, %v5385_v62 }
 0x995   :  { %v2505_v37 = vadd.f32 1.0, %v5387_v35  ;;  %v5389_v42 = vpop.eup %5388 }
 0x996   :  { %5392 = vrcp.f32 %v2499_v9  ;;  %v5391_v18 = vpop.eup %5390  ;;  %v2512_v57 = vadd.f32 1.0, %v5389_v42 }
 0x997   :  { %5394 = vrcp.f32 %v2505_v37 }
 0x998   :  { %5396 = vrcp.f32 %v2512_v57 }
 0x9a0   :  { %v5393_v2 = vpop.eup %5392 }
 0x9a1   :  { %v5395_v15 = vpop.eup %5394  ;;  %v2516_v11 = vmul.f32 %v5393_v2, %v5391_v18 }
 0x9a2   :  { %v2515_v30 = vmul.f32 0.0, %v5395_v15  ;;  %v5397_v1 = vpop.eup %5396 }
 0x9a4   :  { %v6456_v59 = vadd.f32 %v2516_v11, %v2515_v30 }
 0x9a6   :  { %5398 = vtanh.f32 %v6456_v59 }
 0x9b0   :  { %v5399_v49 = vpop.eup %5398 }
 0x9b1   :  { %v2519_v33 = vmul.f32 %v5399_v49, %v5397_v1 }
 0x9b3   :  { %2589 = vmatmul.mubr.f32.vlgmr.msra.gmra.mrb[18].mxu0 %v2519_v33  ;;  %2660 = vmatmul.mubr.f32.vlgmr.msra.gmra.mrb[18].mxu1 %v2519_v33 }
 0x9b4   :  { %4711 = vmatpush1.bf16.msra.mxu0 %v6296_v39  ;;  %4743 = vmatpush1.bf16.msra.mxu1 %v6299_v55 }
 0x9b5   :  { %4713 = vmatprep.subr.bf16.mxu0 %v6304_v61  ;;  %4745 = vmatprep.subr.bf16.mxu1 %v6306_v24 }
 0x9b6   :  { %2762 = vmatprep.mubr.f32.mxu0 %v5637_v0  ;;  %2833 = vmatprep.mubr.f32.mxu1 %v5637_v0 }
 0x9b8   :  { %4715 = vmatpush1.bf16.msra.mxu0 %v6308_v12  ;;  %4747 = vmatpush1.bf16.msra.mxu1 %v6311_v5 }
 0x9b9   :  { %4717 = vmatprep.subr.bf16.mxu0 %v6316_v53  ;;  %4749 = vmatprep.subr.bf16.mxu1 %v6318_v3 }
 0x9bc   :  { %4719 = vmatpush1.bf16.msra.mxu0 %v6320_v6  ;;  %4751 = vmatpush1.bf16.msra.mxu1 %v6323_v16 }
 0x9bd   :  { %4721 = vmatprep.subr.bf16.mxu0 %v6328_v29  ;;  %4753 = vmatprep.subr.bf16.mxu1 %v6330_v44 }
 0x9c0   :  { %4723 = vmatpush1.bf16.msra.mxu0 %v6332_v48  ;;  %4755 = vmatpush1.bf16.msra.mxu1 %v6335_v4 }
 0x9c1   :  { %4725 = vmatprep.subr.bf16.mxu0 %v6339_v22  ;;  %4757 = vmatprep.subr.bf16.mxu1 %v6341_v46 }
 0x9c4   :  { %4727 = vmatpush1.bf16.msra.mxu0 %v6344_v27  ;;  %4759 = vmatpush1.bf16.msra.mxu1 %v6348_v38 }
 0x9c5   :  { %4729 = vmatprep.subr.bf16.mxu0 %v6350_v52  ;;  %4761 = vmatprep.subr.bf16.mxu1 %v6352_v7 }
 0x9c8   :  { %4731 = vmatpush1.bf16.msra.mxu0 %v6355_v47  ;;  %4763 = vmatpush1.bf16.msra.mxu1 %v6359_v63 }
 0x9c9   :  { %4733 = vmatprep.subr.bf16.mxu0 %v6361_v10  ;;  %4765 = vmatprep.subr.bf16.mxu1 %v6364_v26 }
 0x9cc   :  { %4735 = vmatpush1.bf16.msra.mxu0 %v6367_v40  ;;  %4767 = vmatpush1.bf16.msra.mxu1 %v6371_v54 }
 0x9cd   :  { %4737 = vmatprep.subr.bf16.mxu0 %v6376_v14  ;;  %4769 = vmatprep.subr.bf16.mxu1 %v6378_v8 }
 0x9d0   :  { %4739 = vmatpush1.bf16.msra.mxu0 %v6380_v17  ;;  %4771 = vmatpush1.bf16.msra.mxu1 %v6383_v41 }
 0x9d1   :  { %4773 = vmatprep.subr.bf16.mxu0 %v6292_v43  ;;  %4805 = vmatprep.subr.bf16.mxu1 %v6294_v51 }
 0xa86   :  { %v2590_v25 = vpop.f32.mrb[18].mxu0  ;;  %v2661_v20 = vpop.f32.mrb[18].mxu1 }
 0xa87   :  { %v5150_v28 = vadd.f32 %v2590_v25, %v6438_v45  ;;  %v2592_v50 = vpop.f32.mrb[19].mxu0  ;;  %v2663_v56 = vpop.f32.mrb[19].mxu1  ;;  %v5166_v36 = vadd.f32 %v2661_v20, %v6453_v34 }
 0xa88   :  { %v5151_v60 = vadd.f32 %v2592_v50, %v6442_v21  ;;  %v5167_v23 = vadd.f32 %v2663_v56, %v6448_v32 }
 0xa89   :  { %v3866_v13 = vmul.f32 -1.442695, %v5150_v28 }
 0xa8a   :  { %v3867_v19 = vmul.f32 -1.442695, %v5151_v60  ;;  %v3868_v31 = vmul.f32 -1.442695, %v5167_v23 }
 0xa8b   :  { %5400 = vpow2.f32 %v3866_v13 }
 0xa8c   :  { %5402 = vpow2.f32 %v3867_v19 }
 0xa8d   :  { %5404 = vpow2.f32 %v3868_v31 }
 0xa8e   :  { %5406 = vtanh.f32 %v5166_v36 }
 0xa95   :  { %v5401_v58 = vpop.eup %5400 }
 0xa96   :  { %v5403_v62 = vpop.eup %5402  ;;  %v2673_v35 = vadd.f32 1.0, %v5401_v58 }
 0xa97   :  { %v2679_v9 = vadd.f32 1.0, %v5403_v62  ;;  %v5405_v37 = vpop.eup %5404 }
 0xa98   :  { %5408 = vrcp.f32 %v2673_v35  ;;  %v5407_v42 = vpop.eup %5406  ;;  %v2686_v11 = vadd.f32 1.0, %v5405_v37 }
 0xa99   :  { %5410 = vrcp.f32 %v2679_v9 }
 0xa9a   :  { %5412 = vrcp.f32 %v2686_v11 }
 0xaa2   :  { %v5409_v18 = vpop.eup %5408 }
 0xaa3   :  { %v5411_v2 = vpop.eup %5410  ;;  %v2690_v15 = vmul.f32 %v5409_v18, %v5407_v42 }
 0xaa4   :  { %v2689_v57 = vmul.f32 %v5411_v2, %v6456_v59  ;;  %v5413_v1 = vpop.eup %5412 }
 0xaa6   :  { %v6498_v30 = vadd.f32 %v2690_v15, %v2689_v57 }
 0xaa8   :  { %5414 = vtanh.f32 %v6498_v30 }
 0xab2   :  { %v5415_v49 = vpop.eup %5414 }
 0xab3   :  { %v2693_v33 = vmul.f32 %v5415_v49, %v5413_v1 }
 0xab5   :  { %2763 = vmatmul.mubr.f32.vlgmr.msra.gmra.mrb[20].mxu0 %v2693_v33  ;;  %2834 = vmatmul.mubr.f32.vlgmr.msra.gmra.mrb[20].mxu1 %v2693_v33 }
 0xab6   :  { %4775 = vmatpush1.bf16.msra.mxu0 %v6296_v39  ;;  %4807 = vmatpush1.bf16.msra.mxu1 %v6299_v55 }
 0xab7   :  { %4777 = vmatprep.subr.bf16.mxu0 %v6304_v61  ;;  %4809 = vmatprep.subr.bf16.mxu1 %v6306_v24 }
 0xab8   :  { %2936 = vmatprep.mubr.f32.mxu0 %v5637_v0  ;;  %3007 = vmatprep.mubr.f32.mxu1 %v5637_v0 }
 0xaba   :  { %4779 = vmatpush1.bf16.msra.mxu0 %v6308_v12  ;;  %4811 = vmatpush1.bf16.msra.mxu1 %v6311_v5 }
 0xabb   :  { %4781 = vmatprep.subr.bf16.mxu0 %v6316_v53  ;;  %4813 = vmatprep.subr.bf16.mxu1 %v6318_v3 }
 0xabe   :  { %4783 = vmatpush1.bf16.msra.mxu0 %v6320_v6  ;;  %4815 = vmatpush1.bf16.msra.mxu1 %v6323_v16 }
 0xabf   :  { %4785 = vmatprep.subr.bf16.mxu0 %v6328_v29  ;;  %4817 = vmatprep.subr.bf16.mxu1 %v6330_v44 }
 0xac2   :  { %4787 = vmatpush1.bf16.msra.mxu0 %v6332_v48  ;;  %4819 = vmatpush1.bf16.msra.mxu1 %v6335_v4 }
 0xac3   :  { %4789 = vmatprep.subr.bf16.mxu0 %v6339_v22  ;;  %4821 = vmatprep.subr.bf16.mxu1 %v6341_v46 }
 0xac6   :  { %4791 = vmatpush1.bf16.msra.mxu0 %v6344_v27  ;;  %4823 = vmatpush1.bf16.msra.mxu1 %v6348_v38 }
 0xac7   :  { %4793 = vmatprep.subr.bf16.mxu0 %v6350_v52  ;;  %4825 = vmatprep.subr.bf16.mxu1 %v6352_v7 }
 0xaca   :  { %4795 = vmatpush1.bf16.msra.mxu0 %v6355_v47  ;;  %4827 = vmatpush1.bf16.msra.mxu1 %v6359_v63 }
 0xacb   :  { %4797 = vmatprep.subr.bf16.mxu0 %v6361_v10  ;;  %4829 = vmatprep.subr.bf16.mxu1 %v6364_v26 }
 0xace   :  { %4799 = vmatpush1.bf16.msra.mxu0 %v6367_v40  ;;  %4831 = vmatpush1.bf16.msra.mxu1 %v6371_v54 }
 0xacf   :  { %4801 = vmatprep.subr.bf16.mxu0 %v6376_v14  ;;  %4833 = vmatprep.subr.bf16.mxu1 %v6378_v8 }
 0xad2   :  { %4803 = vmatpush1.bf16.msra.mxu0 %v6380_v17  ;;  %4835 = vmatpush1.bf16.msra.mxu1 %v6383_v41 }
 0xad3   :  { %4837 = vmatprep.subr.bf16.mxu0 %v6292_v43  ;;  %4869 = vmatprep.subr.bf16.mxu1 %v6294_v51 }
 0xb88   :  { %v2764_v59 = vpop.f32.mrb[20].mxu0  ;;  %v2835_v25 = vpop.f32.mrb[20].mxu1 }
 0xb89   :  { %v5152_v20 = vadd.f32 %v2764_v59, %v6438_v45  ;;  %v2766_v28 = vpop.f32.mrb[21].mxu0  ;;  %v2837_v50 = vpop.f32.mrb[21].mxu1  ;;  %v5168_v31 = vadd.f32 %v2835_v25, %v6453_v34 }
 0xb8a   :  { %v5153_v56 = vadd.f32 %v2766_v28, %v6442_v21  ;;  %v5169_v19 = vadd.f32 %v2837_v50, %v6448_v32 }
 0xb8b   :  { %v3869_v60 = vmul.f32 -1.442695, %v5152_v20 }
 0xb8c   :  { %v3870_v13 = vmul.f32 -1.442695, %v5153_v56  ;;  %v3871_v23 = vmul.f32 -1.442695, %v5169_v19 }
 0xb8d   :  { %5416 = vpow2.f32 %v3869_v60 }
 0xb8e   :  { %5418 = vpow2.f32 %v3870_v13 }
 0xb8f   :  { %5420 = vpow2.f32 %v3871_v23 }
 0xb90   :  { %5422 = vtanh.f32 %v5168_v31 }
 0xb97   :  { %v5417_v36 = vpop.eup %5416 }
 0xb98   :  { %v5419_v58 = vpop.eup %5418  ;;  %v2847_v62 = vadd.f32 1.0, %v5417_v36 }
 0xb99   :  { %v2853_v35 = vadd.f32 1.0, %v5419_v58  ;;  %v5421_v9 = vpop.eup %5420 }
 0xb9a   :  { %5424 = vrcp.f32 %v2847_v62  ;;  %v5423_v37 = vpop.eup %5422  ;;  %v2860_v15 = vadd.f32 1.0, %v5421_v9 }
 0xb9b   :  { %5426 = vrcp.f32 %v2853_v35 }
 0xb9c   :  { %5428 = vrcp.f32 %v2860_v15 }
 0xba4   :  { %v5425_v42 = vpop.eup %5424 }
 0xba5   :  { %v5427_v18 = vpop.eup %5426  ;;  %v2864_v2 = vmul.f32 %v5425_v42, %v5423_v37 }
 0xba6   :  { %v2863_v11 = vmul.f32 %v5427_v18, %v6498_v30  ;;  %v5429_v1 = vpop.eup %5428 }
 0xba8   :  { %v6540_v57 = vadd.f32 %v2864_v2, %v2863_v11 }
 0xbaa   :  { %5430 = vtanh.f32 %v6540_v57 }
 0xbb4   :  { %v5431_v49 = vpop.eup %5430 }
 0xbb5   :  { %v2867_v33 = vmul.f32 %v5431_v49, %v5429_v1 }
 0xbb7   :  { %2937 = vmatmul.mubr.f32.vlgmr.msra.gmra.mrb[22].mxu0 %v2867_v33  ;;  %3008 = vmatmul.mubr.f32.vlgmr.msra.gmra.mrb[22].mxu1 %v2867_v33 }
 0xbb8   :  { %4839 = vmatpush1.bf16.msra.mxu0 %v6296_v39  ;;  %4871 = vmatpush1.bf16.msra.mxu1 %v6299_v55 }
 0xbb9   :  { %4841 = vmatprep.subr.bf16.mxu0 %v6304_v61  ;;  %4873 = vmatprep.subr.bf16.mxu1 %v6306_v24 }
 0xbba   :  { %3110 = vmatprep.mubr.f32.mxu0 %v5637_v0  ;;  %3181 = vmatprep.mubr.f32.mxu1 %v5637_v0 }
 0xbbc   :  { %4843 = vmatpush1.bf16.msra.mxu0 %v6308_v12  ;;  %4875 = vmatpush1.bf16.msra.mxu1 %v6311_v5 }
 0xbbd   :  { %4845 = vmatprep.subr.bf16.mxu0 %v6316_v53  ;;  %4877 = vmatprep.subr.bf16.mxu1 %v6318_v3 }
 0xbc0   :  { %4847 = vmatpush1.bf16.msra.mxu0 %v6320_v6  ;;  %4879 = vmatpush1.bf16.msra.mxu1 %v6323_v16 }
 0xbc1   :  { %4849 = vmatprep.subr.bf16.mxu0 %v6328_v29  ;;  %4881 = vmatprep.subr.bf16.mxu1 %v6330_v44 }
 0xbc4   :  { %4851 = vmatpush1.bf16.msra.mxu0 %v6332_v48  ;;  %4883 = vmatpush1.bf16.msra.mxu1 %v6335_v4 }
 0xbc5   :  { %4853 = vmatprep.subr.bf16.mxu0 %v6339_v22  ;;  %4885 = vmatprep.subr.bf16.mxu1 %v6341_v46 }
 0xbc8   :  { %4855 = vmatpush1.bf16.msra.mxu0 %v6344_v27  ;;  %4887 = vmatpush1.bf16.msra.mxu1 %v6348_v38 }
 0xbc9   :  { %4857 = vmatprep.subr.bf16.mxu0 %v6350_v52  ;;  %4889 = vmatprep.subr.bf16.mxu1 %v6352_v7 }
 0xbcc   :  { %4859 = vmatpush1.bf16.msra.mxu0 %v6355_v47  ;;  %4891 = vmatpush1.bf16.msra.mxu1 %v6359_v63 }
 0xbcd   :  { %4861 = vmatprep.subr.bf16.mxu0 %v6361_v10  ;;  %4893 = vmatprep.subr.bf16.mxu1 %v6364_v26 }
 0xbd0   :  { %4863 = vmatpush1.bf16.msra.mxu0 %v6367_v40  ;;  %4895 = vmatpush1.bf16.msra.mxu1 %v6371_v54 }
 0xbd1   :  { %4865 = vmatprep.subr.bf16.mxu0 %v6376_v14  ;;  %4897 = vmatprep.subr.bf16.mxu1 %v6378_v8 }
 0xbd4   :  { %4867 = vmatpush1.bf16.msra.mxu0 %v6380_v17  ;;  %4899 = vmatpush1.bf16.msra.mxu1 %v6383_v41 }
 0xbd5   :  { %4901 = vmatprep.subr.bf16.mxu0 %v6292_v43  ;;  %4933 = vmatprep.subr.bf16.mxu1 %v6294_v51 }
 0xc8a   :  { %v2938_v30 = vpop.f32.mrb[22].mxu0  ;;  %v3009_v59 = vpop.f32.mrb[22].mxu1 }
 0xc8b   :  { %v5154_v25 = vadd.f32 %v2938_v30, %v6438_v45  ;;  %v2940_v20 = vpop.f32.mrb[23].mxu0  ;;  %v3011_v28 = vpop.f32.mrb[23].mxu1  ;;  %v5170_v23 = vadd.f32 %v3009_v59, %v6453_v34 }
 0xc8c   :  { %v5155_v50 = vadd.f32 %v2940_v20, %v6442_v21  ;;  %v5171_v13 = vadd.f32 %v3011_v28, %v6448_v32 }
 0xc8d   :  { %v3872_v56 = vmul.f32 -1.442695, %v5154_v25 }
 0xc8e   :  { %v3873_v60 = vmul.f32 -1.442695, %v5155_v50  ;;  %v3874_v19 = vmul.f32 -1.442695, %v5171_v13 }
 0xc8f   :  { %5432 = vpow2.f32 %v3872_v56 }
 0xc90   :  { %5434 = vpow2.f32 %v3873_v60 }
 0xc91   :  { %5436 = vpow2.f32 %v3874_v19 }
 0xc92   :  { %5438 = vtanh.f32 %v5170_v23 }
 0xc99   :  { %v5433_v31 = vpop.eup %5432 }
 0xc9a   :  { %v5435_v36 = vpop.eup %5434  ;;  %v3021_v58 = vadd.f32 1.0, %v5433_v31 }
 0xc9b   :  { %v3027_v62 = vadd.f32 1.0, %v5435_v36  ;;  %v5437_v35 = vpop.eup %5436 }
 0xc9c   :  { %5440 = vrcp.f32 %v3021_v58  ;;  %v5439_v9 = vpop.eup %5438  ;;  %v3034_v2 = vadd.f32 1.0, %v5437_v35 }
 0xc9d   :  { %5442 = vrcp.f32 %v3027_v62 }
 0xc9e   :  { %5444 = vrcp.f32 %v3034_v2 }
 0xca6   :  { %v5441_v37 = vpop.eup %5440 }
 0xca7   :  { %v5443_v42 = vpop.eup %5442  ;;  %v3038_v18 = vmul.f32 %v5441_v37, %v5439_v9 }
 0xca8   :  { %v3037_v15 = vmul.f32 %v5443_v42, %v6540_v57  ;;  %v5445_v1 = vpop.eup %5444 }
 0xcaa   :  { %v6582_v11 = vadd.f32 %v3038_v18, %v3037_v15 }
 0xcac   :  { %5446 = vtanh.f32 %v6582_v11 }
 0xcb6   :  { %v5447_v49 = vpop.eup %5446 }
 0xcb7   :  { %v3041_v33 = vmul.f32 %v5447_v49, %v5445_v1 }
 0xcb9   :  { %3111 = vmatmul.mubr.f32.vlgmr.msra.gmra.mrb[24].mxu0 %v3041_v33  ;;  %3182 = vmatmul.mubr.f32.vlgmr.msra.gmra.mrb[24].mxu1 %v3041_v33 }
 0xcba   :  { %4903 = vmatpush1.bf16.msra.mxu0 %v6296_v39  ;;  %4935 = vmatpush1.bf16.msra.mxu1 %v6299_v55 }
 0xcbb   :  { %4905 = vmatprep.subr.bf16.mxu0 %v6304_v61  ;;  %4937 = vmatprep.subr.bf16.mxu1 %v6306_v24 }
 0xcbc   :  { %3284 = vmatprep.mubr.f32.mxu0 %v5637_v0  ;;  %3355 = vmatprep.mubr.f32.mxu1 %v5637_v0 }
 0xcbe   :  { %4907 = vmatpush1.bf16.msra.mxu0 %v6308_v12  ;;  %4939 = vmatpush1.bf16.msra.mxu1 %v6311_v5 }
 0xcbf   :  { %4909 = vmatprep.subr.bf16.mxu0 %v6316_v53  ;;  %4941 = vmatprep.subr.bf16.mxu1 %v6318_v3 }
 0xcc2   :  { %4911 = vmatpush1.bf16.msra.mxu0 %v6320_v6  ;;  %4943 = vmatpush1.bf16.msra.mxu1 %v6323_v16 }
 0xcc3   :  { %4913 = vmatprep.subr.bf16.mxu0 %v6328_v29  ;;  %4945 = vmatprep.subr.bf16.mxu1 %v6330_v44 }
 0xcc6   :  { %4915 = vmatpush1.bf16.msra.mxu0 %v6332_v48  ;;  %4947 = vmatpush1.bf16.msra.mxu1 %v6335_v4 }
 0xcc7   :  { %4917 = vmatprep.subr.bf16.mxu0 %v6339_v22  ;;  %4949 = vmatprep.subr.bf16.mxu1 %v6341_v46 }
 0xcca   :  { %4919 = vmatpush1.bf16.msra.mxu0 %v6344_v27  ;;  %4951 = vmatpush1.bf16.msra.mxu1 %v6348_v38 }
 0xccb   :  { %4921 = vmatprep.subr.bf16.mxu0 %v6350_v52  ;;  %4953 = vmatprep.subr.bf16.mxu1 %v6352_v7 }
 0xcce   :  { %4923 = vmatpush1.bf16.msra.mxu0 %v6355_v47  ;;  %4955 = vmatpush1.bf16.msra.mxu1 %v6359_v63 }
 0xccf   :  { %4925 = vmatprep.subr.bf16.mxu0 %v6361_v10  ;;  %4957 = vmatprep.subr.bf16.mxu1 %v6364_v26 }
 0xcd2   :  { %4927 = vmatpush1.bf16.msra.mxu0 %v6367_v40  ;;  %4959 = vmatpush1.bf16.msra.mxu1 %v6371_v54 }
 0xcd3   :  { %4929 = vmatprep.subr.bf16.mxu0 %v6376_v14  ;;  %4961 = vmatprep.subr.bf16.mxu1 %v6378_v8 }
 0xcd6   :  { %4931 = vmatpush1.bf16.msra.mxu0 %v6380_v17  ;;  %4963 = vmatpush1.bf16.msra.mxu1 %v6383_v41 }
 0xcd7   :  { %4965 = vmatprep.subr.bf16.mxu0 %v6292_v43  ;;  %4997 = vmatprep.subr.bf16.mxu1 %v6294_v51 }
 0xd8c   :  { %v3112_v57 = vpop.f32.mrb[24].mxu0  ;;  %v3183_v30 = vpop.f32.mrb[24].mxu1 }
 0xd8d   :  { %v5156_v59 = vadd.f32 %v3112_v57, %v6438_v45  ;;  %v3114_v25 = vpop.f32.mrb[25].mxu0  ;;  %v3185_v20 = vpop.f32.mrb[25].mxu1  ;;  %v5172_v19 = vadd.f32 %v3183_v30, %v6453_v34 }
 0xd8e   :  { %v5157_v28 = vadd.f32 %v3114_v25, %v6442_v21  ;;  %v5173_v60 = vadd.f32 %v3185_v20, %v6448_v32 }
 0xd8f   :  { %v3875_v50 = vmul.f32 -1.442695, %v5156_v59 }
 0xd90   :  { %v3876_v56 = vmul.f32 -1.442695, %v5157_v28  ;;  %v3877_v13 = vmul.f32 -1.442695, %v5173_v60 }
 0xd91   :  { %5448 = vpow2.f32 %v3875_v50 }
 0xd92   :  { %5450 = vpow2.f32 %v3876_v56 }
 0xd93   :  { %5452 = vpow2.f32 %v3877_v13 }
 0xd94   :  { %5454 = vtanh.f32 %v5172_v19 }
 0xd9b   :  { %v5449_v23 = vpop.eup %5448 }
 0xd9c   :  { %v5451_v31 = vpop.eup %5450  ;;  %v3195_v36 = vadd.f32 1.0, %v5449_v23 }
 0xd9d   :  { %v3201_v58 = vadd.f32 1.0, %v5451_v31  ;;  %v5453_v62 = vpop.eup %5452 }
 0xd9e   :  { %5456 = vrcp.f32 %v3195_v36  ;;  %v5455_v35 = vpop.eup %5454  ;;  %v3208_v18 = vadd.f32 1.0, %v5453_v62 }
 0xd9f   :  { %5458 = vrcp.f32 %v3201_v58 }
 0xda0   :  { %5460 = vrcp.f32 %v3208_v18 }
 0xda8   :  { %v5457_v9 = vpop.eup %5456 }
 0xda9   :  { %v5459_v37 = vpop.eup %5458  ;;  %v3212_v42 = vmul.f32 %v5457_v9, %v5455_v35 }
 0xdaa   :  { %v3211_v2 = vmul.f32 %v5459_v37, %v6582_v11  ;;  %v5461_v1 = vpop.eup %5460 }
 0xdac   :  { %v6624_v15 = vadd.f32 %v3212_v42, %v3211_v2 }
 0xdae   :  { %5462 = vtanh.f32 %v6624_v15 }
 0xdb8   :  { %v5463_v49 = vpop.eup %5462 }
 0xdb9   :  { %v3215_v33 = vmul.f32 %v5463_v49, %v5461_v1  ;;  %v3741_v49 = vld [vmem:[#allocation11 + $0x18] sm:$0xff] }
 0xdbb   :  { %3285 = vmatmul.mubr.f32.vlgmr.msra.gmra.mrb[26].mxu0 %v3215_v33  ;;  %3356 = vmatmul.mubr.f32.vlgmr.msra.gmra.mrb[26].mxu1 %v3215_v33 }
 0xdbc   :  { %4967 = vmatpush1.bf16.msra.mxu0 %v6296_v39  ;;  %4999 = vmatpush1.bf16.msra.mxu1 %v6299_v55 }
 0xdbd   :  { %4969 = vmatprep.subr.bf16.mxu0 %v6304_v61  ;;  %5001 = vmatprep.subr.bf16.mxu1 %v6306_v24 }
 0xdbe   :  { %3458 = vmatprep.mubr.f32.mxu0 %v5637_v0  ;;  %3529 = vmatprep.mubr.f32.mxu1 %v5637_v0 }
 0xdc0   :  { %4971 = vmatpush1.bf16.msra.mxu0 %v6308_v12  ;;  %5003 = vmatpush1.bf16.msra.mxu1 %v6311_v5 }
 0xdc1   :  { %4973 = vmatprep.subr.bf16.mxu0 %v6316_v53  ;;  %5005 = vmatprep.subr.bf16.mxu1 %v6318_v3 }
 0xdc4   :  { %4975 = vmatpush1.bf16.msra.mxu0 %v6320_v6  ;;  %5007 = vmatpush1.bf16.msra.mxu1 %v6323_v16 }
 0xdc5   :  { %4977 = vmatprep.subr.bf16.mxu0 %v6328_v29  ;;  %5009 = vmatprep.subr.bf16.mxu1 %v6330_v44 }
 0xdc8   :  { %4979 = vmatpush1.bf16.msra.mxu0 %v6332_v48  ;;  %5011 = vmatpush1.bf16.msra.mxu1 %v6335_v4 }
 0xdc9   :  { %4981 = vmatprep.subr.bf16.mxu0 %v6339_v22  ;;  %5013 = vmatprep.subr.bf16.mxu1 %v6341_v46 }
 0xdcc   :  { %4983 = vmatpush1.bf16.msra.mxu0 %v6344_v27  ;;  %5015 = vmatpush1.bf16.msra.mxu1 %v6348_v38 }
 0xdcd   :  { %4985 = vmatprep.subr.bf16.mxu0 %v6350_v52  ;;  %5017 = vmatprep.subr.bf16.mxu1 %v6352_v7 }
 0xdd0   :  { %4987 = vmatpush1.bf16.msra.mxu0 %v6355_v47  ;;  %5019 = vmatpush1.bf16.msra.mxu1 %v6359_v63 }
 0xdd1   :  { %4989 = vmatprep.subr.bf16.mxu0 %v6361_v10  ;;  %5021 = vmatprep.subr.bf16.mxu1 %v6364_v26 }
 0xdd4   :  { %4991 = vmatpush1.bf16.msra.mxu0 %v6367_v40  ;;  %5023 = vmatpush1.bf16.msra.mxu1 %v6371_v54 }
 0xdd5   :  { %4993 = vmatprep.subr.bf16.mxu0 %v6376_v14  ;;  %5025 = vmatprep.subr.bf16.mxu1 %v6378_v8 }
 0xdd8   :  { %4995 = vmatpush1.bf16.msra.mxu0 %v6380_v17  ;;  %5027 = vmatpush1.bf16.msra.mxu1 %v6383_v41 }
 0xdd9   :  { %5029 = vmatprep.subr.bf16.mxu0 %v6292_v43  ;;  %5061 = vmatprep.subr.bf16.mxu1 %v6294_v51 }
 0xe8e   :  { %v3286_v11 = vpop.f32.mrb[26].mxu0  ;;  %v3357_v57 = vpop.f32.mrb[26].mxu1 }
 0xe8f   :  { %v5158_v30 = vadd.f32 %v3286_v11, %v6438_v45  ;;  %v3288_v59 = vpop.f32.mrb[27].mxu0  ;;  %v3359_v25 = vpop.f32.mrb[27].mxu1  ;;  %v5174_v13 = vadd.f32 %v3357_v57, %v6453_v34  ;;  %v3742_v11 = vld [vmem:[#allocation11 + $0x20] sm:$0xff]  ;;  %v3743_v57 = vld [vmem:[#allocation11 + $0x28] sm:$0xff] }
 0xe90   :  { %v5159_v20 = vadd.f32 %v3288_v59, %v6442_v21  ;;  %v5175_v56 = vadd.f32 %v3359_v25, %v6448_v32  ;;  %v3744_v59 = vld [vmem:[#allocation11 + $0x30] sm:$0xff]  ;;  %v3745_v25 = vld [vmem:[#allocation11 + $0x38] sm:$0xff] }
 0xe91   :  { %v3878_v28 = vmul.f32 -1.442695, %v5158_v30  ;;  %v5099_v30 = vpack.c.bf16 %v3743_v57, %v3742_v11 }
 0xe92   :  { %v3879_v50 = vmul.f32 -1.442695, %v5159_v20  ;;  %v3880_v60 = vmul.f32 -1.442695, %v5175_v56  ;;  %v5102_v20 = vpack.c.bf16 %v3745_v25, %v3744_v59 }
 0xe93   :  { %5464 = vpow2.f32 %v3878_v28  ;;  %v3746_v28 = vld [vmem:[#allocation11 + $0x40] sm:$0xff] }
 0xe94   :  { %5466 = vpow2.f32 %v3879_v50  ;;  %v3747_v50 = vld [vmem:[#allocation11 + $0x48] sm:$0xff] }
 0xe95   :  { %5468 = vpow2.f32 %v3880_v60  ;;  %v5105_v56 = vpack.c.bf16 %v3747_v50, %v3746_v28  ;;  %v3748_v60 = vld [vmem:[#allocation11 + $0x50] sm:$0xff] }
 0xe96   :  { %5470 = vtanh.f32 %v5174_v13  ;;  %v3749_v13 = vld [vmem:[#allocation11 + $0x58] sm:$0xff] }
 0xe9d   :  { %v5465_v43 = vpop.eup %5464 }
 0xe9e   :  { %v5467_v19 = vpop.eup %5466  ;;  %v3369_v51 = vadd.f32 1.0, %v5465_v43  ;;  %v3750_v43 = vld [vmem:[#allocation11 + $0x60] sm:$0xff] }
 0xe9f   :  { %v3375_v23 = vadd.f32 1.0, %v5467_v19  ;;  %v5469_v31 = vpop.eup %5468  ;;  %v5108_v19 = vpack.c.bf16 %v3749_v13, %v3748_v60 }
 0xea0   :  { %5472 = vrcp.f32 %v3369_v51  ;;  %v5471_v36 = vpop.eup %5470  ;;  %v3382_v9 = vadd.f32 1.0, %v5469_v31  ;;  %v3751_v51 = vld [vmem:[#allocation11 + $0x68] sm:$0xff]  ;;  %v3752_v31 = vld [vmem:[#allocation11 + $0x70] sm:$0xff] }
 0xea1   :  { %5474 = vrcp.f32 %v3375_v23  ;;  %v5111_v23 = vpack.c.bf16 %v3751_v51, %v3750_v43 }
 0xea2   :  { %5476 = vrcp.f32 %v3382_v9 }
 0xeaa   :  { %v5473_v58 = vpop.eup %5472 }
 0xeab   :  { %v5475_v62 = vpop.eup %5474  ;;  %v3386_v35 = vmul.f32 %v5473_v58, %v5471_v36  ;;  %v3753_v36 = vld [vmem:[#allocation11 + $0x78] sm:$0xff] }
 0xeac   :  { %v3385_v37 = vmul.f32 %v5475_v62, %v6624_v15  ;;  %v5477_v18 = vpop.eup %5476  ;;  %v3740_v15 = vld [vmem:[#allocation11 + $0x10] sm:$0xff]  ;;  %v5114_v58 = vpack.c.bf16 %v3753_v36, %v3752_v31 }
 0xead   :  { %v5096_v33 = vpack.c.bf16 %v3741_v49, %v3740_v15 }
 0xeae   :  { %v6666_v42 = vadd.f32 %v3386_v35, %v3385_v37 }
 0xeb0   :  { %5478 = vtanh.f32 %v6666_v42 }
 0xeba   :  { %v5479_v2 = vpop.eup %5478 }
 0xebb   :  { %v3389_v1 = vmul.f32 %v5479_v2, %v5477_v18 }
 0xebd   :  { %3459 = vmatmul.mubr.f32.vlgmr.msra.gmra.mrb[28].mxu0 %v3389_v1  ;;  %3530 = vmatmul.mubr.f32.vlgmr.msra.gmra.mrb[28].mxu1 %v3389_v1 }
 0xebe   :  { %5031 = vmatpush1.bf16.msra.mxu0 %v6296_v39  ;;  %5063 = vmatpush1.bf16.msra.mxu1 %v6299_v55 }
 0xebf   :  { %5033 = vmatprep.subr.bf16.mxu0 %v6304_v61  ;;  %5065 = vmatprep.subr.bf16.mxu1 %v6306_v24 }
 0xec0   :  { %3632 = vmatprep.mubr.f32.mxu0 %v5637_v0  ;;  %3703 = vmatprep.mubr.f32.mxu1 %v5637_v0 }
 0xec2   :  { %5035 = vmatpush1.bf16.msra.mxu0 %v6308_v12  ;;  %5067 = vmatpush1.bf16.msra.mxu1 %v6311_v5 }
 0xec3   :  { %5037 = vmatprep.subr.bf16.mxu0 %v6316_v53  ;;  %5069 = vmatprep.subr.bf16.mxu1 %v6318_v3 }
 0xec6   :  { %5039 = vmatpush1.bf16.msra.mxu0 %v6320_v6  ;;  %5071 = vmatpush1.bf16.msra.mxu1 %v6323_v16 }
 0xec7   :  { %5041 = vmatprep.subr.bf16.mxu0 %v6328_v29  ;;  %5073 = vmatprep.subr.bf16.mxu1 %v6330_v44 }
 0xeca   :  { %5043 = vmatpush1.bf16.msra.mxu0 %v6332_v48  ;;  %5075 = vmatpush1.bf16.msra.mxu1 %v6335_v4 }
 0xecb   :  { %5045 = vmatprep.subr.bf16.mxu0 %v6339_v22  ;;  %5077 = vmatprep.subr.bf16.mxu1 %v6341_v46 }
 0xece   :  { %5047 = vmatpush1.bf16.msra.mxu0 %v6344_v27  ;;  %5079 = vmatpush1.bf16.msra.mxu1 %v6348_v38 }
 0xecf   :  { %5049 = vmatprep.subr.bf16.mxu0 %v6350_v52  ;;  %5081 = vmatprep.subr.bf16.mxu1 %v6352_v7 }
 0xed2   :  { %5051 = vmatpush1.bf16.msra.mxu0 %v6355_v47  ;;  %5083 = vmatpush1.bf16.msra.mxu1 %v6359_v63 }
 0xed3   :  { %5053 = vmatprep.subr.bf16.mxu0 %v6361_v10  ;;  %5085 = vmatprep.subr.bf16.mxu1 %v6364_v26 }
 0xed6   :  { %5055 = vmatpush1.bf16.msra.mxu0 %v6367_v40  ;;  %5087 = vmatpush1.bf16.msra.mxu1 %v6371_v54 }
 0xed7   :  { %5057 = vmatprep.subr.bf16.mxu0 %v6376_v14  ;;  %5089 = vmatprep.subr.bf16.mxu1 %v6378_v8  ;;  %v3738_v14 = vld [vmem:[#allocation11] sm:$0xff]  ;;  %v3739_v8 = vld [vmem:[#allocation11 + $0x8] sm:$0xff] }
 0xeda   :  { %5059 = vmatpush1.bf16.msra.mxu0 %v6380_v17  ;;  %5091 = vmatpush1.bf16.msra.mxu1 %v6383_v41  ;;  %v5093_v17 = vpack.c.bf16 %v3739_v8, %v3738_v14  ;;  %v5638_v41 = vmov 0.0|0.0  }
 0xedb   :  { %5092 = vmatprep.subr.bf16.mxu0 %v5638_v41 }
 0xf90   :  { %v3460_v39 = vpop.f32.mrb[28].mxu0  ;;  %v3531_v55 = vpop.f32.mrb[28].mxu1 }
 0xf91   :  { %v5160_v61 = vadd.f32 %v3460_v39, %v6438_v45  ;;  %v3462_v24 = vpop.f32.mrb[29].mxu0  ;;  %v3533_v12 = vpop.f32.mrb[29].mxu1  ;;  %v5176_v29 = vadd.f32 %v3531_v55, %v6453_v34 }
 0xf92   :  { %v5161_v5 = vadd.f32 %v3462_v24, %v6442_v21  ;;  %v5177_v6 = vadd.f32 %v3533_v12, %v6448_v32 }
 0xf93   :  { %v3881_v53 = vmul.f32 -1.442695, %v5160_v61 }
 0xf94   :  { %v3882_v3 = vmul.f32 -1.442695, %v5161_v5  ;;  %v3883_v16 = vmul.f32 -1.442695, %v5177_v6 }
 0xf95   :  { %5480 = vpow2.f32 %v3881_v53 }
 0xf96   :  { %5482 = vpow2.f32 %v3882_v3 }
 0xf97   :  { %5484 = vpow2.f32 %v3883_v16 }
 0xf98   :  { %5486 = vtanh.f32 %v5176_v29 }
 0xf9f   :  { %v5481_v44 = vpop.eup %5480 }
 0xfa0   :  { %v5483_v48 = vpop.eup %5482  ;;  %v3543_v4 = vadd.f32 1.0, %v5481_v44 }
 0xfa1   :  { %v3549_v22 = vadd.f32 1.0, %v5483_v48  ;;  %v5485_v46 = vpop.eup %5484 }
 0xfa2   :  { %5488 = vrcp.f32 %v3543_v4  ;;  %v5487_v27 = vpop.eup %5486  ;;  %v3556_v47 = vadd.f32 1.0, %v5485_v46  ;;  %v3887_v4 = vld [vmem:[%s6729_s8] ss:$0 sm:$0xff] }
 0xfa3   :  { %5490 = vrcp.f32 %v3549_v22 }
 0xfa4   :  { %5492 = vrcp.f32 %v3556_v47 }
 0xfac   :  { %v5489_v38 = vpop.eup %5488 }
 0xfad   :  { %v5491_v52 = vpop.eup %5490  ;;  %v3560_v7 = vmul.f32 %v5489_v38, %v5487_v27 }
 0xfae   :  { %v3559_v63 = vmul.f32 %v5491_v52, %v6666_v42  ;;  %v5493_v26 = vpop.eup %5492 }
 0xfb0   :  { %v6706_v10 = vadd.f32 %v3560_v7, %v3559_v63 }
 0xfb2   :  { %5494 = vtanh.f32 %v6706_v10 }
 0xfbc   :  { %v5495_v40 = vpop.eup %5494 }
 0xfbd   :  { %v3563_v54 = vmul.f32 %v5495_v40, %v5493_v26 }
 0xfbf   :  { %3633 = vmatmul.mubr.f32.vlgmr.msra.gmra.mrb[30].mxu0 %v3563_v54  ;;  %3704 = vmatmul.mubr.f32.vlgmr.msra.gmra.mrb[30].mxu1 %v3563_v54 }
 0xfc0   :  { %5094 = vmatpush3.bf16.msra.mxu0 %v5093_v17  ;;  %3937 = vmatprep.mubr.msk.f32.mxu0 %vm5639_vm0, %v5637_v0 }
 0xfc1   :  { %5095 = vmatprep.subr.bf16.mxu0 %v5638_v41 }
 0xfc4   :  { %5097 = vmatpush3.bf16.msra.mxu0 %v5096_v33 }
 0xfc5   :  { %5098 = vmatprep.subr.bf16.mxu0 %v5638_v41 }
 0xfc8   :  { %5100 = vmatpush3.bf16.msra.mxu0 %v5099_v30 }
 0xfc9   :  { %5101 = vmatprep.subr.bf16.mxu0 %v5638_v41 }
 0xfcc   :  { %5103 = vmatpush3.bf16.msra.mxu0 %v5102_v20 }
 0xfcd   :  { %5104 = vmatprep.subr.bf16.mxu0 %v5638_v41 }
 0xfd0   :  { %5106 = vmatpush3.bf16.msra.mxu0 %v5105_v56 }
 0xfd1   :  { %5107 = vmatprep.subr.bf16.mxu0 %v5638_v41 }
 0xfd4   :  { %5109 = vmatpush3.bf16.msra.mxu0 %v5108_v19 }
 0xfd5   :  { %5110 = vmatprep.subr.bf16.mxu0 %v5638_v41 }
 0xfd8   :  { %5112 = vmatpush3.bf16.msra.mxu0 %v5111_v23 }
 0xfd9   :  { %5113 = vmatprep.subr.bf16.mxu0 %v5638_v41 }
 0xfdc   :  { %5115 = vmatpush3.bf16.msra.mxu0 %v5114_v58 }
0x1092   :  { %v3634_v62 = vpop.f32.mrb[30].mxu0  ;;  %v3705_v35 = vpop.f32.mrb[30].mxu1 }
0x1093   :  { %v5162_v9 = vadd.f32 %v3634_v62, %v6438_v45  ;;  %v3636_v37 = vpop.f32.mrb[31].mxu0  ;;  %v3707_v42 = vpop.f32.mrb[31].mxu1  ;;  %v5178_v55 = vadd.f32 %v3705_v35, %v6453_v34 }
0x1094   :  { %v5163_v18 = vadd.f32 %v3636_v37, %v6442_v21  ;;  %v5179_v0 = vadd.f32 %v3707_v42, %v6448_v32 }
0x1095   :  { %v3884_v2 = vmul.f32 -1.442695, %v5162_v9 }
0x1096   :  { %v3885_v1 = vmul.f32 -1.442695, %v5163_v18  ;;  %v3886_v39 = vmul.f32 -1.442695, %v5179_v0 }
0x1097   :  { %5496 = vpow2.f32 %v3884_v2 }
0x1098   :  { %5498 = vpow2.f32 %v3885_v1 }
0x1099   :  { %5500 = vpow2.f32 %v3886_v39 }
0x109a   :  { %5502 = vtanh.f32 %v5178_v55 }
0x10a1   :  { %v5497_v61 = vpop.eup %5496 }
0x10a2   :  { %v5499_v24 = vpop.eup %5498  ;;  %v3717_v12 = vadd.f32 1.0, %v5497_v61 }
0x10a3   :  { %v3723_v5 = vadd.f32 1.0, %v5499_v24  ;;  %v5501_v45 = vpop.eup %5500 }
0x10a4   :  { %5504 = vrcp.f32 %v3717_v12  ;;  %v5503_v53 = vpop.eup %5502  ;;  %v3730_v16 = vadd.f32 1.0, %v5501_v45 }
0x10a5   :  { %5506 = vrcp.f32 %v3723_v5 }
0x10a6   :  { %5508 = vrcp.f32 %v3730_v16 }
0x10ae   :  { %v5505_v21 = vpop.eup %5504 }
0x10af   :  { %v5507_v3 = vpop.eup %5506  ;;  %v3734_v6 = vmul.f32 %v5505_v21, %v5503_v53 }
0x10b0   :  { %v3733_v29 = vmul.f32 %v5507_v3, %v6706_v10  ;;  %v5509_v34 = vpop.eup %5508 }
0x10b2   :  { %v3735_v32 = vadd.f32 %v3734_v6, %v3733_v29 }
0x10b4   :  { %5510 = vtanh.f32 %v3735_v32 }
0x10be   :  { %v5511_v44 = vpop.eup %5510 }
0x10bf   :  { %v3737_v48 = vmul.f32 %v5511_v44, %v5509_v34 }
0x10c1   :  { %3938 = vmatmul.mubr.f32.vlgmr.msra.gmra.mrb[32].mxu0 %v3737_v48 }
0x1194   :  { %v3827_v22 = vpop.f32.mrb[32].mxu0 }
0x1195   :  { %v3828_v46 = vadd.f32 %v3887_v4, %v3827_v22  ;;  %v3939_v27 = vpop.f32.mrb[33].mxu0 }
0x1197   :  { %3831 = vst [vmem:[%s6730_s9] sm:$0xff] %v3828_v46 }
0x1198   :  { %3836 = vsyncpa [#allocation5], 1 }
0x1199   :  { %3837 = vsyncpa [#allocation7], 1 }
0x119a   :  { %3838 = vsyncpa [#allocation10], 1 }

</bundles_post_ra>
